<compile_context>
chip_gen: v7x
topology: tpu7x:2x2x1
jax: 0.10.0
libtpu: 0.0.40
codegen_flags: <defaults>
</compile_context>

<pallas_src>
import functools

import jax
import jax.numpy as jnp
from jax.experimental import pallas as pl
from jax.experimental.pallas import tpu as pltpu


# ----------------------------------------------------------------------------
# Small (synthetic) CLIP config.  The real model is
#   vocab=49408, dim=768, tokens=77, heads=12, layers=12
# -- same structure, scaled down so the example runs quickly.  D=128 keeps the
# lane dimension dense (a D<128 toy would run every vector op half-empty).
# ----------------------------------------------------------------------------
NUM_VOCAB = 1000
DIM_EMBED = 128
NUM_TOKENS = 16
NUM_HEADS = 4
NUM_LAYERS = 2
BATCH = 2
LN_EPS = 1e-5


def _layernorm(v, g, b, eps=LN_EPS):
    mu = jnp.mean(v, axis=-1, keepdims=True)
    c = v - mu
    var = jnp.mean(c * c, axis=-1, keepdims=True)
    return c * jax.lax.rsqrt(var + eps) * g + b


# ----------------------------------------------------------------------------
# Fused Pallas kernel: all CLIP layers + final LayerNorm for one batch block.
# Grid = (batch_blocks, num_layers); layer axis is innermost ("arbitrary").
# ----------------------------------------------------------------------------
def clip_fused_kernel(x_ref,
                      ln1g_ref, ln1b_ref,
                      wq_ref, bq_ref, wk_ref, bk_ref, wv_ref, bv_ref,
                      wo_ref, bo_ref,
                      ln2g_ref, ln2b_ref,
                      w1_ref, b1_ref, w2_ref, b2_ref,
                      flng_ref, flnb_ref,
                      out_ref,
                      state_ref, attn_ref,
                      *, num_heads):
    layer = pl.program_id(1)
    bf16 = jnp.bfloat16

    # First layer of this batch block: load the embedding state into VMEM.
    @pl.when(layer == 0)
    def _init():
        state_ref[...] = x_ref[...].astype(jnp.float32)

    x = state_ref[...]                           # (BB, T, D) f32, residual stream
    BB, T, D = x.shape
    H = num_heads
    dh = D // H
    scale = 1.0 / (dh ** 0.5)

    # ---- self-attention block ------------------------------------------
    h = _layernorm(x, ln1g_ref[0], ln1b_ref[0])          # f32
    h2 = h.reshape(BB * T, D).astype(bf16)               # one big M=BB*T matmul block
    q = (jnp.dot(h2, wq_ref[0], preferred_element_type=jnp.float32)
         + bq_ref[0]).reshape(BB, T, D)
    k = (jnp.dot(h2, wk_ref[0], preferred_element_type=jnp.float32)
         + bk_ref[0]).reshape(BB, T, D)
    v = (jnp.dot(h2, wv_ref[0], preferred_element_type=jnp.float32)
         + bv_ref[0]).reshape(BB, T, D)

    row = jax.lax.broadcasted_iota(jnp.int32, (T, T), 0)
    col = jax.lax.broadcasted_iota(jnp.int32, (T, T), 1)
    causal = (col <= row)[None]                           # (1, T, T)

    # Static loop over heads; each head is batched over the batch block with a
    # single-leading-batch-dim einsum (the only batched dot_general form Mosaic
    # lowers reliably).  Head outputs go straight into a VMEM slab so only one
    # head is live at a time and no lane-axis concatenate is needed.
    for hh in range(H):
        sl = slice(hh * dh, (hh + 1) * dh)
        qh = q[:, :, sl].astype(bf16)                     # (BB, T, dh)
        kh = k[:, :, sl].astype(bf16)
        vh = v[:, :, sl].astype(bf16)
        s = jnp.einsum('bqd,bkd->bqk', qh, kh,
                       preferred_element_type=jnp.float32) * scale
        s = jnp.where(causal, s, -1e30)                   # causal mask
        s = s - jnp.max(s, axis=-1, keepdims=True)
        p = jnp.exp(s)
        p = p * pl.reciprocal(jnp.sum(p, axis=-1, keepdims=True), approx=True)
        attn_ref[:, :, sl] = jnp.einsum('bqk,bkd->bqd', p.astype(bf16), vh,
                                        preferred_element_type=jnp.float32)

    attn = attn_ref[...].reshape(BB * T, D).astype(bf16)
    attn = jnp.dot(attn, wo_ref[0], preferred_element_type=jnp.float32) + bo_ref[0]
    x = x + attn.reshape(BB, T, D)                        # residual 1 (f32)

    # ---- MLP block (quick GELU) ------------------------------------------
    h = _layernorm(x, ln2g_ref[0], ln2b_ref[0])
    h2 = h.reshape(BB * T, D).astype(bf16)
    m = jnp.dot(h2, w1_ref[0], preferred_element_type=jnp.float32) + b1_ref[0]
    m = m * jax.nn.sigmoid(1.702 * m)
    m = jnp.dot(m.astype(bf16), w2_ref[0], preferred_element_type=jnp.float32) + b2_ref[0]
    x = x + m.reshape(BB, T, D)                           # residual 2 (f32)

    state_ref[...] = x

    # Last layer: fused final LayerNorm epilogue, single HBM writeback.
    @pl.when(layer == pl.num_programs(1) - 1)
    def _finalize():
        out_ref[...] = _layernorm(x, flng_ref[...], flnb_ref[...]).astype(out_ref.dtype)


def clip_transformer(x, params, *, num_heads, block_b=None):
    """x: (B, T, D) f32 embedding state -> (B, T, D) f32 (all layers + final LN)."""
    B, T, D = x.shape
    L = len(params["layers"])
    if block_b is None:
        # Aim for >=~128 rows per matmul block; for v7x prefer keeping the batch
        # grid axis >= 2 so both TensorCores get work.
        block_b = max(1, min(B, 256 // max(T, 1)))
    while B % block_b:
        block_b -= 1
    nb = B // block_b

    wdt = jnp.bfloat16

    def stack(name):
        return jnp.stack([lp[name] for lp in params["layers"]], axis=0)

    def stack_vec(name):                     # (L, Dv) -> (L, 1, Dv)
        return stack(name)[:, None, :]

    # Split the fused qkv projection at trace time (outside the kernel) so the
    # kernel never lane-slices at non-128-aligned offsets of a fused qkv.
    w_qkv = stack("w_qkv")                   # (L, D, 3D) f32
    b_qkv = stack("b_qkv")                   # (L, 3D)    f32
    weights = [
        stack_vec("ln1_g"), stack_vec("ln1_b"),
        w_qkv[:, :, 0 * D:1 * D].astype(wdt), b_qkv[:, None, 0 * D:1 * D],
        w_qkv[:, :, 1 * D:2 * D].astype(wdt), b_qkv[:, None, 1 * D:2 * D],
        w_qkv[:, :, 2 * D:3 * D].astype(wdt), b_qkv[:, None, 2 * D:3 * D],
        stack("w_o").astype(wdt), stack_vec("b_o"),
        stack_vec("ln2_g"), stack_vec("ln2_b"),
        stack("w_1").astype(wdt), stack_vec("b_1"),
        stack("w_2").astype(wdt), stack_vec("b_2"),
    ]
    fln = [params["final_ln_g"][None, :], params["final_ln_b"][None, :]]   # (1, D)

    def wspec(a):
        # One layer-slice per grid step, indexed by the layer axis; default
        # double-buffering prefetches layer l+1 weights during layer l.
        n_rest = a.ndim - 1
        return pl.BlockSpec((1,) + a.shape[1:],
                            lambda b, l, _n=n_rest: (l,) + (0,) * _n)

    def cspec(a):
        nd = a.ndim
        return pl.BlockSpec(a.shape, lambda b, l, _nd=nd: (0,) * _nd)

    kernel = functools.partial(clip_fused_kernel, num_heads=num_heads)
    return pl.pallas_call(
        kernel,
        out_shape=jax.ShapeDtypeStruct((B, T, D), x.dtype),
        grid_spec=pltpu.PrefetchScalarGridSpec(
            num_scalar_prefetch=0,
            grid=(nb, L),
            in_specs=[pl.BlockSpec((block_b, T, D), lambda b, l: (b, 0, 0))]
                     + [wspec(w) for w in weights]
                     + [cspec(a) for a in fln],
            out_specs=pl.BlockSpec((block_b, T, D), lambda b, l: (b, 0, 0)),
            scratch_shapes=[pltpu.VMEM((block_b, T, D), jnp.float32),   # residual state
                            pltpu.VMEM((block_b, T, D), jnp.float32)], # attn head slab
        ),
        compiler_params=pltpu.CompilerParams(
            dimension_semantics=("parallel", "arbitrary"),
            vmem_limit_bytes=48 * 1024 * 1024,
        ),
    )(x, *weights, *fln)


# ----------------------------------------------------------------------------
# Parameter construction (deterministic) and full forward.
# ----------------------------------------------------------------------------
def init_params(key):
    keys = jax.random.split(key, 2 + NUM_LAYERS)
    params = {
        "tok_emb": 0.02 * jax.random.normal(keys[0], (NUM_VOCAB, DIM_EMBED), jnp.float32),
        "pos_emb": 0.02 * jax.random.normal(keys[1], (NUM_TOKENS, DIM_EMBED), jnp.float32),
        "final_ln_g": jnp.ones((DIM_EMBED,), jnp.float32),
        "final_ln_b": jnp.zeros((DIM_EMBED,), jnp.float32),
        "layers": [],
    }
    for li in range(NUM_LAYERS):
        lk = jax.random.split(keys[2 + li], 8)
        s = 0.02
        layer = {
            "ln1_g": jnp.ones((DIM_EMBED,), jnp.float32),
            "ln1_b": jnp.zeros((DIM_EMBED,), jnp.float32),
            "w_qkv": s * jax.random.normal(lk[0], (DIM_EMBED, 3 * DIM_EMBED), jnp.float32),
            "b_qkv": s * jax.random.normal(lk[1], (3 * DIM_EMBED,), jnp.float32),
            "w_o": s * jax.random.normal(lk[2], (DIM_EMBED, DIM_EMBED), jnp.float32),
            "b_o": s * jax.random.normal(lk[3], (DIM_EMBED,), jnp.float32),
            "ln2_g": jnp.ones((DIM_EMBED,), jnp.float32),
            "ln2_b": jnp.zeros((DIM_EMBED,), jnp.float32),
            "w_1": s * jax.random.normal(lk[4], (DIM_EMBED, 4 * DIM_EMBED), jnp.float32),
            "b_1": s * jax.random.normal(lk[5], (4 * DIM_EMBED,), jnp.float32),
            "w_2": s * jax.random.normal(lk[6], (4 * DIM_EMBED, DIM_EMBED), jnp.float32),
            "b_2": s * jax.random.normal(lk[7], (DIM_EMBED,), jnp.float32),
        }
        params["layers"].append(layer)
    return params


def clip_forward(tokens, params):
    tokens = tokens.astype(jnp.int32)                      # tokens.type(torch.long)
    # CLIPEmbedding (gather is glue; stays in plain JAX)
    state = jnp.take(params["tok_emb"], tokens, axis=0) + params["pos_emb"][None]
    return clip_transformer(state, params, num_heads=NUM_HEADS)


# ----------------------------------------------------------------------------
# Pure-JAX reference (f32 activations, bf16-quantized matmul weights to match
# the kernel's weight storage).
# ----------------------------------------------------------------------------
def _bf(w):
    return w.astype(jnp.bfloat16).astype(jnp.float32)


def clip_forward_ref(tokens, params):
    tokens = tokens.astype(jnp.int32)
    x = jnp.take(params["tok_emb"], tokens, axis=0) + params["pos_emb"][None]
    B, T, D = x.shape
    dh = D // NUM_HEADS
    causal = jnp.tril(jnp.ones((T, T), jnp.bool_))
    for p in params["layers"]:
        h = _layernorm(x, p["ln1_g"], p["ln1_b"])
        qkv = h @ _bf(p["w_qkv"]) + p["b_qkv"]
        q, k, v = qkv[..., :D], qkv[..., D:2 * D], qkv[..., 2 * D:]
        q = q.reshape(B, T, NUM_HEADS, dh).transpose(0, 2, 1, 3)
        k = k.reshape(B, T, NUM_HEADS, dh).transpose(0, 2, 1, 3)
        v = v.reshape(B, T, NUM_HEADS, dh).transpose(0, 2, 1, 3)
        s = jnp.einsum("bhqd,bhkd->bhqk", q, k) / (dh ** 0.5)
        s = jnp.where(causal[None, None], s, -1e30)
        a = jax.nn.softmax(s, axis=-1)
        o = jnp.einsum("bhqk,bhkd->bhqd", a, v).transpose(0, 2, 1, 3).reshape(B, T, D)
        x = x + (o @ _bf(p["w_o"]) + p["b_o"])
        h = _layernorm(x, p["ln2_g"], p["ln2_b"])
        h = h @ _bf(p["w_1"]) + p["b_1"]
        h = h * jax.nn.sigmoid(1.702 * h)
        x = x + (h @ _bf(p["w_2"]) + p["b_2"])
    return _layernorm(x, params["final_ln_g"], params["final_ln_b"])


if __name__ == "__main__":
    key = jax.random.PRNGKey(0)
    pkey, tkey = jax.random.split(key)
    params = init_params(pkey)
    tokens = jax.random.randint(tkey, (BATCH, NUM_TOKENS), 0, NUM_VOCAB, dtype=jnp.int32)

    out = jax.block_until_ready(clip_forward(tokens, params))
    ref = jax.block_until_ready(clip_forward_ref(tokens, params))

    assert out.shape == (BATCH, NUM_TOKENS, DIM_EMBED)
    err = float(jnp.max(jnp.abs(out - ref)))
    # bf16 activations / approx reciprocal vs f32-activation reference.
    assert err < 3e-2, f"max abs err {err}"
    print("KERNEL_OK")
</pallas_src>

<mosaic_0001>
module attributes {stable_mosaic.version = 11 : i64} {
  func.func @clip_fused_kernel(%arg0: i32, %arg1: i32, %arg2: memref<2x16x128xf32, #tpu.memory_space<vmem>>, %arg3: memref<1x1x128xf32, #tpu.memory_space<vmem>>, %arg4: memref<1x1x128xf32, #tpu.memory_space<vmem>>, %arg5: memref<1x128x128xbf16, #tpu.memory_space<vmem>>, %arg6: memref<1x1x128xf32, #tpu.memory_space<vmem>>, %arg7: memref<1x128x128xbf16, #tpu.memory_space<vmem>>, %arg8: memref<1x1x128xf32, #tpu.memory_space<vmem>>, %arg9: memref<1x128x128xbf16, #tpu.memory_space<vmem>>, %arg10: memref<1x1x128xf32, #tpu.memory_space<vmem>>, %arg11: memref<1x128x128xbf16, #tpu.memory_space<vmem>>, %arg12: memref<1x1x128xf32, #tpu.memory_space<vmem>>, %arg13: memref<1x1x128xf32, #tpu.memory_space<vmem>>, %arg14: memref<1x1x128xf32, #tpu.memory_space<vmem>>, %arg15: memref<1x128x512xbf16, #tpu.memory_space<vmem>>, %arg16: memref<1x1x512xf32, #tpu.memory_space<vmem>>, %arg17: memref<1x512x128xbf16, #tpu.memory_space<vmem>>, %arg18: memref<1x1x128xf32, #tpu.memory_space<vmem>>, %arg19: memref<1x128xf32, #tpu.memory_space<vmem>>, %arg20: memref<1x128xf32, #tpu.memory_space<vmem>>, %arg21: memref<2x16x128xf32, #tpu.memory_space<vmem>>, %arg22: memref<2x16x128xf32, #tpu.memory_space<vmem>>, %arg23: memref<2x16x128xf32, #tpu.memory_space<vmem>>) attributes {dimension_semantics = [#tpu.dimension_semantics<parallel>, #tpu.dimension_semantics<arbitrary>], iteration_bounds = array<i64: 1, 2>, scalar_prefetch = 0 : i64, scratch_operands = 2 : i64, tpu.core_type = #tpu.core_type<tc>, window_params = [{transform_indices = @transform_0, window_bounds = array<i64: 2, 16, 128>}, {transform_indices = @transform_1, window_bounds = array<i64: 1, 1, 128>}, {transform_indices = @transform_2, window_bounds = array<i64: 1, 1, 128>}, {transform_indices = @transform_3, window_bounds = array<i64: 1, 128, 128>}, {transform_indices = @transform_4, window_bounds = array<i64: 1, 1, 128>}, {transform_indices = @transform_5, window_bounds = array<i64: 1, 128, 128>}, {transform_indices = @transform_6, window_bounds = array<i64: 1, 1, 128>}, {transform_indices = @transform_7, window_bounds = array<i64: 1, 128, 128>}, {transform_indices = @transform_8, window_bounds = array<i64: 1, 1, 128>}, {transform_indices = @transform_9, window_bounds = array<i64: 1, 128, 128>}, {transform_indices = @transform_10, window_bounds = array<i64: 1, 1, 128>}, {transform_indices = @transform_11, window_bounds = array<i64: 1, 1, 128>}, {transform_indices = @transform_12, window_bounds = array<i64: 1, 1, 128>}, {transform_indices = @transform_13, window_bounds = array<i64: 1, 128, 512>}, {transform_indices = @transform_14, window_bounds = array<i64: 1, 1, 512>}, {transform_indices = @transform_15, window_bounds = array<i64: 1, 512, 128>}, {transform_indices = @transform_16, window_bounds = array<i64: 1, 1, 128>}, {pipeline_mode = #tpu.pipeline_mode<synchronous>, transform_indices = @transform_17, window_bounds = array<i64: 1, 128>}, {pipeline_mode = #tpu.pipeline_mode<synchronous>, transform_indices = @transform_18, window_bounds = array<i64: 1, 128>}, {transform_indices = @transform_19, window_bounds = array<i64: 2, 16, 128>}]} {
    %c0_i32 = arith.constant 0 : i32
    %0 = arith.cmpi eq, %arg1, %c0_i32 : i32
    %1 = arith.extui %0 : i1 to i32
    %c0_i32_0 = arith.constant 0 : i32
    %2 = arith.cmpi ne, %1, %c0_i32_0 : i32
    scf.if %2 {
      %c0_108 = arith.constant 0 : index
      %c0_109 = arith.constant 0 : index
      %c0_110 = arith.constant 0 : index
      %233 = vector.load %arg2[%c0_108, %c0_109, %c0_110] : memref<2x16x128xf32, #tpu.memory_space<vmem>>, vector<2x16x128xf32>
      %c0_111 = arith.constant 0 : index
      %c0_112 = arith.constant 0 : index
      %c0_113 = arith.constant 0 : index
      %234 = vector.load %arg22[%c0_111, %c0_112, %c0_113] : memref<2x16x128xf32, #tpu.memory_space<vmem>>, vector<2x16x128xf32>
      tpu.vector_store %arg22[%c0_111, %c0_112, %c0_113], %233 {strides = array<i32>} : memref<2x16x128xf32, #tpu.memory_space<vmem>>, vector<2x16x128xf32>,
    } else {
    }
    %c0 = arith.constant 0 : index
    %c0_1 = arith.constant 0 : index
    %c0_2 = arith.constant 0 : index
    %3 = vector.load %arg22[%c0, %c0_1, %c0_2] : memref<2x16x128xf32, #tpu.memory_space<vmem>>, vector<2x16x128xf32>
    %c0_3 = arith.constant 0 : index
    %c0_4 = arith.constant 0 : index
    %c0_5 = arith.constant 0 : index
    %4 = vector.load %arg3[%c0_3, %c0_4, %c0_5] : memref<1x1x128xf32, #tpu.memory_space<vmem>>, vector<1x1x128xf32>
    %5 = vector.shape_cast %4 : vector<1x1x128xf32> to vector<1x128xf32>
    %c0_6 = arith.constant 0 : index
    %c0_7 = arith.constant 0 : index
    %c0_8 = arith.constant 0 : index
    %6 = vector.load %arg4[%c0_6, %c0_7, %c0_8] : memref<1x1x128xf32, #tpu.memory_space<vmem>>, vector<1x1x128xf32>
    %7 = vector.shape_cast %6 : vector<1x1x128xf32> to vector<1x128xf32>
    %cst = arith.constant dense<0.000000e+00> : vector<2x16xf32>
    %8 = vector.multi_reduction <add>, %3, %cst [2] : vector<2x16x128xf32> to vector<2x16xf32>
    %9 = vector.shape_cast %8 : vector<2x16xf32> to vector<2x16x1xf32>
    %cst_9 = arith.constant 1.280000e+02 : f32
    %10 = vector.broadcast %cst_9 : f32 to vector<2x16x1xf32>
    %11 = arith.divf %9, %10 : vector<2x16x1xf32>
    %12 = vector.broadcast %11 : vector<2x16x1xf32> to vector<2x16x128xf32>
    %13 = arith.subf %3, %12 : vector<2x16x128xf32>
    %14 = arith.mulf %13, %13 : vector<2x16x128xf32>
    %cst_10 = arith.constant dense<0.000000e+00> : vector<2x16xf32>
    %15 = vector.multi_reduction <add>, %14, %cst_10 [2] : vector<2x16x128xf32> to vector<2x16xf32>
    %16 = vector.shape_cast %15 : vector<2x16xf32> to vector<2x16x1xf32>
    %cst_11 = arith.constant 1.280000e+02 : f32
    %17 = vector.broadcast %cst_11 : f32 to vector<2x16x1xf32>
    %18 = arith.divf %16, %17 : vector<2x16x1xf32>
    %cst_12 = arith.constant 9.99999974E-6 : f32
    %19 = vector.broadcast %cst_12 : f32 to vector<2x16x1xf32>
    %20 = arith.addf %18, %19 : vector<2x16x1xf32>
    %21 = math.rsqrt %20 : vector<2x16x1xf32>
    %22 = vector.broadcast %21 : vector<2x16x1xf32> to vector<2x16x128xf32>
    %23 = arith.mulf %13, %22 : vector<2x16x128xf32>
    %24 = vector.shape_cast %5 : vector<1x128xf32> to vector<1x1x128xf32>
    %25 = vector.broadcast %24 : vector<1x1x128xf32> to vector<2x16x128xf32>
    %26 = arith.mulf %23, %25 : vector<2x16x128xf32>
    %27 = vector.shape_cast %7 : vector<1x128xf32> to vector<1x1x128xf32>
    %28 = vector.broadcast %27 : vector<1x1x128xf32> to vector<2x16x128xf32>
    %29 = arith.addf %26, %28 : vector<2x16x128xf32>
    %30 = vector.shape_cast %29 : vector<2x16x128xf32> to vector<32x128xf32>
    %31 = arith.truncf %30 : vector<32x128xf32> to vector<32x128xbf16>
    %c0_13 = arith.constant 0 : index
    %c0_14 = arith.constant 0 : index
    %c0_15 = arith.constant 0 : index
    %32 = vector.load %arg5[%c0_13, %c0_14, %c0_15] : memref<1x128x128xbf16, #tpu.memory_space<vmem>>, vector<1x128x128xbf16>
    %33 = vector.shape_cast %32 : vector<1x128x128xbf16> to vector<128x128xbf16>
    %cst_16 = arith.constant dense<0.000000e+00> : vector<32x128xf32>
    %34 = tpu.matmul %31, %33, %cst_16 {dimension_numbers = #tpu.dot_dimension_numbers<[1], [0], [0], [1], [0, 0, 1, 1], [], []>} : vector<32x128xbf16>, vector<128x128xbf16>, vector<32x128xf32> -> vector<32x128xf32>
    %c0_17 = arith.constant 0 : index
    %c0_18 = arith.constant 0 : index
    %c0_19 = arith.constant 0 : index
    %35 = vector.load %arg6[%c0_17, %c0_18, %c0_19] : memref<1x1x128xf32, #tpu.memory_space<vmem>>, vector<1x1x128xf32>
    %36 = vector.shape_cast %35 : vector<1x1x128xf32> to vector<1x128xf32>
    %37 = vector.broadcast %36 : vector<1x128xf32> to vector<32x128xf32>
    %38 = arith.addf %34, %37 : vector<32x128xf32>
    %39 = vector.shape_cast %38 : vector<32x128xf32> to vector<2x16x128xf32>
    %c0_20 = arith.constant 0 : index
    %c0_21 = arith.constant 0 : index
    %c0_22 = arith.constant 0 : index
    %40 = vector.load %arg7[%c0_20, %c0_21, %c0_22] : memref<1x128x128xbf16, #tpu.memory_space<vmem>>, vector<1x128x128xbf16>
    %41 = vector.shape_cast %40 : vector<1x128x128xbf16> to vector<128x128xbf16>
    %cst_23 = arith.constant dense<0.000000e+00> : vector<32x128xf32>
    %42 = tpu.matmul %31, %41, %cst_23 {dimension_numbers = #tpu.dot_dimension_numbers<[1], [0], [0], [1], [0, 0, 1, 1], [], []>} : vector<32x128xbf16>, vector<128x128xbf16>, vector<32x128xf32> -> vector<32x128xf32>
    %c0_24 = arith.constant 0 : index
    %c0_25 = arith.constant 0 : index
    %c0_26 = arith.constant 0 : index
    %43 = vector.load %arg8[%c0_24, %c0_25, %c0_26] : memref<1x1x128xf32, #tpu.memory_space<vmem>>, vector<1x1x128xf32>
    %44 = vector.shape_cast %43 : vector<1x1x128xf32> to vector<1x128xf32>
    %45 = vector.broadcast %44 : vector<1x128xf32> to vector<32x128xf32>
    %46 = arith.addf %42, %45 : vector<32x128xf32>
    %47 = vector.shape_cast %46 : vector<32x128xf32> to vector<2x16x128xf32>
    %c0_27 = arith.constant 0 : index
    %c0_28 = arith.constant 0 : index
    %c0_29 = arith.constant 0 : index
    %48 = vector.load %arg9[%c0_27, %c0_28, %c0_29] : memref<1x128x128xbf16, #tpu.memory_space<vmem>>, vector<1x128x128xbf16>
    %49 = vector.shape_cast %48 : vector<1x128x128xbf16> to vector<128x128xbf16>
    %cst_30 = arith.constant dense<0.000000e+00> : vector<32x128xf32>
    %50 = tpu.matmul %31, %49, %cst_30 {dimension_numbers = #tpu.dot_dimension_numbers<[1], [0], [0], [1], [0, 0, 1, 1], [], []>} : vector<32x128xbf16>, vector<128x128xbf16>, vector<32x128xf32> -> vector<32x128xf32>
    %c0_31 = arith.constant 0 : index
    %c0_32 = arith.constant 0 : index
    %c0_33 = arith.constant 0 : index
    %51 = vector.load %arg10[%c0_31, %c0_32, %c0_33] : memref<1x1x128xf32, #tpu.memory_space<vmem>>, vector<1x1x128xf32>
    %52 = vector.shape_cast %51 : vector<1x1x128xf32> to vector<1x128xf32>
    %53 = vector.broadcast %52 : vector<1x128xf32> to vector<32x128xf32>
    %54 = arith.addf %50, %53 : vector<32x128xf32>
    %55 = vector.shape_cast %54 : vector<32x128xf32> to vector<2x16x128xf32>
    %56 = tpu.iota {dimensions = array<i32: 0>} : vector<16x16xi32>
    %57 = tpu.iota {dimensions = array<i32: 1>} : vector<16x16xi32>
    %58 = arith.cmpi sle, %57, %56 : vector<16x16xi32>
    %59 = vector.shape_cast %58 : vector<16x16xi1> to vector<1x16x16xi1>
    %60 = vector.extract_strided_slice %39 {offsets = [0, 0, 0], sizes = [2, 16, 32], strides = [1, 1, 1]} : vector<2x16x128xf32> to vector<2x16x32xf32>
    %61 = arith.truncf %60 : vector<2x16x32xf32> to vector<2x16x32xbf16>
    %62 = vector.extract_strided_slice %47 {offsets = [0, 0, 0], sizes = [2, 16, 32], strides = [1, 1, 1]} : vector<2x16x128xf32> to vector<2x16x32xf32>
    %63 = arith.truncf %62 : vector<2x16x32xf32> to vector<2x16x32xbf16>
    %64 = vector.extract_strided_slice %55 {offsets = [0, 0, 0], sizes = [2, 16, 32], strides = [1, 1, 1]} : vector<2x16x128xf32> to vector<2x16x32xf32>
    %65 = arith.truncf %64 : vector<2x16x32xf32> to vector<2x16x32xbf16>
    "tpu.trace_start"() <{level = 10 : i32, message = "bqd,bkd->bqk"}> : () -> ()
    %cst_34 = arith.constant dense<0.000000e+00> : vector<2x16x16xf32>
    %66 = tpu.matmul %61, %63, %cst_34 {dimension_numbers = #tpu.dot_dimension_numbers<[2], [2], [1], [1], [0, 0, 0, 1, 1, 1], [0], [0]>} : vector<2x16x32xbf16>, vector<2x16x32xbf16>, vector<2x16x16xf32> -> vector<2x16x16xf32>
    "tpu.trace_stop"() : () -> ()
    %cst_35 = arith.constant 0.176776692 : f32
    %67 = vector.broadcast %cst_35 : f32 to vector<2x16x16xf32>
    %68 = arith.mulf %66, %67 : vector<2x16x16xf32>
    %cst_36 = arith.constant -1.000000e+30 : f32
    %69 = vector.shape_cast %59 : vector<1x16x16xi1> to vector<1x16x16xi1>
    %70 = vector.broadcast %69 : vector<1x16x16xi1> to vector<2x16x16xi1>
    %71 = vector.broadcast %cst_36 : f32 to vector<2x16x16xf32>
    %72 = arith.select %70, %68, %71 : vector<2x16x16xi1>, vector<2x16x16xf32>
    %cst_37 = arith.constant dense<0xFF800000> : vector<2x16xf32>
    %73 = vector.multi_reduction <maximumf>, %72, %cst_37 [2] : vector<2x16x16xf32> to vector<2x16xf32>
    %74 = vector.shape_cast %73 : vector<2x16xf32> to vector<2x16x1xf32>
    %75 = vector.broadcast %74 : vector<2x16x1xf32> to vector<2x16x16xf32>
    %76 = arith.subf %72, %75 : vector<2x16x16xf32>
    %77 = math.exp %76 : vector<2x16x16xf32>
    %cst_38 = arith.constant dense<0.000000e+00> : vector<2x16xf32>
    %78 = vector.multi_reduction <add>, %77, %cst_38 [2] : vector<2x16x16xf32> to vector<2x16xf32>
    %79 = vector.shape_cast %78 : vector<2x16xf32> to vector<2x16x1xf32>
    %80 = tpu.reciprocal %79 {approx = true} : vector<2x16x1xf32> -> vector<2x16x1xf32>
    %81 = vector.broadcast %80 : vector<2x16x1xf32> to vector<2x16x16xf32>
    %82 = arith.mulf %77, %81 : vector<2x16x16xf32>
    %83 = arith.truncf %82 : vector<2x16x16xf32> to vector<2x16x16xbf16>
    "tpu.trace_start"() <{level = 10 : i32, message = "bqk,bkd->bqd"}> : () -> ()
    %cst_39 = arith.constant dense<0.000000e+00> : vector<2x16x32xf32>
    %84 = tpu.matmul %83, %65, %cst_39 {dimension_numbers = #tpu.dot_dimension_numbers<[2], [1], [1], [2], [0, 0, 0, 1, 1, 2], [0], [0]>} : vector<2x16x16xbf16>, vector<2x16x32xbf16>, vector<2x16x32xf32> -> vector<2x16x32xf32>
    "tpu.trace_stop"() : () -> ()
    %c0_40 = arith.constant 0 : index
    %c0_41 = arith.constant 0 : index
    %c0_42 = arith.constant 0 : index
    %85 = vector.load %arg23[%c0_40, %c0_41, %c0_42] : memref<2x16x128xf32, #tpu.memory_space<vmem>>, vector<2x16x32xf32>
    tpu.vector_store %arg23[%c0_40, %c0_41, %c0_42], %84 {strides = array<i32>} : memref<2x16x128xf32, #tpu.memory_space<vmem>>, vector<2x16x32xf32>,
    %86 = vector.extract_strided_slice %39 {offsets = [0, 0, 32], sizes = [2, 16, 32], strides = [1, 1, 1]} : vector<2x16x128xf32> to vector<2x16x32xf32>
    %87 = arith.truncf %86 : vector<2x16x32xf32> to vector<2x16x32xbf16>
    %88 = vector.extract_strided_slice %47 {offsets = [0, 0, 32], sizes = [2, 16, 32], strides = [1, 1, 1]} : vector<2x16x128xf32> to vector<2x16x32xf32>
    %89 = arith.truncf %88 : vector<2x16x32xf32> to vector<2x16x32xbf16>
    %90 = vector.extract_strided_slice %55 {offsets = [0, 0, 32], sizes = [2, 16, 32], strides = [1, 1, 1]} : vector<2x16x128xf32> to vector<2x16x32xf32>
    %91 = arith.truncf %90 : vector<2x16x32xf32> to vector<2x16x32xbf16>
    "tpu.trace_start"() <{level = 10 : i32, message = "bqd,bkd->bqk"}> : () -> ()
    %cst_43 = arith.constant dense<0.000000e+00> : vector<2x16x16xf32>
    %92 = tpu.matmul %87, %89, %cst_43 {dimension_numbers = #tpu.dot_dimension_numbers<[2], [2], [1], [1], [0, 0, 0, 1, 1, 1], [0], [0]>} : vector<2x16x32xbf16>, vector<2x16x32xbf16>, vector<2x16x16xf32> -> vector<2x16x16xf32>
    "tpu.trace_stop"() : () -> ()
    %cst_44 = arith.constant 0.176776692 : f32
    %93 = vector.broadcast %cst_44 : f32 to vector<2x16x16xf32>
    %94 = arith.mulf %92, %93 : vector<2x16x16xf32>
    %cst_45 = arith.constant -1.000000e+30 : f32
    %95 = vector.shape_cast %59 : vector<1x16x16xi1> to vector<1x16x16xi1>
    %96 = vector.broadcast %95 : vector<1x16x16xi1> to vector<2x16x16xi1>
    %97 = vector.broadcast %cst_45 : f32 to vector<2x16x16xf32>
    %98 = arith.select %96, %94, %97 : vector<2x16x16xi1>, vector<2x16x16xf32>
    %cst_46 = arith.constant dense<0xFF800000> : vector<2x16xf32>
    %99 = vector.multi_reduction <maximumf>, %98, %cst_46 [2] : vector<2x16x16xf32> to vector<2x16xf32>
    %100 = vector.shape_cast %99 : vector<2x16xf32> to vector<2x16x1xf32>
    %101 = vector.broadcast %100 : vector<2x16x1xf32> to vector<2x16x16xf32>
    %102 = arith.subf %98, %101 : vector<2x16x16xf32>
    %103 = math.exp %102 : vector<2x16x16xf32>
    %cst_47 = arith.constant dense<0.000000e+00> : vector<2x16xf32>
    %104 = vector.multi_reduction <add>, %103, %cst_47 [2] : vector<2x16x16xf32> to vector<2x16xf32>
    %105 = vector.shape_cast %104 : vector<2x16xf32> to vector<2x16x1xf32>
    %106 = tpu.reciprocal %105 {approx = true} : vector<2x16x1xf32> -> vector<2x16x1xf32>
    %107 = vector.broadcast %106 : vector<2x16x1xf32> to vector<2x16x16xf32>
    %108 = arith.mulf %103, %107 : vector<2x16x16xf32>
    %109 = arith.truncf %108 : vector<2x16x16xf32> to vector<2x16x16xbf16>
    "tpu.trace_start"() <{level = 10 : i32, message = "bqk,bkd->bqd"}> : () -> ()
    %cst_48 = arith.constant dense<0.000000e+00> : vector<2x16x32xf32>
    %110 = tpu.matmul %109, %91, %cst_48 {dimension_numbers = #tpu.dot_dimension_numbers<[2], [1], [1], [2], [0, 0, 0, 1, 1, 2], [0], [0]>} : vector<2x16x16xbf16>, vector<2x16x32xbf16>, vector<2x16x32xf32> -> vector<2x16x32xf32>
    "tpu.trace_stop"() : () -> ()
    %c0_49 = arith.constant 0 : index
    %c0_50 = arith.constant 0 : index
    %c32 = arith.constant 32 : index
    %111 = vector.load %arg23[%c0_49, %c0_50, %c32] : memref<2x16x128xf32, #tpu.memory_space<vmem>>, vector<2x16x32xf32>
    tpu.vector_store %arg23[%c0_49, %c0_50, %c32], %110 {strides = array<i32>} : memref<2x16x128xf32, #tpu.memory_space<vmem>>, vector<2x16x32xf32>,
    %112 = vector.extract_strided_slice %39 {offsets = [0, 0, 64], sizes = [2, 16, 32], strides = [1, 1, 1]} : vector<2x16x128xf32> to vector<2x16x32xf32>
    %113 = arith.truncf %112 : vector<2x16x32xf32> to vector<2x16x32xbf16>
    %114 = vector.extract_strided_slice %47 {offsets = [0, 0, 64], sizes = [2, 16, 32], strides = [1, 1, 1]} : vector<2x16x128xf32> to vector<2x16x32xf32>
    %115 = arith.truncf %114 : vector<2x16x32xf32> to vector<2x16x32xbf16>
    %116 = vector.extract_strided_slice %55 {offsets = [0, 0, 64], sizes = [2, 16, 32], strides = [1, 1, 1]} : vector<2x16x128xf32> to vector<2x16x32xf32>
    %117 = arith.truncf %116 : vector<2x16x32xf32> to vector<2x16x32xbf16>
    "tpu.trace_start"() <{level = 10 : i32, message = "bqd,bkd->bqk"}> : () -> ()
    %cst_51 = arith.constant dense<0.000000e+00> : vector<2x16x16xf32>
    %118 = tpu.matmul %113, %115, %cst_51 {dimension_numbers = #tpu.dot_dimension_numbers<[2], [2], [1], [1], [0, 0, 0, 1, 1, 1], [0], [0]>} : vector<2x16x32xbf16>, vector<2x16x32xbf16>, vector<2x16x16xf32> -> vector<2x16x16xf32>
    "tpu.trace_stop"() : () -> ()
    %cst_52 = arith.constant 0.176776692 : f32
    %119 = vector.broadcast %cst_52 : f32 to vector<2x16x16xf32>
    %120 = arith.mulf %118, %119 : vector<2x16x16xf32>
    %cst_53 = arith.constant -1.000000e+30 : f32
    %121 = vector.shape_cast %59 : vector<1x16x16xi1> to vector<1x16x16xi1>
    %122 = vector.broadcast %121 : vector<1x16x16xi1> to vector<2x16x16xi1>
    %123 = vector.broadcast %cst_53 : f32 to vector<2x16x16xf32>
    %124 = arith.select %122, %120, %123 : vector<2x16x16xi1>, vector<2x16x16xf32>
    %cst_54 = arith.constant dense<0xFF800000> : vector<2x16xf32>
    %125 = vector.multi_reduction <maximumf>, %124, %cst_54 [2] : vector<2x16x16xf32> to vector<2x16xf32>
    %126 = vector.shape_cast %125 : vector<2x16xf32> to vector<2x16x1xf32>
    %127 = vector.broadcast %126 : vector<2x16x1xf32> to vector<2x16x16xf32>
    %128 = arith.subf %124, %127 : vector<2x16x16xf32>
    %129 = math.exp %128 : vector<2x16x16xf32>
    %cst_55 = arith.constant dense<0.000000e+00> : vector<2x16xf32>
    %130 = vector.multi_reduction <add>, %129, %cst_55 [2] : vector<2x16x16xf32> to vector<2x16xf32>
    %131 = vector.shape_cast %130 : vector<2x16xf32> to vector<2x16x1xf32>
    %132 = tpu.reciprocal %131 {approx = true} : vector<2x16x1xf32> -> vector<2x16x1xf32>
    %133 = vector.broadcast %132 : vector<2x16x1xf32> to vector<2x16x16xf32>
    %134 = arith.mulf %129, %133 : vector<2x16x16xf32>
    %135 = arith.truncf %134 : vector<2x16x16xf32> to vector<2x16x16xbf16>
    "tpu.trace_start"() <{level = 10 : i32, message = "bqk,bkd->bqd"}> : () -> ()
    %cst_56 = arith.constant dense<0.000000e+00> : vector<2x16x32xf32>
    %136 = tpu.matmul %135, %117, %cst_56 {dimension_numbers = #tpu.dot_dimension_numbers<[2], [1], [1], [2], [0, 0, 0, 1, 1, 2], [0], [0]>} : vector<2x16x16xbf16>, vector<2x16x32xbf16>, vector<2x16x32xf32> -> vector<2x16x32xf32>
    "tpu.trace_stop"() : () -> ()
    %c0_57 = arith.constant 0 : index
    %c0_58 = arith.constant 0 : index
    %c64 = arith.constant 64 : index
    %137 = vector.load %arg23[%c0_57, %c0_58, %c64] : memref<2x16x128xf32, #tpu.memory_space<vmem>>, vector<2x16x32xf32>
    tpu.vector_store %arg23[%c0_57, %c0_58, %c64], %136 {strides = array<i32>} : memref<2x16x128xf32, #tpu.memory_space<vmem>>, vector<2x16x32xf32>,
    %138 = vector.extract_strided_slice %39 {offsets = [0, 0, 96], sizes = [2, 16, 32], strides = [1, 1, 1]} : vector<2x16x128xf32> to vector<2x16x32xf32>
    %139 = arith.truncf %138 : vector<2x16x32xf32> to vector<2x16x32xbf16>
    %140 = vector.extract_strided_slice %47 {offsets = [0, 0, 96], sizes = [2, 16, 32], strides = [1, 1, 1]} : vector<2x16x128xf32> to vector<2x16x32xf32>
    %141 = arith.truncf %140 : vector<2x16x32xf32> to vector<2x16x32xbf16>
    %142 = vector.extract_strided_slice %55 {offsets = [0, 0, 96], sizes = [2, 16, 32], strides = [1, 1, 1]} : vector<2x16x128xf32> to vector<2x16x32xf32>
    %143 = arith.truncf %142 : vector<2x16x32xf32> to vector<2x16x32xbf16>
    "tpu.trace_start"() <{level = 10 : i32, message = "bqd,bkd->bqk"}> : () -> ()
    %cst_59 = arith.constant dense<0.000000e+00> : vector<2x16x16xf32>
    %144 = tpu.matmul %139, %141, %cst_59 {dimension_numbers = #tpu.dot_dimension_numbers<[2], [2], [1], [1], [0, 0, 0, 1, 1, 1], [0], [0]>} : vector<2x16x32xbf16>, vector<2x16x32xbf16>, vector<2x16x16xf32> -> vector<2x16x16xf32>
    "tpu.trace_stop"() : () -> ()
    %cst_60 = arith.constant 0.176776692 : f32
    %145 = vector.broadcast %cst_60 : f32 to vector<2x16x16xf32>
    %146 = arith.mulf %144, %145 : vector<2x16x16xf32>
    %cst_61 = arith.constant -1.000000e+30 : f32
    %147 = vector.shape_cast %59 : vector<1x16x16xi1> to vector<1x16x16xi1>
    %148 = vector.broadcast %147 : vector<1x16x16xi1> to vector<2x16x16xi1>
    %149 = vector.broadcast %cst_61 : f32 to vector<2x16x16xf32>
    %150 = arith.select %148, %146, %149 : vector<2x16x16xi1>, vector<2x16x16xf32>
    %cst_62 = arith.constant dense<0xFF800000> : vector<2x16xf32>
    %151 = vector.multi_reduction <maximumf>, %150, %cst_62 [2] : vector<2x16x16xf32> to vector<2x16xf32>
    %152 = vector.shape_cast %151 : vector<2x16xf32> to vector<2x16x1xf32>
    %153 = vector.broadcast %152 : vector<2x16x1xf32> to vector<2x16x16xf32>
    %154 = arith.subf %150, %153 : vector<2x16x16xf32>
    %155 = math.exp %154 : vector<2x16x16xf32>
    %cst_63 = arith.constant dense<0.000000e+00> : vector<2x16xf32>
    %156 = vector.multi_reduction <add>, %155, %cst_63 [2] : vector<2x16x16xf32> to vector<2x16xf32>
    %157 = vector.shape_cast %156 : vector<2x16xf32> to vector<2x16x1xf32>
    %158 = tpu.reciprocal %157 {approx = true} : vector<2x16x1xf32> -> vector<2x16x1xf32>
    %159 = vector.broadcast %158 : vector<2x16x1xf32> to vector<2x16x16xf32>
    %160 = arith.mulf %155, %159 : vector<2x16x16xf32>
    %161 = arith.truncf %160 : vector<2x16x16xf32> to vector<2x16x16xbf16>
    "tpu.trace_start"() <{level = 10 : i32, message = "bqk,bkd->bqd"}> : () -> ()
    %cst_64 = arith.constant dense<0.000000e+00> : vector<2x16x32xf32>
    %162 = tpu.matmul %161, %143, %cst_64 {dimension_numbers = #tpu.dot_dimension_numbers<[2], [1], [1], [2], [0, 0, 0, 1, 1, 2], [0], [0]>} : vector<2x16x16xbf16>, vector<2x16x32xbf16>, vector<2x16x32xf32> -> vector<2x16x32xf32>
    "tpu.trace_stop"() : () -> ()
    %c0_65 = arith.constant 0 : index
    %c0_66 = arith.constant 0 : index
    %c96 = arith.constant 96 : index
    %163 = vector.load %arg23[%c0_65, %c0_66, %c96] : memref<2x16x128xf32, #tpu.memory_space<vmem>>, vector<2x16x32xf32>
    tpu.vector_store %arg23[%c0_65, %c0_66, %c96], %162 {strides = array<i32>} : memref<2x16x128xf32, #tpu.memory_space<vmem>>, vector<2x16x32xf32>,
    %c0_67 = arith.constant 0 : index
    %c0_68 = arith.constant 0 : index
    %c0_69 = arith.constant 0 : index
    %164 = vector.load %arg23[%c0_67, %c0_68, %c0_69] : memref<2x16x128xf32, #tpu.memory_space<vmem>>, vector<2x16x128xf32>
    %165 = vector.shape_cast %164 : vector<2x16x128xf32> to vector<32x128xf32>
    %166 = arith.truncf %165 : vector<32x128xf32> to vector<32x128xbf16>
    %c0_70 = arith.constant 0 : index
    %c0_71 = arith.constant 0 : index
    %c0_72 = arith.constant 0 : index
    %167 = vector.load %arg11[%c0_70, %c0_71, %c0_72] : memref<1x128x128xbf16, #tpu.memory_space<vmem>>, vector<1x128x128xbf16>
    %168 = vector.shape_cast %167 : vector<1x128x128xbf16> to vector<128x128xbf16>
    %cst_73 = arith.constant dense<0.000000e+00> : vector<32x128xf32>
    %169 = tpu.matmul %166, %168, %cst_73 {dimension_numbers = #tpu.dot_dimension_numbers<[1], [0], [0], [1], [0, 0, 1, 1], [], []>} : vector<32x128xbf16>, vector<128x128xbf16>, vector<32x128xf32> -> vector<32x128xf32>
    %c0_74 = arith.constant 0 : index
    %c0_75 = arith.constant 0 : index
    %c0_76 = arith.constant 0 : index
    %170 = vector.load %arg12[%c0_74, %c0_75, %c0_76] : memref<1x1x128xf32, #tpu.memory_space<vmem>>, vector<1x1x128xf32>
    %171 = vector.shape_cast %170 : vector<1x1x128xf32> to vector<1x128xf32>
    %172 = vector.broadcast %171 : vector<1x128xf32> to vector<32x128xf32>
    %173 = arith.addf %169, %172 : vector<32x128xf32>
    %174 = vector.shape_cast %173 : vector<32x128xf32> to vector<2x16x128xf32>
    %175 = arith.addf %3, %174 : vector<2x16x128xf32>
    %c0_77 = arith.constant 0 : index
    %c0_78 = arith.constant 0 : index
    %c0_79 = arith.constant 0 : index
    %176 = vector.load %arg13[%c0_77, %c0_78, %c0_79] : memref<1x1x128xf32, #tpu.memory_space<vmem>>, vector<1x1x128xf32>
    %177 = vector.shape_cast %176 : vector<1x1x128xf32> to vector<1x128xf32>
    %c0_80 = arith.constant 0 : index
    %c0_81 = arith.constant 0 : index
    %c0_82 = arith.constant 0 : index
    %178 = vector.load %arg14[%c0_80, %c0_81, %c0_82] : memref<1x1x128xf32, #tpu.memory_space<vmem>>, vector<1x1x128xf32>
    %179 = vector.shape_cast %178 : vector<1x1x128xf32> to vector<1x128xf32>
    %cst_83 = arith.constant dense<0.000000e+00> : vector<2x16xf32>
    %180 = vector.multi_reduction <add>, %175, %cst_83 [2] : vector<2x16x128xf32> to vector<2x16xf32>
    %181 = vector.shape_cast %180 : vector<2x16xf32> to vector<2x16x1xf32>
    %cst_84 = arith.constant 1.280000e+02 : f32
    %182 = vector.broadcast %cst_84 : f32 to vector<2x16x1xf32>
    %183 = arith.divf %181, %182 : vector<2x16x1xf32>
    %184 = vector.broadcast %183 : vector<2x16x1xf32> to vector<2x16x128xf32>
    %185 = arith.subf %175, %184 : vector<2x16x128xf32>
    %186 = arith.mulf %185, %185 : vector<2x16x128xf32>
    %cst_85 = arith.constant dense<0.000000e+00> : vector<2x16xf32>
    %187 = vector.multi_reduction <add>, %186, %cst_85 [2] : vector<2x16x128xf32> to vector<2x16xf32>
    %188 = vector.shape_cast %187 : vector<2x16xf32> to vector<2x16x1xf32>
    %cst_86 = arith.constant 1.280000e+02 : f32
    %189 = vector.broadcast %cst_86 : f32 to vector<2x16x1xf32>
    %190 = arith.divf %188, %189 : vector<2x16x1xf32>
    %cst_87 = arith.constant 9.99999974E-6 : f32
    %191 = vector.broadcast %cst_87 : f32 to vector<2x16x1xf32>
    %192 = arith.addf %190, %191 : vector<2x16x1xf32>
    %193 = math.rsqrt %192 : vector<2x16x1xf32>
    %194 = vector.broadcast %193 : vector<2x16x1xf32> to vector<2x16x128xf32>
    %195 = arith.mulf %185, %194 : vector<2x16x128xf32>
    %196 = vector.shape_cast %177 : vector<1x128xf32> to vector<1x1x128xf32>
    %197 = vector.broadcast %196 : vector<1x1x128xf32> to vector<2x16x128xf32>
    %198 = arith.mulf %195, %197 : vector<2x16x128xf32>
    %199 = vector.shape_cast %179 : vector<1x128xf32> to vector<1x1x128xf32>
    %200 = vector.broadcast %199 : vector<1x1x128xf32> to vector<2x16x128xf32>
    %201 = arith.addf %198, %200 : vector<2x16x128xf32>
    %202 = vector.shape_cast %201 : vector<2x16x128xf32> to vector<32x128xf32>
    %203 = arith.truncf %202 : vector<32x128xf32> to vector<32x128xbf16>
    %c0_88 = arith.constant 0 : index
    %c0_89 = arith.constant 0 : index
    %c0_90 = arith.constant 0 : index
    %204 = vector.load %arg15[%c0_88, %c0_89, %c0_90] : memref<1x128x512xbf16, #tpu.memory_space<vmem>>, vector<1x128x512xbf16>
    %205 = vector.shape_cast %204 : vector<1x128x512xbf16> to vector<128x512xbf16>
    %cst_91 = arith.constant dense<0.000000e+00> : vector<32x512xf32>
    %206 = tpu.matmul %203, %205, %cst_91 {dimension_numbers = #tpu.dot_dimension_numbers<[1], [0], [0], [1], [0, 0, 1, 1], [], []>} : vector<32x128xbf16>, vector<128x512xbf16>, vector<32x512xf32> -> vector<32x512xf32>
    %c0_92 = arith.constant 0 : index
    %c0_93 = arith.constant 0 : index
    %c0_94 = arith.constant 0 : index
    %207 = vector.load %arg16[%c0_92, %c0_93, %c0_94] : memref<1x1x512xf32, #tpu.memory_space<vmem>>, vector<1x1x512xf32>
    %208 = vector.shape_cast %207 : vector<1x1x512xf32> to vector<1x512xf32>
    %209 = vector.broadcast %208 : vector<1x512xf32> to vector<32x512xf32>
    %210 = arith.addf %206, %209 : vector<32x512xf32>
    %cst_95 = arith.constant 1.702000e+00 : f32
    %211 = vector.broadcast %cst_95 : f32 to vector<32x512xf32>
    %212 = arith.mulf %211, %210 : vector<32x512xf32>
    %213 = arith.negf %212 : vector<32x512xf32>
    %214 = math.exp %213 : vector<32x512xf32>
    %cst_96 = arith.constant 1.000000e+00 : f32
    %215 = vector.broadcast %cst_96 : f32 to vector<32x512xf32>
    %216 = arith.addf %215, %214 : vector<32x512xf32>
    %217 = arith.divf %215, %216 : vector<32x512xf32>
    %218 = arith.mulf %210, %217 : vector<32x512xf32>
    %219 = arith.truncf %218 : vector<32x512xf32> to vector<32x512xbf16>
    %c0_97 = arith.constant 0 : index
    %c0_98 = arith.constant 0 : index
    %c0_99 = arith.constant 0 : index
    %220 = vector.load %arg17[%c0_97, %c0_98, %c0_99] : memref<1x512x128xbf16, #tpu.memory_space<vmem>>, vector<1x512x128xbf16>
    %221 = vector.shape_cast %220 : vector<1x512x128xbf16> to vector<512x128xbf16>
    %cst_100 = arith.constant dense<0.000000e+00> : vector<32x128xf32>
    %222 = tpu.matmul %219, %221, %cst_100 {dimension_numbers = #tpu.dot_dimension_numbers<[1], [0], [0], [1], [0, 0, 1, 1], [], []>} : vector<32x512xbf16>, vector<512x128xbf16>, vector<32x128xf32> -> vector<32x128xf32>
    %c0_101 = arith.constant 0 : index
    %c0_102 = arith.constant 0 : index
    %c0_103 = arith.constant 0 : index
    %223 = vector.load %arg18[%c0_101, %c0_102, %c0_103] : memref<1x1x128xf32, #tpu.memory_space<vmem>>, vector<1x1x128xf32>
    %224 = vector.shape_cast %223 : vector<1x1x128xf32> to vector<1x128xf32>
    %225 = vector.broadcast %224 : vector<1x128xf32> to vector<32x128xf32>
    %226 = arith.addf %222, %225 : vector<32x128xf32>
    %227 = vector.shape_cast %226 : vector<32x128xf32> to vector<2x16x128xf32>
    %228 = arith.addf %175, %227 : vector<2x16x128xf32>
    %c0_104 = arith.constant 0 : index
    %c0_105 = arith.constant 0 : index
    %c0_106 = arith.constant 0 : index
    %229 = vector.load %arg22[%c0_104, %c0_105, %c0_106] : memref<2x16x128xf32, #tpu.memory_space<vmem>>, vector<2x16x128xf32>
    tpu.vector_store %arg22[%c0_104, %c0_105, %c0_106], %228 {strides = array<i32>} : memref<2x16x128xf32, #tpu.memory_space<vmem>>, vector<2x16x128xf32>,
    %c1_i32 = arith.constant 1 : i32
    %230 = arith.cmpi eq, %arg1, %c1_i32 : i32
    %231 = arith.extui %230 : i1 to i32
    %c0_i32_107 = arith.constant 0 : i32
    %232 = arith.cmpi ne, %231, %c0_i32_107 : i32
    scf.if %232 {
      %c0_108 = arith.constant 0 : index
      %c0_109 = arith.constant 0 : index
      %233 = vector.load %arg19[%c0_108, %c0_109] : memref<1x128xf32, #tpu.memory_space<vmem>>, vector<1x128xf32>
      %c0_110 = arith.constant 0 : index
      %c0_111 = arith.constant 0 : index
      %234 = vector.load %arg20[%c0_110, %c0_111] : memref<1x128xf32, #tpu.memory_space<vmem>>, vector<1x128xf32>
      %cst_112 = arith.constant dense<0.000000e+00> : vector<2x16xf32>
      %235 = vector.multi_reduction <add>, %228, %cst_112 [2] : vector<2x16x128xf32> to vector<2x16xf32>
      %236 = vector.shape_cast %235 : vector<2x16xf32> to vector<2x16x1xf32>
      %cst_113 = arith.constant 1.280000e+02 : f32
      %237 = vector.broadcast %cst_113 : f32 to vector<2x16x1xf32>
      %238 = arith.divf %236, %237 : vector<2x16x1xf32>
      %239 = vector.broadcast %238 : vector<2x16x1xf32> to vector<2x16x128xf32>
      %240 = arith.subf %228, %239 : vector<2x16x128xf32>
      %241 = arith.mulf %240, %240 : vector<2x16x128xf32>
      %cst_114 = arith.constant dense<0.000000e+00> : vector<2x16xf32>
      %242 = vector.multi_reduction <add>, %241, %cst_114 [2] : vector<2x16x128xf32> to vector<2x16xf32>
      %243 = vector.shape_cast %242 : vector<2x16xf32> to vector<2x16x1xf32>
      %cst_115 = arith.constant 1.280000e+02 : f32
      %244 = vector.broadcast %cst_115 : f32 to vector<2x16x1xf32>
      %245 = arith.divf %243, %244 : vector<2x16x1xf32>
      %cst_116 = arith.constant 9.99999974E-6 : f32
      %246 = vector.broadcast %cst_116 : f32 to vector<2x16x1xf32>
      %247 = arith.addf %245, %246 : vector<2x16x1xf32>
      %248 = math.rsqrt %247 : vector<2x16x1xf32>
      %249 = vector.broadcast %248 : vector<2x16x1xf32> to vector<2x16x128xf32>
      %250 = arith.mulf %240, %249 : vector<2x16x128xf32>
      %251 = vector.shape_cast %233 : vector<1x128xf32> to vector<1x1x128xf32>
      %252 = vector.broadcast %251 : vector<1x1x128xf32> to vector<2x16x128xf32>
      %253 = arith.mulf %250, %252 : vector<2x16x128xf32>
      %254 = vector.shape_cast %234 : vector<1x128xf32> to vector<1x1x128xf32>
      %255 = vector.broadcast %254 : vector<1x1x128xf32> to vector<2x16x128xf32>
      %256 = arith.addf %253, %255 : vector<2x16x128xf32>
      %c0_117 = arith.constant 0 : index
      %c0_118 = arith.constant 0 : index
      %c0_119 = arith.constant 0 : index
      %257 = vector.load %arg21[%c0_117, %c0_118, %c0_119] : memref<2x16x128xf32, #tpu.memory_space<vmem>>, vector<2x16x128xf32>
      tpu.vector_store %arg21[%c0_117, %c0_118, %c0_119], %256 {strides = array<i32>} : memref<2x16x128xf32, #tpu.memory_space<vmem>>, vector<2x16x128xf32>,
    } else {
    }
    return
  }
  func.func @transform_0(%arg0: i32, %arg1: i32) -> (i32, i32, i32) {
    %c0_i32 = arith.constant 0 : i32
    %c0_i32_0 = arith.constant 0 : i32
    %c0_i32_1 = arith.constant 0 : i32
    return %arg0, %c0_i32, %c0_i32_0 : i32, i32, i32
  }
  func.func @transform_1(%arg0: i32, %arg1: i32) -> (i32, i32, i32) {
    %c0_i32 = arith.constant 0 : i32
    %c0_i32_0 = arith.constant 0 : i32
    %c0_i32_1 = arith.constant 0 : i32
    return %arg1, %c0_i32, %c0_i32_0 : i32, i32, i32
  }
  func.func @transform_2(%arg0: i32, %arg1: i32) -> (i32, i32, i32) {
    %c0_i32 = arith.constant 0 : i32
    %c0_i32_0 = arith.constant 0 : i32
    %c0_i32_1 = arith.constant 0 : i32
    return %arg1, %c0_i32, %c0_i32_0 : i32, i32, i32
  }
  func.func @transform_3(%arg0: i32, %arg1: i32) -> (i32, i32, i32) {
    %c0_i32 = arith.constant 0 : i32
    %c0_i32_0 = arith.constant 0 : i32
    %c0_i32_1 = arith.constant 0 : i32
    return %arg1, %c0_i32, %c0_i32_0 : i32, i32, i32
  }
  func.func @transform_4(%arg0: i32, %arg1: i32) -> (i32, i32, i32) {
    %c0_i32 = arith.constant 0 : i32
    %c0_i32_0 = arith.constant 0 : i32
    %c0_i32_1 = arith.constant 0 : i32
    return %arg1, %c0_i32, %c0_i32_0 : i32, i32, i32
  }
  func.func @transform_5(%arg0: i32, %arg1: i32) -> (i32, i32, i32) {
    %c0_i32 = arith.constant 0 : i32
    %c0_i32_0 = arith.constant 0 : i32
    %c0_i32_1 = arith.constant 0 : i32
    return %arg1, %c0_i32, %c0_i32_0 : i32, i32, i32
  }
  func.func @transform_6(%arg0: i32, %arg1: i32) -> (i32, i32, i32) {
    %c0_i32 = arith.constant 0 : i32
    %c0_i32_0 = arith.constant 0 : i32
    %c0_i32_1 = arith.constant 0 : i32
    return %arg1, %c0_i32, %c0_i32_0 : i32, i32, i32
  }
  func.func @transform_7(%arg0: i32, %arg1: i32) -> (i32, i32, i32) {
    %c0_i32 = arith.constant 0 : i32
    %c0_i32_0 = arith.constant 0 : i32
    %c0_i32_1 = arith.constant 0 : i32
    return %arg1, %c0_i32, %c0_i32_0 : i32, i32, i32
  }
  func.func @transform_8(%arg0: i32, %arg1: i32) -> (i32, i32, i32) {
    %c0_i32 = arith.constant 0 : i32
    %c0_i32_0 = arith.constant 0 : i32
    %c0_i32_1 = arith.constant 0 : i32
    return %arg1, %c0_i32, %c0_i32_0 : i32, i32, i32
  }
  func.func @transform_9(%arg0: i32, %arg1: i32) -> (i32, i32, i32) {
    %c0_i32 = arith.constant 0 : i32
    %c0_i32_0 = arith.constant 0 : i32
    %c0_i32_1 = arith.constant 0 : i32
    return %arg1, %c0_i32, %c0_i32_0 : i32, i32, i32
  }
  func.func @transform_10(%arg0: i32, %arg1: i32) -> (i32, i32, i32) {
    %c0_i32 = arith.constant 0 : i32
    %c0_i32_0 = arith.constant 0 : i32
    %c0_i32_1 = arith.constant 0 : i32
    return %arg1, %c0_i32, %c0_i32_0 : i32, i32, i32
  }
  func.func @transform_11(%arg0: i32, %arg1: i32) -> (i32, i32, i32) {
    %c0_i32 = arith.constant 0 : i32
    %c0_i32_0 = arith.constant 0 : i32
    %c0_i32_1 = arith.constant 0 : i32
    return %arg1, %c0_i32, %c0_i32_0 : i32, i32, i32
  }
  func.func @transform_12(%arg0: i32, %arg1: i32) -> (i32, i32, i32) {
    %c0_i32 = arith.constant 0 : i32
    %c0_i32_0 = arith.constant 0 : i32
    %c0_i32_1 = arith.constant 0 : i32
    return %arg1, %c0_i32, %c0_i32_0 : i32, i32, i32
  }
  func.func @transform_13(%arg0: i32, %arg1: i32) -> (i32, i32, i32) {
    %c0_i32 = arith.constant 0 : i32
    %c0_i32_0 = arith.constant 0 : i32
    %c0_i32_1 = arith.constant 0 : i32
    return %arg1, %c0_i32, %c0_i32_0 : i32, i32, i32
  }
  func.func @transform_14(%arg0: i32, %arg1: i32) -> (i32, i32, i32) {
    %c0_i32 = arith.constant 0 : i32
    %c0_i32_0 = arith.constant 0 : i32
    %c0_i32_1 = arith.constant 0 : i32
    return %arg1, %c0_i32, %c0_i32_0 : i32, i32, i32
  }
  func.func @transform_15(%arg0: i32, %arg1: i32) -> (i32, i32, i32) {
    %c0_i32 = arith.constant 0 : i32
    %c0_i32_0 = arith.constant 0 : i32
    %c0_i32_1 = arith.constant 0 : i32
    return %arg1, %c0_i32, %c0_i32_0 : i32, i32, i32
  }
  func.func @transform_16(%arg0: i32, %arg1: i32) -> (i32, i32, i32) {
    %c0_i32 = arith.constant 0 : i32
    %c0_i32_0 = arith.constant 0 : i32
    %c0_i32_1 = arith.constant 0 : i32
    return %arg1, %c0_i32, %c0_i32_0 : i32, i32, i32
  }
  func.func @transform_17(%arg0: i32, %arg1: i32) -> (i32, i32) {
    %c0_i32 = arith.constant 0 : i32
    %c0_i32_0 = arith.constant 0 : i32
    %c0_i32_1 = arith.constant 0 : i32
    return %c0_i32, %c0_i32_0 : i32, i32
  }
  func.func @transform_18(%arg0: i32, %arg1: i32) -> (i32, i32) {
    %c0_i32 = arith.constant 0 : i32
    %c0_i32_0 = arith.constant 0 : i32
    %c0_i32_1 = arith.constant 0 : i32
    return %c0_i32, %c0_i32_0 : i32, i32
  }
  func.func @transform_19(%arg0: i32, %arg1: i32) -> (i32, i32, i32) {
    %c0_i32 = arith.constant 0 : i32
    %c0_i32_0 = arith.constant 0 : i32
    %c0_i32_1 = arith.constant 0 : i32
    return %arg0, %c0_i32, %c0_i32_0 : i32, i32, i32
  }
}

</mosaic_0001>

<bundles_post_ra>
// kernel: tpu_custom_call.1
= control target key start
LH: loop header
LB: loop body
LE: loop exit
PB: predicated region body
PF: predicated region fallthrough
CT: control target
= control target key end

     0   :  { %s6166_s0 = inlined_call_operand.hbm [shape: f32[2,16,128], index: 0, kind: input, shape index: {}]   ;;  %s6167_s1 = inlined_call_operand.vmem [shape: f32[2,1,128], index: 1, kind: input, shape index: {}]   ;;  %s6168_s2 = inlined_call_operand.vmem [shape: f32[2,1,128], index: 2, kind: input, shape index: {}]   ;;  %s6169_s3 = inlined_call_operand.hbm [shape: bf16[2,128,128], index: 3, kind: input, shape index: {}]   ;;  %s6170_s4 = inlined_call_operand.vmem [shape: f32[2,1,128], index: 4, kind: input, shape index: {}]   ;;  %s6171_s5 = inlined_call_operand.hbm [shape: bf16[2,128,128], index: 5, kind: input, shape index: {}]   ;;  %s6172_s6 = inlined_call_operand.vmem [shape: f32[2,1,128], index: 6, kind: input, shape index: {}]   ;;  %s6173_s7 = inlined_call_operand.hbm [shape: bf16[2,128,128], index: 7, kind: input, shape index: {}]   ;;  %s6174_s8 = inlined_call_operand.vmem [shape: f32[2,1,128], index: 8, kind: input, shape index: {}]   ;;  %s6175_s9 = inlined_call_operand.hbm [shape: bf16[2,128,128], index: 9, kind: input, shape index: {}]   ;;  %s6176_s10 = inlined_call_operand.vmem [shape: f32[2,1,128], index: 10, kind: input, shape index: {}]   ;;  %s6177_s11 = inlined_call_operand.vmem [shape: f32[2,1,128], index: 11, kind: input, shape index: {}]   ;;  %s6178_s12 = inlined_call_operand.vmem [shape: f32[2,1,128], index: 12, kind: input, shape index: {}]   ;;  %s6179_s13 = inlined_call_operand.hbm [shape: bf16[2,128,512], index: 13, kind: input, shape index: {}]   ;;  %s6180_s14 = inlined_call_operand.vmem [shape: f32[2,1,512], index: 14, kind: input, shape index: {}]   ;;  %s6181_s15 = inlined_call_operand.hbm [shape: bf16[2,512,128], index: 15, kind: input, shape index: {}]   ;;  %s6182_s16 = inlined_call_operand.vmem [shape: f32[2,1,128], index: 16, kind: input, shape index: {}]   ;;  %s6183_s17 = inlined_call_operand.vmem [shape: f32[1,128], index: 17, kind: input, shape index: {}]   ;;  %s6184_s18 = inlined_call_operand.vmem [shape: f32[1,128], index: 18, kind: input, shape index: {}]   ;;  %s6185_s19 = inlined_call_operand.hbm [shape: f32[2,16,128], index: 19, kind: output, shape index: {}]  }
   0x1   :  { %6212 = sst [smem:[#allocation29_spill]] %s6166_s0 }
   0x2   :  { %6213 = sst [smem:[#allocation30_spill]] %s6167_s1 }
   0x3   :  { %6214 = sst [smem:[#allocation31_spill]] %s6168_s2 }
   0x4   :  { %6215 = sst [smem:[#allocation32_spill]] %s6169_s3 }
   0x5   :  { %6216 = sst [smem:[#allocation33_spill]] %s6171_s5 }
   0x6   :  { %6217 = sst [smem:[#allocation34_spill]] %s6172_s6 }
   0x7   :  { %6218 = sst [smem:[#allocation35_spill]] %s6173_s7 }
   0x8   :  { %6219 = sst [smem:[#allocation36_spill]] %s6174_s8 }
   0x9   :  { %6220 = sst [smem:[#allocation37_spill]] %s6175_s9 }
   0xa   :  { %6221 = sst [smem:[#allocation38_spill]] %s6176_s10 }
   0xb   :  { %6222 = sst [smem:[#allocation39_spill]] %s6177_s11 }
   0xc   :  { %6223 = sst [smem:[#allocation40_spill]] %s6178_s12 }
   0xd   :  { %6224 = sst [smem:[#allocation41_spill]] %s6179_s13 }
   0xe   :  { %6225 = sst [smem:[#allocation42_spill]] %s6180_s14 }
   0xf   :  { %6226 = sst [smem:[#allocation43_spill]] %s6181_s15 }
  0x10   :  { %6227 = sst [smem:[#allocation44_spill]] %s6182_s16 }
  0x11   :  { %6228 = sst [smem:[#allocation45_spill]] %s6183_s17 }
  0x12   :  { %6229 = sst [smem:[#allocation46_spill]] %s6184_s18 }
  0x13   :  { %6230 = sst [smem:[#allocation47_spill]] %s6185_s19 }
  0x14   :  { %24 = vsyncpa [#allocation5], 0 }
  0x15   :  { %25 = vsyncpa [#allocation8], 0 }
  0x16   :  { %27 = vsyncpa [#allocation8 + $0x1], 0 }
  0x17   :  { %28 = vsyncpa [#allocation11], 0 }
  0x18   :  { %30 = vsyncpa [#allocation11 + $0x1], 0 }
  0x19   :  { %31 = vsyncpa [#allocation14], 0 }
  0x1a   :  { %33 = vsyncpa [#allocation14 + $0x1], 0 }
  0x1b   :  { %34 = vsyncpa [#allocation6], 0  ;;  %s5184_s0 = smov 0   ;;  %s5186_s30 = smov 0  }
  0x1c   :  { %s5188_s20 = smov 0   ;;  %s5190_s21 = smov 0  }
  0x1d   :  { %s5192_s1 = smov 0   ;;  %s5194_s22 = smov 0  }
  0x1e LB: > { %6231 = sst [smem:[#allocation22_spill]] %s5044_s30  ;;  %s49_s2 = sadd.s32 1, %s5056_s1  ;;  %s5060_s22 = sphi %s5194_s22, %s40_s22   ;;  %s5056_s1 = sphi %s5192_s1, %s6297_s1   ;;  %s5052_s21 = sphi %s5190_s21, %s6296_s21   ;;  %s5048_s20 = sphi %s5188_s20, %s6295_s20   ;;  %s5044_s30 = sphi %s5186_s30, %s6294_s30   ;;  %s5040_s0 = sphi %s5184_s0, %s6293_s0  }
  0x1f   : > { %6232 = sst [smem:[#allocation23_spill]] %s5048_s20  ;;  %s137_s23 = sadd.s32 1, %s5048_s20 }
  0x20   : > { %6233 = sst [smem:[#allocation24_spill]] %s5056_s1  ;;  %p50_p0 = scmp.ge.s32.totalorder %s49_s2, 2 }
  0x21   : > { %6234 = sst [smem:[#allocation25_spill]] %s5060_s22  ;;  %p144_p1 = scmp.ne.s32.totalorder %s5048_s20, %s5044_s30 }
  0x22   : > { %p145_p2 = scmp.eq.s32.totalorder %s5060_s22, 0  ;;  %s6299_s2 = smov (%p50_p0, %s49_s2), 0 }
  0x23   : > { %6235 = sst [smem:[#allocation26_spill]] %s6299_s2  ;;  %p4424_p4 = scmp.lt.s32.totalorder %s5060_s22, 2 }
  0x24   : > { %p146_p3 = por %p145_p2, %p144_p1  ;;  %s134_s24 = ssub.s32 %s5056_s1, %s6299_s2 }
  0x25   : > { %s5225_s25 = sand.u32 1, %s5060_s22   ;;  %p135_p5 = scmp.eq.s32.totalorder %s134_s24, 0 }
  0x26   : > { %s6190_s3 = sand.u32 1, %s5048_s20   ;;  %s5229_s26 = sshll.u32 %s5056_s1, 10 }
  0x27   : > { %s5232_s27 = scalar_select %p135_p5, %s5048_s20, %s137_s23  }
  0x28   : > { %s5236_s28 = sshll.u32 %s6190_s3, 6  ;;  %s6237_s18 = sld [smem:[#allocation32_spill]] }
  0x29   : > { %6236 = sst [smem:[#allocation27_spill]] %s5232_s27  ;;  %p5244_p6 = pnand %p4424_p4, %p146_p3 }
  0x2a   : > { %s619_s23 = scalar_lea.vmem [#allocation7], %s5236_s28 }
  0x2b   : > { %s6238_s24 = scalar_select %p5244_p6, 1, 0 }
  0x2c   : > { %s626_s2 = sshll.u32 %s619_s23, 4  ;;  %p5256_p8 = pneg %p5244_p6  ;;  %s5249_s2 = int_to_ptr.vmem [resolvable:$true] %s626_s2 }
  0x2e   : > { %s5242_s17 = scalar_lea.hbm %s6237_s18, %s5229_s26  ;;  %s4765_s16 = scalar_lea.hbm %s6237_s18, 2048 }
  0x2f   : > { %s4760_s27 = scalar_lea.hbm %s5242_s17, 1024  ;;  %p4766_p11 = scmp.lt.u32.totalorder %s5242_s17, %s6237_s18 }
  0x30   : > { %p4761_p7 = scmp.ne.s32.totalorder %s5242_s17, %s4760_s27  ;;  %p4767_p12 = scmp.lt.u32.totalorder %s4765_s16, %s4760_s27 }
  0x31   : > { %s6239_s19 = scalar_select %p5256_p8, 1, 0 }
  0x32   : > { %p4763_p9 = pnand %p5256_p8, %p4761_p7  ;;  %p4768_p13 = por %p4767_p12, %p4766_p11 }
  0x33   : > { %p4769_p0 = scmp.lt.u32.totalorder %s4760_s27, %s5242_s17 }
  0x34   : > { %p4764_p10 = pneg %p4763_p9 }
  0x35   : > { %p4770_p1 = por %p4769_p0, %p4768_p13 }
  0x37   : > { %p4771_p2 = pnand %p4770_p1, %p4764_p10 }
  0x39   : > { %4774 = shalt.err (!%p4771_p2)
}
  0x3a   : > { %s4775_s3 = scalar_lea.vmem %s5249_s2, 1024  ;;  %s5062_s14 = smov [#allocation7]  }
  0x3b   : > { %p4776_p3 = scmp.ne.s32.totalorder %s5249_s2, %s4775_s3  ;;  %s4780_s29 = sshll.u32 %s5062_s14, 4  ;;  %s4781_s29 = int_to_ptr.vmem [resolvable:$false] %s4780_s29 }
  0x3c   : > { %s4782_s12 = scalar_lea.vmem %s4781_s29, 2048  ;;  %p4783_p7 = scmp.lt.s32.totalorder %s5249_s2, %s4781_s29 }
  0x3d   : > { %p4778_p4 = pnand %p4776_p3, %p5256_p8  ;;  %p4784_p9 = scmp.lt.s32.totalorder %s4782_s12, %s4775_s3 }
  0x3f   : > { %p4779_p5 = pneg %p4778_p4  ;;  %p4785_p11 = por %p4784_p9, %p4783_p7 }
  0x41   : > { %p4786_p12 = pnand %p4785_p11, %p4779_p5 }
  0x43   : > { %4789 = shalt.err (!%p4786_p12)
}
  0x44   : > { %s6193_s16 = smov 64   ;;  %s6196_s27 = smov 4  }
  0x45   : > { %s6240_s23 = scalar_lea.sflag [#allocation8], %s5225_s25  ;;  %s6241_s7 = sld [smem:[#allocation35_spill]] }
  0x46   : > { %4407 = dma.hbm_to_vmem [thread:$0]  (!%p5244_p6), %s5242_s17, 1024, %s5249_s2, %s6240_s23, %s6193_s16, %s6193_s16, %s6196_s27  }
  0x47   : > { %s673_s12 = scalar_lea.vmem [#allocation10], %s5236_s28  ;;  %s6242_s11 = sand.u32 1, %s5048_s20  }
  0x48   : > { %s680_s18 = sshll.u32 %s673_s12, 4  ;;  %s5295_s10 = sshll.u32 %s6242_s11, 8  ;;  %s5291_s18 = int_to_ptr.vmem [resolvable:$true] %s680_s18 }
  0x49   : > { %s6192_s8 = scalar_lea.sflag [#allocation11], %s5225_s25 }
  0x4b   : > { %s5288_s29 = scalar_lea.hbm %s6241_s7, %s5229_s26  ;;  %s4795_s23 = scalar_lea.hbm %s6241_s7, 2048 }
  0x4c   : > { %s4790_s6 = scalar_lea.hbm %s5288_s29, 1024  ;;  %p4796_p1 = scmp.lt.u32.totalorder %s5288_s29, %s6241_s7 }
  0x4d   : > { %p4791_p10 = scmp.ne.s32.totalorder %s5288_s29, %s4790_s6  ;;  %p4797_p2 = scmp.lt.u32.totalorder %s4795_s23, %s4790_s6 }
  0x4e   : > { %p4799_p4 = scmp.lt.u32.totalorder %s4790_s6, %s5288_s29 }
  0x4f   : > { %p4793_p13 = pnand %p4791_p10, %p5256_p8  ;;  %p4798_p3 = por %p4797_p2, %p4796_p1 }
  0x51   : > { %p4794_p0 = pneg %p4793_p13  ;;  %p4800_p5 = por %p4799_p4, %p4798_p3 }
  0x53   : > { %p4801_p7 = pnand %p4800_p5, %p4794_p0 }
  0x55   : > { %4804 = shalt.err (!%p4801_p7)
}
  0x56   : > { %s4805_s11 = scalar_lea.vmem %s5291_s18, 1024  ;;  %s5065_s12 = smov [#allocation10]  }
  0x57   : > { %p4806_p9 = scmp.ne.s32.totalorder %s5291_s18, %s4805_s11  ;;  %s4810_s17 = sshll.u32 %s5065_s12, 4  ;;  %s4811_s17 = int_to_ptr.vmem [resolvable:$false] %s4810_s17 }
  0x58   : > { %s4812_s2 = scalar_lea.vmem %s4811_s17, 2048  ;;  %p4813_p10 = scmp.lt.s32.totalorder %s5291_s18, %s4811_s17 }
  0x59   : > { %p4808_p11 = pnand %p4806_p9, %p5256_p8  ;;  %p4814_p13 = scmp.lt.s32.totalorder %s4812_s2, %s4805_s11 }
  0x5b   : > { %p4809_p12 = pneg %p4808_p11  ;;  %p4815_p1 = por %p4814_p13, %p4813_p10 }
  0x5d   : > { %p4816_p2 = pnand %p4815_p1, %p4809_p12 }
  0x5f   : > { %4819 = shalt.err (!%p4816_p2)
}
  0x60   : > { %4413 = dma.hbm_to_vmem [thread:$0]  (!%p5244_p6), %s5288_s29, 1024, %s5291_s18, %s6192_s8, %s6193_s16, %s6193_s16, %s6196_s27  }
  0x61   : > { %s4074_s6 = sshll.u32 %s5056_s1, 12  ;;  %s6243_s13 = sld [smem:[#allocation41_spill]] }
  0x62   : > { %s739_s11 = scalar_lea.vmem [#allocation13], %s5295_s10  ;;  %s6195_s17 = scalar_lea.sflag [#allocation14], %s5225_s25 }
  0x63   : > { %s746_s12 = sshll.u32 %s739_s11, 4  ;;  %s5333_s12 = int_to_ptr.vmem [resolvable:$true] %s746_s12 }
  0x67   : > { %s5330_s14 = scalar_lea.hbm %s6243_s13, %s4074_s6  ;;  %s4825_s23 = scalar_lea.hbm %s6243_s13, 8192 }
  0x68   : > { %s4820_s2 = scalar_lea.hbm %s5330_s14, 4096  ;;  %p4826_p5 = scmp.lt.u32.totalorder %s5330_s14, %s6243_s13 }
  0x69   : > { %p4821_p0 = scmp.ne.s32.totalorder %s5330_s14, %s4820_s2  ;;  %p4827_p7 = scmp.lt.u32.totalorder %s4825_s23, %s4820_s2 }
  0x6a   : > { %p4829_p11 = scmp.lt.u32.totalorder %s4820_s2, %s5330_s14 }
  0x6b   : > { %p4823_p3 = pnand %p4821_p0, %p5256_p8  ;;  %p4828_p9 = por %p4827_p7, %p4826_p5 }
  0x6d   : > { %p4824_p4 = pneg %p4823_p3  ;;  %p4830_p12 = por %p4829_p11, %p4828_p9 }
  0x6f   : > { %p4831_p10 = pnand %p4830_p12, %p4824_p4 }
  0x71   : > { %4834 = shalt.err (!%p4831_p10)
}
  0x72   : > { %s4835_s11 = scalar_lea.vmem %s5333_s12, 4096  ;;  %s5066_s18 = smov [#allocation13]  }
  0x73   : > { %p4836_p13 = scmp.ne.s32.totalorder %s5333_s12, %s4835_s11  ;;  %s4840_s29 = sshll.u32 %s5066_s18, 4  ;;  %s4841_s29 = int_to_ptr.vmem [resolvable:$false] %s4840_s29 }
  0x74   : > { %s4842_s8 = scalar_lea.vmem %s4841_s29, 8192  ;;  %p4843_p0 = scmp.lt.s32.totalorder %s5333_s12, %s4841_s29 }
  0x75   : > { %p4838_p1 = pnand %p4836_p13, %p5256_p8  ;;  %p4844_p3 = scmp.lt.s32.totalorder %s4842_s8, %s4835_s11 }
  0x77   : > { %p4839_p2 = pneg %p4838_p1  ;;  %p4845_p5 = por %p4844_p3, %p4843_p0 }
  0x79   : > { %p4846_p7 = pnand %p4845_p5, %p4839_p2 }
  0x7b   : > { %4849 = shalt.err (!%p4846_p7)
}
  0x7c   : > { %s5067_s2 = smov 256   ;;  %s5068_s23 = smov 16  }
  0x7d   : > { %4419 = dma.hbm_to_vmem [thread:$0]  (!%p5244_p6), %s5330_s14, 4096, %s5333_s12, %s6195_s17, %s5067_s2, %s5067_s2, %s5068_s23  }
  0x7e   : > { %s6244_s15 = sld [smem:[#allocation43_spill]]  ;;  %s767_s29 = scalar_lea.vmem [#allocation15], %s5295_s10 }
  0x7f   : > { %s774_s8 = sshll.u32 %s767_s29, 4  ;;  %s5370_s16 = sadd.s32 4294967295, %s5060_s22   ;;  %s5367_s8 = int_to_ptr.vmem [resolvable:$true] %s774_s8 }
  0x80   : > { %6245 = sst [smem:[#allocation28_spill]] %s5370_s16  ;;  %p150_p4 = scmp.ne.s32.totalorder %s5044_s30, %s5040_s0 }
  0x81   : > { %p6199_p9 = scmp.eq.s32.totalorder %s5370_s16, 0  ;;  %p3895_p11 = scmp.ge.s32.totalorder %s5060_s22, 1 }
  0x82   : > { %p567_p12 = scmp.lt.s32.totalorder %s5060_s22, 3  ;;  %s6249_s5 = sld [smem:[#allocation33_spill]] }
  0x83   : > { %p5379_p10 = por %p6199_p9, %p150_p4  ;;  %s646_s11 = scalar_lea.vmem [#allocation9], %s5236_s28 }
  0x84   : > { %s5364_s18 = scalar_lea.hbm %s6244_s15, %s4074_s6  ;;  %p5383_p13 = pnand %p3895_p11, %p567_p12 }
  0x85   : > { %s6246_s14 = scalar_select %p5379_p10, 1, 0 }
  0x86   : > { %s6247_s10 = scalar_select %p5383_p13, 1, 0 }
  0x87   : > { %s5069_s6 = smov [#allocation4]   ;;  %p4400_p1 = pneg %p5383_p13 }
  0x88   : > { %s583_s12 = sshll.u32 %s5069_s6, 4  ;;  %s5399_s3 = scalar_lea.hbm %s6249_s5, %s5229_s26  ;;  %s584_s12 = int_to_ptr.vmem [resolvable:$true] %s583_s12 }
  0x89   : > { %p5391_p2 = pnand %p4400_p1, %p6199_p9  ;;  %s653_s29 = sshll.u32 %s646_s11, 4  ;;  %s5402_s29 = int_to_ptr.vmem [resolvable:$true] %s653_s29 }
  0x8a   : > { %s6250_s27 = sld [smem:[#allocation29_spill]] }
  0x8b   : > { %p4852_p3 = pneg %p5391_p2 }
  0x90   : > { %s4850_s7 = scalar_lea.hbm %s6250_s27, 512 }
  0x91   : > { %p4851_p0 = scmp.ne.s32.totalorder %s6250_s27, %s4850_s7  ;;  %p4857_p4 = scmp.lt.u32.totalorder %s4850_s7, %s6250_s27 }
  0x93   : > { %p4853_p5 = pnand %p4852_p3, %p4851_p0 }
  0x95   : > { %p4854_p7 = pneg %p4853_p5 }
  0x97   : > { %p4859_p11 = pnand %p4857_p4, %p4854_p7 }
  0x99   : > { %4862 = shalt.err (!%p4859_p11)
}
  0x9a   : > { %s4863_s11 = scalar_lea.vmem %s584_s12, 512  ;;  %p4871_p10 = scmp.lt.s32.totalorder %s584_s12, %s584_s12 }
  0x9b   : > { %p4864_p12 = scmp.ne.s32.totalorder %s584_s12, %s4863_s11  ;;  %p4872_p13 = scmp.lt.s32.totalorder %s4863_s11, %s4863_s11 }
  0x9d   : > { %p4866_p1 = pnand %p4864_p12, %p4852_p3  ;;  %p4873_p6 = por %p4872_p13, %p4871_p10 }
  0x9f   : > { %p4867_p9 = pneg %p4866_p1 }
  0xa1   : > { %p4874_p8 = pnand %p4873_p6, %p4867_p9 }
  0xa3   : > { %4877 = shalt.err (!%p4874_p8)
}
  0xa4   : > { %s5070_s13 = smov 128   ;;  %s5071_s1 = smov 8  }
  0xa5   : > { %4403 = dma.hbm_to_vmem [thread:$0]  (!%p5391_p2), %s6250_s27, 512, %s584_s12, [#allocation5], %s5070_s13, %s5070_s13, %s5071_s1  }
  0xa6   : > { %s4878_s6 = scalar_lea.hbm %s5399_s3, 1024  ;;  %p6251_p3 = scmp.ne.s32.totalorder %s6239_s19, 0 }
  0xa7   : > { %p4879_p0 = scmp.ne.s32.totalorder %s5399_s3, %s4878_s6  ;;  %s4883_s11 = scalar_lea.hbm %s6249_s5, 2048 }
  0xa8   : > { %p4884_p6 = scmp.lt.u32.totalorder %s5399_s3, %s6249_s5  ;;  %p4885_p8 = scmp.lt.u32.totalorder %s4883_s11, %s4878_s6 }
  0xa9   : > { %p4881_p5 = pnand %p4879_p0, %p6251_p3  ;;  %p4887_p13 = scmp.lt.u32.totalorder %s4878_s6, %s5399_s3 }
  0xaa   : > { %p4886_p9 = por %p4885_p8, %p4884_p6 }
  0xab   : > { %p4882_p10 = pneg %p4881_p5 }
  0xac   : > { %p4888_p7 = por %p4887_p13, %p4886_p9 }
  0xae   : > { %p4889_p4 = pnand %p4888_p7, %p4882_p10 }
  0xb0   : > { %4892 = shalt.err (!%p4889_p4)
}
  0xb1   : > { %s4893_s12 = scalar_lea.vmem %s5402_s29, 1024  ;;  %s5072_s0 = smov [#allocation9]  }
  0xb2   : > { %p4894_p2 = scmp.ne.s32.totalorder %s5402_s29, %s4893_s12  ;;  %s4898_s13 = sshll.u32 %s5072_s0, 4  ;;  %s4899_s13 = int_to_ptr.vmem [resolvable:$false] %s4898_s13 }
  0xb3   : > { %s4900_s20 = scalar_lea.vmem %s4899_s13, 2048  ;;  %p4901_p1 = scmp.lt.s32.totalorder %s5402_s29, %s4899_s13 }
  0xb4   : > { %p4896_p11 = pnand %p4894_p2, %p6251_p3  ;;  %p4902_p0 = scmp.lt.s32.totalorder %s4900_s20, %s4893_s12 }
  0xb6   : > { %p4897_p12 = pneg %p4896_p11  ;;  %p4903_p5 = por %p4902_p0, %p4901_p1 }
  0xb8   : > { %p4904_p6 = pnand %p4903_p5, %p4897_p12 }
  0xba   : > { %4907 = shalt.err (!%p4904_p6)
}
  0xbb   : > { %p6252_p10 = scmp.ne.s32.totalorder %s6238_s24, 0  ;;  %s6253_s22 = smov 4  }
  0xbc   : > { %s6254_s1 = smov 64   ;;  %s6255_s7 = scalar_lea.sflag [#allocation8], %s5225_s25 }
  0xbd   : > { %4410 = dma.hbm_to_vmem [thread:$0]  (!%p6252_p10), %s5399_s3, 1024, %s5402_s29, %s6255_s7, %s6254_s1, %s6254_s1, %s6253_s22  }
  0xbe   : > { %s6256_s9 = sld [smem:[#allocation37_spill]]  ;;  %s700_s23 = scalar_lea.vmem [#allocation12], %s5236_s28 }
  0xbf   : > { %s707_s11 = sshll.u32 %s700_s23, 4  ;;  %s5453_s11 = int_to_ptr.vmem [resolvable:$true] %s707_s11 }
  0xc4   : > { %s5450_s2 = scalar_lea.hbm %s6256_s9, %s5229_s26  ;;  %s4913_s29 = scalar_lea.hbm %s6256_s9, 2048 }
  0xc5   : > { %s4908_s12 = scalar_lea.hbm %s5450_s2, 1024  ;;  %p4914_p7 = scmp.lt.u32.totalorder %s5450_s2, %s6256_s9 }
  0xc6   : > { %p4909_p8 = scmp.ne.s32.totalorder %s5450_s2, %s4908_s12  ;;  %p4915_p4 = scmp.lt.u32.totalorder %s4913_s29, %s4908_s12 }
  0xc7   : > { %p4917_p11 = scmp.lt.u32.totalorder %s4908_s12, %s5450_s2 }
  0xc8   : > { %p4911_p9 = pnand %p4909_p8, %p6251_p3  ;;  %p4916_p2 = por %p4915_p4, %p4914_p7 }
  0xca   : > { %p4912_p13 = pneg %p4911_p9  ;;  %p4918_p12 = por %p4917_p11, %p4916_p2 }
  0xcc   : > { %p4919_p1 = pnand %p4918_p12, %p4912_p13 }
  0xce   : > { %4922 = shalt.err (!%p4919_p1)
}
  0xcf   : > { %s4923_s28 = scalar_lea.vmem %s5453_s11, 1024  ;;  %s5073_s20 = smov [#allocation12]  }
  0xd0   : > { %p4924_p0 = scmp.ne.s32.totalorder %s5453_s11, %s4923_s28  ;;  %s4928_s7 = sshll.u32 %s5073_s20, 4  ;;  %s4929_s7 = int_to_ptr.vmem [resolvable:$false] %s4928_s7 }
  0xd1   : > { %s4930_s17 = scalar_lea.vmem %s4929_s7, 2048  ;;  %p4931_p8 = scmp.lt.s32.totalorder %s5453_s11, %s4929_s7 }
  0xd2   : > { %p4926_p5 = pnand %p4924_p0, %p6251_p3  ;;  %p4932_p9 = scmp.lt.s32.totalorder %s4930_s17, %s4923_s28 }
  0xd4   : > { %p4927_p6 = pneg %p4926_p5  ;;  %p4933_p7 = por %p4932_p9, %p4931_p8 }
  0xd6   : > { %p4934_p4 = pnand %p4933_p7, %p4927_p6 }
  0xd8   : > { %4937 = shalt.err (!%p4934_p4)
}
  0xd9   : > { %s6257_s6 = scalar_lea.sflag [#allocation11], %s5225_s25  ;;  %s4938_s23 = scalar_lea.hbm %s5364_s18, 4096 }
  0xda   : > { %4416 = dma.hbm_to_vmem [thread:$0]  (!%p6252_p10), %s5450_s2, 1024, %s5453_s11, %s6257_s6, %s6254_s1, %s6254_s1, %s6253_s22  }
  0xdb   : > { %p4939_p13 = scmp.ne.s32.totalorder %s5364_s18, %s4938_s23  ;;  %s4943_s3 = scalar_lea.hbm %s6244_s15, 8192 }
  0xdc   : > { %p4944_p12 = scmp.lt.u32.totalorder %s5364_s18, %s6244_s15  ;;  %p4945_p1 = scmp.lt.u32.totalorder %s4943_s3, %s4938_s23 }
  0xdd   : > { %p4941_p2 = pnand %p4939_p13, %p6251_p3  ;;  %p4947_p5 = scmp.lt.u32.totalorder %s4938_s23, %s5364_s18 }
  0xde   : > { %p4946_p0 = por %p4945_p1, %p4944_p12 }
  0xdf   : > { %p4942_p11 = pneg %p4941_p2 }
  0xe0   : > { %p4948_p6 = por %p4947_p5, %p4946_p0 }
  0xe2   : > { %p4949_p8 = pnand %p4948_p6, %p4942_p11 }
  0xe4   : > { %4952 = shalt.err (!%p4949_p8)
}
  0xe5   : > { %s4953_s2 = scalar_lea.vmem %s5367_s8, 4096  ;;  %s5074_s11 = smov [#allocation15]  }
  0xe6   : > { %p4954_p9 = scmp.ne.s32.totalorder %s5367_s8, %s4953_s2  ;;  %s4958_s26 = sshll.u32 %s5074_s11, 4  ;;  %s4959_s26 = int_to_ptr.vmem [resolvable:$false] %s4958_s26 }
  0xe7   : > { %s4960_s28 = scalar_lea.vmem %s4959_s26, 8192  ;;  %p4961_p13 = scmp.lt.s32.totalorder %s5367_s8, %s4959_s26 }
  0xe8   : > { %p4956_p7 = pnand %p4954_p9, %p6251_p3  ;;  %p4962_p2 = scmp.lt.s32.totalorder %s4960_s28, %s4953_s2 }
  0xea   : > { %p4957_p4 = pneg %p4956_p7  ;;  %p4963_p12 = por %p4962_p2, %p4961_p13 }
  0xec   : > { %p4964_p1 = pnand %p4963_p12, %p4957_p4 }
  0xee   : > { %4967 = shalt.err (!%p4964_p1)
}
  0xef   : > { %s6258_s20 = scalar_lea.sflag [#allocation14], %s5225_s25  ;;  %p6259_p3 = scmp.ne.s32.totalorder %s6247_s10, 0 }
  0xf0   : > { %4422 = dma.hbm_to_vmem [thread:$0]  (!%p6252_p10), %s5364_s18, 4096, %s5367_s8, %s6258_s20, %s6254_s1, %s6254_s1, %s6253_s22  }
  0xf1   : > { %792 = sbr.rel (%p6259_p3) target bundleno = 4766 (0x129e), region = 96  ;;  %p6260_p11 = scmp.eq.s32.totalorder (!%p6259_p3), %s5370_s16, 0 }
  0xf8   : > { %5019 = dma.done.wait (%p6260_p11), [#allocation5], 512   ;;  %p6261_p0 = pmov %p6260_p11 }
  0xf9   : > { %s798_s24 = sand.u32 1, %s5370_s16   ;;  %s800_s19 = sand.u32 1, %s5044_s30  }
  0xfa   : > { %5021 = vsyncadd (%p6261_p0), [#allocation5], 4294966784  ;;  %s3918_s7 = sshll.u32 %s800_s19, 6  ;;  %s799_s17 = scalar_lea.sflag [#allocation8], %s798_s24 }
  0xfb   : > { %s5515_s25 = scalar_lea.vmem [#allocation7], %s3918_s7  ;;  %p6262_p5 = scmp.ne.s32.totalorder %s6246_s14, 0 }
  0xfd   : > { %5023 = dma.done.wait (%p6262_p5), %s799_s17, 2048  }
  0xfe   : > { %5025 = vsyncadd (%p6262_p5), %s799_s17, 4294965248  ;;  %s5521_s18 = scalar_lea.vmem [#allocation9], %s3918_s7  ;;  %s817_s8 = scalar_lea.sflag [#allocation11], %s798_s24 }
  0xff   : > { %s5523_s10 = scalar_lea.vmem [#allocation10], %s3918_s7 }
 0x100   : > { %5027 = dma.done.wait (%p6262_p5), %s817_s8, 2048  }
 0x101   : > { %5029 = vsyncadd (%p6262_p5), %s817_s8, 4294965248  ;;  %s3922_s22 = sshll.u32 %s800_s19, 8  ;;  %s5529_s1 = scalar_lea.vmem [#allocation12], %s3918_s7 }
 0x102   : > { %s835_s6 = scalar_lea.sflag [#allocation14], %s798_s24  ;;  %s5531_s23 = scalar_lea.vmem [#allocation13], %s3922_s22 }
 0x103   : > { %5031 = dma.done.wait (%p6262_p5), %s835_s6, 8192  }
 0x104   : > { %5033 = vsyncadd (%p6262_p5), %s835_s6, 4294959104  ;;  %p954_p10 = scmp.lt.s32.totalorder %s5052_s21, 1  ;;  %s6266_s3 = sld [smem:[#allocation36_spill]] }
 0x105   : > { %s6267_s27 = sld [smem:[#allocation38_spill]]  ;;  %s6268_s13 = sld [smem:[#allocation39_spill]] }
 0x106   : > { %s5539_s12 = scalar_select %p954_p10, %s5052_s21, 1 }
 0x107   : > { %s6269_s28 = sld [smem:[#allocation40_spill]]  ;;  %s6270_s7 = sld [smem:[#allocation44_spill]] }
 0x108   : > { %s3924_s24 = sshll.u32 %s5539_s12, 2  ;;  %s6271_s0 = sld [smem:[#allocation42_spill]] }
 0x109   : > { %s5583_s9 = scalar_lea.vmem [#allocation15], %s3922_s22  ;;  %p3925_p6 = scmp.ne.s32.totalorder %s5052_s21, 0 }
 0x10a   : > { %s968_s5 = scalar_lea.vmem %s6266_s3, %s5539_s12  ;;  %v991_v0 = vld [vmem:[#allocation4] sm:$0xff] (!%p3925_p6)  ;;  %v992_v1 = vld [vmem:[#allocation4 + $0x8] sm:$0xff] (!%p3925_p6)  ;;  %v993_v2 = vld [vmem:[#allocation4 + $0x10] sm:$0xff] (!%p3925_p6) }
 0x10b   : > { %s971_s29 = scalar_lea.vmem %s6267_s27, %s5539_s12  ;;  %s974_s2 = scalar_lea.vmem %s6268_s13, %s5539_s12  ;;  %995 = vst [vmem:[#allocation2] sm:$0xff] (!%p3925_p6), %v991_v0  ;;  %996 = vst [vmem:[#allocation2 + $0x8] sm:$0xff] (!%p3925_p6), %v992_v1  ;;  %v994_v3 = vld [vmem:[#allocation4 + $0x18] sm:$0xff] (!%p3925_p6) }
 0x10c   : > { %990 = sbr.rel (%p3925_p6) target bundleno = 275 (0x113), region = 128  ;;  %997 = vst [vmem:[#allocation2 + $0x10] sm:$0xff] (!%p3925_p6), %v993_v2  ;;  %998 = vst [vmem:[#allocation2 + $0x18] sm:$0xff] (!%p3925_p6), %v994_v3 }
 0x10d   : > { %s977_s20 = scalar_lea.vmem %s6269_s28, %s5539_s12  ;;  %s984_s17 = scalar_lea.vmem %s6270_s7, %s5539_s12 }
 0x10e   : > { %s5581_s3 = scalar_lea.vmem %s6271_s0, %s3924_s24 }
 0x113 PF: > { %v999_v4 = vld [vmem:[#allocation2] sm:$0xff]  ;;  %v1001_v5 = vld [vmem:[#allocation2 + $0x10] sm:$0xff]  ;;  %v1000_v6 = vld [vmem:[#allocation2 + $0x8] sm:$0xff]  ;;  %s6272_s16 = sld [smem:[#allocation30_spill]]  ;;  %s6274_s22 = sld [smem:[#allocation31_spill]]  ;;  %vm5076_vm0 = vmmov 0  }
 0x114   : > { %1005 = vadd.xlane.f32.xlu0 %v999_v4  ;;  %1009 = vadd.xlane.f32.xlu1 %v1001_v5  ;;  %v1002_v7 = vld [vmem:[#allocation2 + $0x18] sm:$0xff]  ;;  %v4492_v8 = vld [vmem:[%s5515_s25] sm:$0xff]   ;;  %v4494_v26 = vld [vmem:[%s5515_s25 + $0x8] sm:$0xff]   ;;  %s6277_s11 = sld [smem:[#allocation34_spill]]  ;;  %vm1445_vm1 = vcmask 261120   ;;  %vm1552_vm3 = vcmask 130048  }
 0x115   : > { %v4493_v9 = vld [vmem:[%s5521_s18] sm:$0xff]   ;;  %4204 = vmatprep.subr.bf16.mxu0 %v4492_v8  ;;  %v4495_v27 = vld [vmem:[%s5521_s18 + $0x8] sm:$0xff]   ;;  %v4496_v28 = vld [vmem:[%s5515_s25 + $0x10] sm:$0xff]   ;;  %s5078_s0 = smov 64   ;;  %s5079_s15 = smov 32   ;;  %vm1963_vm5 = vcmask 523520  }
 0x116   : > { %4224 = vmatprep.subr.bf16.mxu1 %v4493_v9  ;;  %4205 = vmatpush3.bf16.msra.mxu0 %v4492_v8  ;;  %v4497_v29 = vld [vmem:[%s5521_s18 + $0x10] sm:$0xff]   ;;  %v4498_v30 = vld [vmem:[%s5515_s25 + $0x18] sm:$0xff]   ;;  %v4500_v32 = vld [vmem:[%s5515_s25 + $0x20] sm:$0xff]   ;;  %vm2234_vm6 = vcmask 785920   ;;  %vm2505_vm7 = vcmask 1048320   ;;  %p4063_p8 = scmp.ne.s32.totalorder %s5052_s21, 1 }
 0x117   : > { %4225 = vmatpush3.bf16.msra.mxu1 %v4493_v9  ;;  %4206 = vmatprep.subr.bf16.mxu0 %v4494_v26  ;;  %v4499_v31 = vld [vmem:[%s5521_s18 + $0x18] sm:$0xff]   ;;  %v4501_v33 = vld [vmem:[%s5521_s18 + $0x20] sm:$0xff]   ;;  %v4502_v34 = vld [vmem:[%s5515_s25 + $0x28] sm:$0xff]   ;;  %s6289_s26 = sld [smem:[#allocation46_spill]] (!%p4063_p8) }
 0x118   : > { %1007 = vadd.xlane.f32.xlu0 %v1000_v6  ;;  %1011 = vadd.xlane.f32.xlu1 %v1002_v7  ;;  %v4503_v35 = vld [vmem:[%s5521_s18 + $0x28] sm:$0xff]   ;;  %v4504_v36 = vld [vmem:[%s5515_s25 + $0x30] sm:$0xff]   ;;  %v4506_v38 = vld [vmem:[%s5515_s25 + $0x38] sm:$0xff]  }
 0x119   : > { %4226 = vmatprep.subr.bf16.mxu1 %v4495_v27  ;;  %v4505_v37 = vld [vmem:[%s5521_s18 + $0x30] sm:$0xff]   ;;  %v4507_v39 = vld [vmem:[%s5521_s18 + $0x38] sm:$0xff]   ;;  %v4508_v40 = vld [vmem:[%s5523_s10] sm:$0xff]   ;;  %s6273_s27 = scalar_lea.vmem %s6272_s16, %s5539_s12  ;;  %s6275_s14 = scalar_lea.vmem %s6274_s22, %s5539_s12 }
 0x11a   : > { %4207 = vmatpush3.bf16.msra.mxu0 %v4494_v26  ;;  %v3926_v55 = vld [vmem:[%s6273_s27] ss:$0 sm:$0xff]  ;;  %v4509_v9 = vld [vmem:[%s5523_s10 + $0x8] sm:$0xff]   ;;  %s6278_s28 = scalar_lea.vmem %s6277_s11, %s5539_s12 }
 0x11b   : > { %4227 = vmatpush3.bf16.msra.mxu1 %v4495_v27  ;;  %4208 = vmatprep.subr.bf16.mxu0 %v4496_v28  ;;  %v3927_v60 = vld [vmem:[%s6275_s14] ss:$0 sm:$0xff] }
 0x11c   : > { %4228 = vmatprep.subr.bf16.mxu1 %v4497_v29 }
 0x11e   : > { %4209 = vmatpush3.bf16.msra.mxu0 %v4496_v28 }
 0x11f   : > { %4229 = vmatpush3.bf16.msra.mxu1 %v4497_v29  ;;  %4210 = vmatprep.subr.bf16.mxu0 %v4498_v30 }
 0x120   : > { %4230 = vmatprep.subr.bf16.mxu1 %v4499_v31 }
 0x122   : > { %4211 = vmatpush3.bf16.msra.mxu0 %v4498_v30 }
 0x123   : > { %4231 = vmatpush3.bf16.msra.mxu1 %v4499_v31  ;;  %4212 = vmatprep.subr.bf16.mxu0 %v4500_v32 }
 0x124   : > { %4232 = vmatprep.subr.bf16.mxu1 %v4501_v33 }
 0x126   : > { %4213 = vmatpush3.bf16.msra.mxu0 %v4500_v32 }
 0x127   : > { %4233 = vmatpush3.bf16.msra.mxu1 %v4501_v33  ;;  %4214 = vmatprep.subr.bf16.mxu0 %v4502_v34 }
 0x128   : > { %4234 = vmatprep.subr.bf16.mxu1 %v4503_v35 }
 0x12a   : > { %4215 = vmatpush3.bf16.msra.mxu0 %v4502_v34 }
 0x12b   : > { %4235 = vmatpush3.bf16.msra.mxu1 %v4503_v35  ;;  %4216 = vmatprep.subr.bf16.mxu0 %v4504_v36 }
 0x12c   : > { %4236 = vmatprep.subr.bf16.mxu1 %v4505_v37 }
 0x12e   : > { %4217 = vmatpush3.bf16.msra.mxu0 %v4504_v36 }
 0x12f   : > { %4237 = vmatpush3.bf16.msra.mxu1 %v4505_v37  ;;  %4218 = vmatprep.subr.bf16.mxu0 %v4506_v38 }
 0x130   : > { %4238 = vmatprep.subr.bf16.mxu1 %v4507_v39 }
 0x132   : > { %4219 = vmatpush3.bf16.msra.mxu0 %v4506_v38 }
 0x133   : > { %4239 = vmatpush3.bf16.msra.mxu1 %v4507_v39  ;;  %4244 = vmatprep.subr.bf16.mxu0 %v4508_v40 }
 0x1a1   : > { %v1006_v10 = vpop.xlane.xlu0 %1005  ;;  %v1010_v11 = vpop.xlane.xlu1 %1009 }
 0x1a2   : > { %v1014_v12 = vmul.f32 0.0078125, %v1006_v10  ;;  %v1016_v13 = vmul.f32 0.0078125, %v1010_v11  ;;  %v4510_v10 = vld [vmem:[%s5523_s10 + $0x10] sm:$0xff]   ;;  %v4511_v11 = vld [vmem:[%s5523_s10 + $0x18] sm:$0xff]  }
 0x1a4   : > { %v5588_v14 = vsub.f32 %v999_v4, %v1014_v12  ;;  %v5590_v15 = vsub.f32 %v1001_v5, %v1016_v13  ;;  %v4512_v12 = vld [vmem:[%s5523_s10 + $0x20] sm:$0xff]   ;;  %v4513_v13 = vld [vmem:[%s5523_s10 + $0x28] sm:$0xff]  }
 0x1a5   : > { %v1008_v16 = vpop.xlane.xlu0 %1007  ;;  %v1012_v17 = vpop.xlane.xlu1 %1011 }
 0x1a6   : > { %v1015_v18 = vmul.f32 0.0078125, %v1008_v16  ;;  %v1022_v19 = vmul.f32 %v5588_v14, %v5588_v14  ;;  %v1017_v20 = vmul.f32 0.0078125, %v1012_v17  ;;  %v1024_v23 = vmul.f32 %v5590_v15, %v5590_v15 }
 0x1a7   : > { %v5075_v16 = vmov 0.0  }
 0x1a8   : > { %v5594_v21 = vsub.f32 %v1000_v6, %v1015_v18  ;;  %1026 = vadd.xlane.f32.xlu0 %v1022_v19  ;;  %v5596_v22 = vsub.f32 %v1002_v7, %v1017_v20  ;;  %4264 = vmatprep.subr.bf16.mxu1 %v5075_v16  ;;  %v3937_v20 = vld [vmem:[%s6278_s28] ss:$0 sm:$0xff] }
 0x1aa   : > { %v1023_v24 = vmul.f32 %v5594_v21, %v5594_v21  ;;  %v1025_v25 = vmul.f32 %v5596_v22, %v5596_v22 }
 0x1ac   : > { %1030 = vadd.xlane.f32.xlu0 %v1024_v23  ;;  %1028 = vadd.xlane.f32.xlu1 %v1023_v24 }
 0x1b0   : > { %1032 = vadd.xlane.f32.xlu1 %v1025_v25 }
 0x235   : > { %v1027_v41 = vpop.xlane.xlu0 %1026 }
 0x236   : > { %v1034_v42 = vmul.f32 0.0078125, %v1027_v41  ;;  %v3946_v41 = vld [vmem:[%s968_s5] ss:$0 sm:$0xff]  ;;  %s5077_s5 = smov 96  }
 0x238   : > { %v1038_v43 = vadd.f32 1e-05, %v1034_v42 }
 0x239   : > { %v1029_v44 = vpop.xlane.xlu1 %1028  ;;  %v1031_v45 = vpop.xlane.xlu0 %1030 }
 0x23a   : > { %4604 = vrsqrt.f32 %v1038_v43  ;;  %v1035_v46 = vmul.f32 0.0078125, %v1029_v44  ;;  %v1036_v47 = vmul.f32 0.0078125, %v1031_v45 }
 0x23c   : > { %v1039_v48 = vadd.f32 1e-05, %v1035_v46  ;;  %v1040_v49 = vadd.f32 1e-05, %v1036_v47 }
 0x23d   : > { %v1033_v50 = vpop.xlane.xlu1 %1032 }
 0x23e   : > { %4606 = vrsqrt.f32 %v1039_v48  ;;  %v1037_v51 = vmul.f32 0.0078125, %v1033_v50 }
 0x23f   : > { %4608 = vrsqrt.f32 %v1040_v49 }
 0x240   : > { %v1041_v52 = vadd.f32 1e-05, %v1037_v51 }
 0x242   : > { %4610 = vrsqrt.f32 %v1041_v52  ;;  %v1432_v52 = vlaneseq }
 0x244   : > { %v4605_v53 = vpop.eup %4604 }
 0x245   : > { %v1046_v54 = vmul.f32 %v4605_v53, %v5588_v14  ;;  %v4514_v14 = vld [vmem:[%s5523_s10 + $0x30] sm:$0xff]   ;;  %v5689_v53 = vshrl.u32 %v1432_v52, 7 }
 0x247   : > { %v1056_v59 = vmul.f32 %v3926_v55, %v1046_v54  ;;  %v1436_v54 = vand.u32 127, %v1432_v52 }
 0x248   : > { %v4607_v56 = vpop.eup %4606 }
 0x249   : > { %v4609_v57 = vpop.eup %4608  ;;  %v1047_v58 = vmul.f32 %v4607_v56, %v5594_v21  ;;  %v1066_v0 = vadd.f32 %v3927_v60, %v1056_v59  ;;  %vm5693_vm2 = vcmp.le.s32.totalorder %v1436_v54, %v5689_v53 }
 0x24a   : > { %v1048_v61 = vmul.f32 %v4609_v57, %v5590_v15  ;;  %v4515_v15 = vld [vmem:[%s5523_s10 + $0x38] sm:$0xff]   ;;  %s6276_s10 = scalar_lea.vmem %s6170_s4, %s5539_s12 }
 0x24b   : > { %v1057_v62 = vmul.f32 %v3926_v55, %v1047_v58  ;;  %v3928_v18 = vld [vmem:[%s6276_s10] ss:$0 sm:$0xff] }
 0x24c   : > { %v4611_v63 = vpop.eup %4610  ;;  %v1058_v3 = vmul.f32 %v3926_v55, %v1048_v61 }
 0x24d   : > { %v1067_v1 = vadd.f32 %v3927_v60, %v1057_v62  ;;  %v1049_v2 = vmul.f32 %v4611_v63, %v5596_v22 }
 0x24e   : > { %v1068_v6 = vadd.f32 %v3927_v60, %v1058_v3 }
 0x24f   : > { %v1070_v4 = vpack.c.bf16 %v1067_v1, %v1066_v0  ;;  %v1059_v5 = vmul.f32 %v3926_v55, %v1049_v2  ;;  %v1434_v55 = vadd.s32 8, %v5689_v53 }
 0x251   : > { %4220 = vmatprep.mubr.bf16.mxu0 %v1070_v4  ;;  %4240 = vmatprep.mubr.bf16.mxu1 %v1070_v4  ;;  %v1069_v7 = vadd.f32 %v3927_v60, %v1059_v5  ;;  %vm5697_vm4 = vcmp.le.s32.totalorder %v1436_v54, %v1434_v55 }
 0x253   : > { %v1071_v8 = vpack.c.bf16 %v1069_v7, %v1068_v6 }
 0x255   : > { %4221 = vmatmul.mubr.bf16.vlgmr.msra.gmra.mrb[0].mxu0 %v1071_v8  ;;  %4241 = vmatmul.mubr.bf16.vlgmr.msra.gmra.mrb[0].mxu1 %v1071_v8 }
 0x256   : > { %4245 = vmatpush3.bf16.msra.mxu0 %v4508_v40  ;;  %4260 = vmatprep.mubr.bf16.mxu0 %v1070_v4 }
 0x257   : > { %4246 = vmatprep.subr.bf16.mxu0 %v4509_v9  ;;  %4266 = vmatprep.mubr.msk.bf16.mxu1 %vm5076_vm0, %v5075_v16 }
 0x25a   : > { %4247 = vmatpush3.bf16.msra.mxu0 %v4509_v9 }
 0x25b   : > { %4248 = vmatprep.subr.bf16.mxu0 %v4510_v10 }
 0x25e   : > { %4249 = vmatpush3.bf16.msra.mxu0 %v4510_v10 }
 0x25f   : > { %4250 = vmatprep.subr.bf16.mxu0 %v4511_v11 }
 0x262   : > { %4251 = vmatpush3.bf16.msra.mxu0 %v4511_v11 }
 0x263   : > { %4252 = vmatprep.subr.bf16.mxu0 %v4512_v12 }
 0x266   : > { %4253 = vmatpush3.bf16.msra.mxu0 %v4512_v12 }
 0x267   : > { %4254 = vmatprep.subr.bf16.mxu0 %v4513_v13 }
 0x26a   : > { %4255 = vmatpush3.bf16.msra.mxu0 %v4513_v13 }
 0x26b   : > { %4256 = vmatprep.subr.bf16.mxu0 %v4514_v14 }
 0x26e   : > { %4257 = vmatpush3.bf16.msra.mxu0 %v4514_v14 }
 0x26f   : > { %4258 = vmatprep.subr.bf16.mxu0 %v4515_v15 }
 0x272   : > { %4259 = vmatpush3.bf16.msra.mxu0 %v4515_v15 }
 0x273   : > { %4312 = vmatprep.subr.bf16.mxu0 %v5075_v16 }
 0x275   : > { %4261 = vmatmul.mubr.bf16.vlgmr.msra.gmra.mrb[4].mxu0 %v1071_v8 }
 0x276   : > { %4314 = vmatprep.mubr.msk.bf16.mxu0 %vm5076_vm0, %v5075_v16 }
 0x328   : > { %v4222_v17 = vpop.f32.mrb[0].mxu0  ;;  %v4242_v19 = vpop.f32.mrb[0].mxu1 }
 0x329   : > { %v1177_v21 = vpop.f32.mrb[1].mxu0  ;;  %v1297_v22 = vpop.f32.mrb[1].mxu1  ;;  %v1186_v25 = vadd.f32 %v4222_v17, %v3928_v18  ;;  %v1306_v26 = vadd.f32 %v4242_v19, %v3937_v20 }
 0x32a   : > { %v4223_v23 = vpop.f32.mrb[2].mxu0  ;;  %v4243_v24 = vpop.f32.mrb[2].mxu1  ;;  %v1178_v31 = vadd.f32 %v3928_v18, %v1177_v21  ;;  %v1298_v32 = vadd.f32 %v3937_v20, %v1297_v22 }
 0x32b   : > { %v1189_v27 = vadd.f32 %v4223_v23, %v3928_v18  ;;  %v1309_v28 = vadd.f32 %v4243_v24, %v3937_v20  ;;  %v1180_v29 = vpop.f32.mrb[3].mxu0  ;;  %v1300_v30 = vpop.f32.mrb[3].mxu1 }
 0x32c   : > { %v1181_v33 = vadd.f32 %v3928_v18, %v1180_v29  ;;  %v1301_v34 = vadd.f32 %v3937_v20, %v1300_v30 }
 0x32d   : > { %v5656_v35 = vpack.c.bf16 %v1189_v27, %v1186_v25  ;;  %v5658_v36 = vpack.c.bf16 %v1309_v28, %v1306_v26 }
 0x32e   : > { %v5660_v37 = vpack.c.bf16 %v1181_v33, %v1178_v31  ;;  %v5662_v38 = vpack.c.bf16 %v1301_v34, %v1298_v32 }
 0x32f   : > { %v1497_v40 = vsel %vm1445_vm1, %v5658_v36, 0 }
 0x330   : > { %v1450_v39 = vsel %vm1445_vm1, %v5662_v38, 0 }
 0x331   : > { %4265 = vmatpush3.bf16.xpose.msra.mxu1 %v1450_v39 }
 0x332   : > { %4270 = vmatprep.subr.bf16.mxu1 %v5075_v16 }
 0x338   : > { %4267 = vmatmul.mubr.msk.bf16.vlgmr.msra.gmra.mrb[4].mxu1 %vm1445_vm1, %v5660_v37 }
 0x339   : > { %4271 = vmatpush3.bf16.xpose.msra.mxu1 %v1497_v40  ;;  %4272 = vmatprep.mubr.msk.bf16.mxu1 %vm5076_vm0, %v5075_v16 }
 0x33a   : > { %4276 = vmatprep.subr.bf16.mxu1 %v5075_v16 }
 0x340   : > { %4273 = vmatmul.mubr.msk.bf16.vlgmr.msra.gmra.mrb[8].mxu1 %vm1445_vm1, %v5656_v35 }
 0x341   : > { %4278 = vmatprep.mubr.msk.bf16.mxu1 %vm5076_vm0, %v5075_v16 }
 0x348   : > { %v4262_v42 = vpop.f32.mrb[4].mxu0 }
 0x349   : > { %v1426_v43 = vadd.f32 %v4262_v42, %v3946_v41  ;;  %v1417_v44 = vpop.f32.mrb[5].mxu0 }
 0x34a   : > { %v4263_v45 = vpop.f32.mrb[6].mxu0  ;;  %v1418_v48 = vadd.f32 %v3946_v41, %v1417_v44 }
 0x34b   : > { %v1429_v46 = vadd.f32 %v4263_v45, %v3946_v41  ;;  %v1420_v47 = vpop.f32.mrb[7].mxu0 }
 0x34c   : > { %v1421_v49 = vadd.f32 %v3946_v41, %v1420_v47 }
 0x34d   : > { %v5683_v50 = vpack.c.bf16 %v1429_v46, %v1426_v43 }
 0x34e   : > { %v5685_v51 = vpack.c.bf16 %v1421_v49, %v1418_v48 }
 0x350   : > { %4277 = vmatpush3.bf16.msra.mxu1 %v5685_v51 }
 0x351   : > { %4282 = vmatprep.subr.bf16.mxu1 %v5075_v16 }
 0x40b   : > { %v1486_v56 = vpop.f32.mrb[4].mxu1 }
 0x40c   : > { %v1540_v58 = vmul.f32 0.17677669, %v1486_v56  ;;  %v4268_v59 = vpop.f32.mrb[5].mxu1 }
 0x40d   : > { %v1489_v60 = vpop.f32.mrb[6].mxu1 }
 0x40e   : > { %v1541_v62 = vmul.f32 0.17677669, %v1489_v60  ;;  %v4269_v63 = vpop.f32.mrb[7].mxu1  ;;  %v1548_v0 = vsel %vm5693_vm2, %v1540_v58, -1e+30 }
 0x40f   : > { %v1553_v1 = vsel %vm1552_vm3, %v1548_v0, -inf }
 0x410   : > { %1554 = vmax.xlane.f32.xlu0 %v1553_v1  ;;  %v1549_v2 = vsel %vm5697_vm4, %v1541_v62, -1e+30 }
 0x411   : > { %v1556_v3 = vsel %vm1552_vm3, %v1549_v2, -inf }
 0x412   : > { %1557 = vmax.xlane.f32.xlu1 %v1556_v3 }
 0x413   : > { %v1533_v4 = vpop.f32.mrb[8].mxu1 }
 0x414   : > { %v1542_v5 = vmul.f32 0.17677669, %v1533_v4  ;;  %v4274_v6 = vpop.f32.mrb[9].mxu1 }
 0x415   : > { %v1536_v7 = vpop.f32.mrb[10].mxu1 }
 0x416   : > { %v1543_v8 = vmul.f32 0.17677669, %v1536_v7  ;;  %v4275_v9 = vpop.f32.mrb[11].mxu1  ;;  %v1550_v10 = vsel %vm5693_vm2, %v1542_v5, -1e+30 }
 0x417   : > { %v1559_v11 = vsel %vm1552_vm3, %v1550_v10, -inf }
 0x418   : > { %1560 = vmax.xlane.f32.xlu0 %v1559_v11  ;;  %v1551_v12 = vsel %vm5697_vm4, %v1543_v8, -1e+30 }
 0x419   : > { %v1562_v13 = vsel %vm1552_vm3, %v1551_v12, -inf }
 0x41a   : > { %1563 = vmax.xlane.f32.xlu1 %v1562_v13 }
 0x49d   : > { %v1555_v14 = vpop.xlane.xlu0 %1554 }
 0x49e   : > { %v1565_v15 = vsub.f32 %v1548_v0, %v1555_v14 }
 0x49f   : > { %v1558_v17 = vpop.xlane.xlu1 %1557 }
 0x4a0   : > { %v1569_v18 = vmul.f32 1.442695, %v1565_v15  ;;  %v1566_v19 = vsub.f32 %v1549_v2, %v1558_v17 }
 0x4a2   : > { %4612 = vpow2.f32 %v1569_v18  ;;  %v1571_v20 = vmul.f32 1.442695, %v1566_v19 }
 0x4a4   : > { %4614 = vpow2.f32 %v1571_v20 }
 0x4a5   : > { %v1561_v21 = vpop.xlane.xlu0 %1560 }
 0x4a6   : > { %v1567_v22 = vsub.f32 %v1550_v10, %v1561_v21 }
 0x4a7   : > { %v1564_v23 = vpop.xlane.xlu1 %1563 }
 0x4a8   : > { %v1573_v24 = vmul.f32 1.442695, %v1567_v22  ;;  %v1568_v25 = vsub.f32 %v1551_v12, %v1564_v23 }
 0x4aa   : > { %4616 = vpow2.f32 %v1573_v24  ;;  %v1575_v26 = vmul.f32 1.442695, %v1568_v25 }
 0x4ac   : > { %v4613_v27 = vpop.eup %4612  ;;  %4618 = vpow2.f32 %v1575_v26 }
 0x4ad   : > { %v1577_v28 = vsel %vm1552_vm3, %v4613_v27, 0.0 }
 0x4ae   : > { %v4615_v29 = vpop.eup %4614  ;;  %1578 = vadd.xlane.f32.xlu0 %v1577_v28 }
 0x4af   : > { %v1580_v30 = vsel %vm1552_vm3, %v4615_v29, 0.0 }
 0x4b0   : > { %1581 = vadd.xlane.f32.xlu1 %v1580_v30 }
 0x4b4   : > { %v4617_v31 = vpop.eup %4616 }
 0x4b5   : > { %v1583_v32 = vsel %vm1552_vm3, %v4617_v31, 0.0 }
 0x4b6   : > { %v4619_v33 = vpop.eup %4618  ;;  %1584 = vadd.xlane.f32.xlu0 %v1583_v32 }
 0x4b7   : > { %v1586_v34 = vsel %vm1552_vm3, %v4619_v33, 0.0 }
 0x4b8   : > { %1587 = vadd.xlane.f32.xlu1 %v1586_v34 }
 0x4c9   : > { %1692 = vrot.lane.b32.xlu1 %v5660_v37, %s5077_s5 }
 0x4cc   : > { %1695 = vrot.lane.b32.xlu0 %v5662_v38, %s5077_s5 }
 0x4cd   : > { %1748 = vrot.lane.b32.xlu1 %v5658_v36, %s5077_s5 }
 0x4d1   : > { %1745 = vrot.lane.b32.xlu1 %v5656_v35, %s5077_s5 }
 0x53b   : > { %v1579_v39 = vpop.xlane.xlu0 %1578 }
 0x53c   : > { %4620 = vrcp.f32 %v1579_v39 }
 0x53d   : > { %v1582_v40 = vpop.xlane.xlu1 %1581 }
 0x53e   : > { %4622 = vrcp.f32 %v1582_v40 }
 0x543   : > { %v1585_v41 = vpop.xlane.xlu0 %1584 }
 0x544   : > { %4624 = vrcp.f32 %v1585_v41 }
 0x545   : > { %v1588_v42 = vpop.xlane.xlu1 %1587 }
 0x546   : > { %v4621_v43 = vpop.eup %4620  ;;  %4626 = vrcp.f32 %v1588_v42 }
 0x547   : > { %v1593_v45 = vmul.f32 %v4621_v43, %v4613_v27  ;;  %v1696_v55 = vpop.permute.xlu0 %1695 }
 0x548   : > { %v4623_v44 = vpop.eup %4622  ;;  %v1701_v59 = vsel %vm1445_vm1, %v1696_v55, 0 }
 0x549   : > { %v1594_v46 = vmul.f32 %v4623_v44, %v4615_v29  ;;  %v1693_v58 = vpop.permute.xlu1 %1692 }
 0x54b   : > { %v1597_v47 = vpack.c.bf16 %v1594_v46, %v1593_v45 }
 0x54d   : > { %4279 = vmatmul.mubr.msk.bf16.vlgmr.msra.gmra.mrb[12].mxu1 %vm1552_vm3, %v1597_v47  ;;  %v1749_v60 = vpop.permute.xlu1 %1748 }
 0x54e   : > { %v4625_v48 = vpop.eup %4624  ;;  %4283 = vmatpush3.bf16.msra.mxu1 %v5683_v50  ;;  %4284 = vmatprep.mubr.msk.bf16.mxu1 %vm5076_vm0, %v5075_v16  ;;  %v1754_v62 = vsel %vm1445_vm1, %v1749_v60, 0 }
 0x54f   : > { %4288 = vmatprep.subr.bf16.mxu1 %v5075_v16  ;;  %v1595_v52 = vmul.f32 %v4625_v48, %v4617_v31 }
 0x550   : > { %v4627_v49 = vpop.eup %4626 }
 0x551   : > { %v1596_v54 = vmul.f32 %v4627_v49, %v4619_v33  ;;  %v1746_v63 = vpop.permute.xlu1 %1745 }
 0x553   : > { %v1598_v56 = vpack.c.bf16 %v1596_v54, %v1595_v52 }
 0x555   : > { %4285 = vmatmul.mubr.msk.bf16.vlgmr.msra.gmra.mrb[16].mxu1 %vm1552_vm3, %v1598_v56 }
 0x556   : > { %4290 = vmatprep.mubr.msk.bf16.mxu1 %vm5076_vm0, %v5075_v16 }
 0x557   : > { %4289 = vmatpush3.bf16.xpose.msra.mxu1 %v1701_v59 }
 0x558   : > { %4294 = vmatprep.subr.bf16.mxu1 %v5075_v16 }
 0x55e   : > { %4291 = vmatmul.mubr.msk.bf16.vlgmr.msra.gmra.mrb[20].mxu1 %vm1445_vm1, %v1693_v58 }
 0x55f   : > { %4295 = vmatpush3.bf16.xpose.msra.mxu1 %v1754_v62  ;;  %4296 = vmatprep.mubr.msk.bf16.mxu1 %vm5076_vm0, %v5075_v16 }
 0x560   : > { %4300 = vmatprep.subr.bf16.mxu1 %v5075_v16 }
 0x566   : > { %4297 = vmatmul.mubr.msk.bf16.vlgmr.msra.gmra.mrb[24].mxu1 %vm1445_vm1, %v1746_v63 }
 0x567   : > { %4302 = vmatprep.mubr.msk.bf16.mxu1 %vm5076_vm0, %v5075_v16 }
 0x620   : > { %v1636_v0 = vpop.f32.mrb[12].mxu1 }
 0x621   : > { %1687 = vst.msk [vmem:[#allocation3] sm:$0xff] %vm1445_vm1, %v1636_v0  ;;  %v4280_v1 = vpop.f32.mrb[13].mxu1 }
 0x622   : > { %v1639_v2 = vpop.f32.mrb[14].mxu1 }
 0x623   : > { %1688 = vst.msk [vmem:[#allocation3 + $0x8] sm:$0xff] %vm1445_vm1, %v1639_v2  ;;  %v4281_v3 = vpop.f32.mrb[15].mxu1 }
 0x628   : > { %v1680_v4 = vpop.f32.mrb[16].mxu1 }
 0x629   : > { %1689 = vst.msk [vmem:[#allocation3 + $0x10] sm:$0xff] %vm1445_vm1, %v1680_v4  ;;  %v4286_v5 = vpop.f32.mrb[17].mxu1 }
 0x62a   : > { %v1683_v6 = vpop.f32.mrb[18].mxu1 }
 0x62b   : > { %1690 = vst.msk [vmem:[#allocation3 + $0x18] sm:$0xff] %vm1445_vm1, %v1683_v6  ;;  %v4287_v7 = vpop.f32.mrb[19].mxu1 }
 0x631   : > { %v1737_v8 = vpop.f32.mrb[20].mxu1 }
 0x632   : > { %v1797_v9 = vmul.f32 0.17677669, %v1737_v8  ;;  %v4292_v10 = vpop.f32.mrb[21].mxu1 }
 0x633   : > { %v1740_v11 = vpop.f32.mrb[22].mxu1 }
 0x634   : > { %v1798_v12 = vmul.f32 0.17677669, %v1740_v11  ;;  %v4293_v13 = vpop.f32.mrb[23].mxu1  ;;  %v1801_v14 = vsel %vm5693_vm2, %v1797_v9, -1e+30 }
 0x635   : > { %v1805_v15 = vsel %vm1552_vm3, %v1801_v14, -inf }
 0x636   : > { %1806 = vmax.xlane.f32.xlu0 %v1805_v15  ;;  %v1802_v17 = vsel %vm5697_vm4, %v1798_v12, -1e+30 }
 0x637   : > { %v1808_v18 = vsel %vm1552_vm3, %v1802_v17, -inf }
 0x638   : > { %1809 = vmax.xlane.f32.xlu1 %v1808_v18 }
 0x639   : > { %v1790_v19 = vpop.f32.mrb[24].mxu1 }
 0x63a   : > { %v1799_v20 = vmul.f32 0.17677669, %v1790_v19  ;;  %v4298_v21 = vpop.f32.mrb[25].mxu1 }
 0x63b   : > { %v1793_v22 = vpop.f32.mrb[26].mxu1 }
 0x63c   : > { %v1800_v23 = vmul.f32 0.17677669, %v1793_v22  ;;  %v4299_v24 = vpop.f32.mrb[27].mxu1  ;;  %v1803_v25 = vsel %vm5693_vm2, %v1799_v20, -1e+30 }
 0x63d   : > { %v1811_v26 = vsel %vm1552_vm3, %v1803_v25, -inf }
 0x63e   : > { %1812 = vmax.xlane.f32.xlu0 %v1811_v26  ;;  %v1804_v27 = vsel %vm5697_vm4, %v1800_v23, -1e+30 }
 0x63f   : > { %v1814_v28 = vsel %vm1552_vm3, %v1804_v27, -inf }
 0x642   : > { %1815 = vmax.xlane.f32.xlu0 %v1814_v28 }
 0x6c3   : > { %v1807_v29 = vpop.xlane.xlu0 %1806 }
 0x6c4   : > { %v1817_v30 = vsub.f32 %v1801_v14, %v1807_v29 }
 0x6c5   : > { %v1810_v31 = vpop.xlane.xlu1 %1809 }
 0x6c6   : > { %v1821_v32 = vmul.f32 1.442695, %v1817_v30  ;;  %v1818_v33 = vsub.f32 %v1802_v17, %v1810_v31 }
 0x6c8   : > { %4628 = vpow2.f32 %v1821_v32  ;;  %v1823_v34 = vmul.f32 1.442695, %v1818_v33 }
 0x6ca   : > { %4630 = vpow2.f32 %v1823_v34 }
 0x6cb   : > { %v1813_v39 = vpop.xlane.xlu0 %1812 }
 0x6cc   : > { %v1819_v40 = vsub.f32 %v1803_v25, %v1813_v39 }
 0x6ce   : > { %v1825_v41 = vmul.f32 1.442695, %v1819_v40 }
 0x6cf   : > { %v1816_v48 = vpop.xlane.xlu0 %1815 }
 0x6d0   : > { %4632 = vpow2.f32 %v1825_v41  ;;  %v1820_v49 = vsub.f32 %v1804_v27, %v1816_v48 }
 0x6d2   : > { %v4629_v42 = vpop.eup %4628  ;;  %v1827_v52 = vmul.f32 1.442695, %v1820_v49 }
 0x6d3   : > { %v1829_v43 = vsel %vm1552_vm3, %v4629_v42, 0.0 }
 0x6d4   : > { %v4631_v44 = vpop.eup %4630  ;;  %1830 = vadd.xlane.f32.xlu0 %v1829_v43  ;;  %4634 = vpow2.f32 %v1827_v52 }
 0x6d5   : > { %v1832_v45 = vsel %vm1552_vm3, %v4631_v44, 0.0 }
 0x6d6   : > { %1833 = vadd.xlane.f32.xlu1 %v1832_v45 }
 0x6da   : > { %v4633_v46 = vpop.eup %4632 }
 0x6db   : > { %v1835_v47 = vsel %vm1552_vm3, %v4633_v46, 0.0 }
 0x6dc   : > { %1836 = vadd.xlane.f32.xlu0 %v1835_v47 }
 0x6de   : > { %v4635_v54 = vpop.eup %4634 }
 0x6df   : > { %v1838_v55 = vsel %vm1552_vm3, %v4635_v54, 0.0 }
 0x6e7   : > { %1900 = vrot.lane.b32.xlu1 %v5683_v50, %s5077_s5 }
 0x6eb   : > { %1970 = vrot.lane.b32.xlu1 %v5662_v38, %s5078_s0 }
 0x6f2   : > { %1852 = vrot.lane.b32.xlu0 %v5685_v51, %s5077_s5 }
 0x6f6   : > { %1968 = vrot.lane.b32.xlu0 %v5660_v37, %s5078_s0 }
 0x70f   : > { %1839 = vadd.xlane.f32.xlu1 %v1838_v55 }
 0x720   : > { %2021 = vrot.lane.b32.xlu1 %v5658_v36, %s5078_s0 }
 0x724   : > { %2019 = vrot.lane.b32.xlu1 %v5656_v35, %s5078_s0 }
 0x761   : > { %v1831_v56 = vpop.xlane.xlu0 %1830 }
 0x762   : > { %4636 = vrcp.f32 %v1831_v56 }
 0x763   : > { %v1834_v58 = vpop.xlane.xlu1 %1833 }
 0x764   : > { %4638 = vrcp.f32 %v1834_v58 }
 0x767   : > { %v1901_v59 = vpop.permute.xlu1 %1900 }
 0x769   : > { %v1837_v60 = vpop.xlane.xlu0 %1836 }
 0x76a   : > { %4640 = vrcp.f32 %v1837_v60 }
 0x76b   : > { %v1971_v62 = vpop.permute.xlu1 %1970 }
 0x76c   : > { %v4637_v63 = vpop.eup %4636  ;;  %v1976_v0 = vsel %vm1445_vm1, %v1971_v62, 0 }
 0x76d   : > { %4313 = vmatpush3.bf16.xpose.msra.mxu0 %v1976_v0  ;;  %v1853_v1 = vpop.permute.xlu0 %1852  ;;  %v1845_v3 = vmul.f32 %v4637_v63, %v4629_v42 }
 0x76e   : > { %v4639_v2 = vpop.eup %4638  ;;  %4301 = vmatpush3.bf16.msra.mxu1 %v1853_v1  ;;  %4324 = vmatprep.subr.bf16.mxu0 %v5075_v16 }
 0x76f   : > { %v1846_v4 = vmul.f32 %v4639_v2, %v4631_v44  ;;  %4306 = vmatprep.subr.bf16.mxu1 %v5075_v16 }
 0x771   : > { %v1849_v5 = vpack.c.bf16 %v1846_v4, %v1845_v3  ;;  %v1969_v6 = vpop.permute.xlu0 %1968 }
 0x773   : > { %4303 = vmatmul.mubr.msk.bf16.vlgmr.msra.gmra.mrb[28].mxu1 %vm1552_vm3, %v1849_v5 }
 0x774   : > { %4307 = vmatpush3.bf16.msra.mxu1 %v1901_v59  ;;  %4315 = vmatmul.mubr.msk.bf16.vlgmr.msra.gmra.mrb[8].mxu0 %vm1445_vm1, %v1969_v6  ;;  %v4641_v8 = vpop.eup %4640 }
 0x775   : > { %4308 = vmatprep.mubr.msk.bf16.mxu1 %vm5076_vm0, %v5075_v16  ;;  %4318 = vmatprep.subr.bf16.mxu1 %v5075_v16  ;;  %v1847_v10 = vmul.f32 %v4641_v8, %v4633_v46 }
 0x776   : > { %4326 = vmatprep.mubr.msk.bf16.mxu0 %vm5076_vm0, %v5075_v16 }
 0x79c   : > { %v1840_v7 = vpop.xlane.xlu1 %1839 }
 0x79d   : > { %4642 = vrcp.f32 %v1840_v7 }
 0x7a0   : > { %v2022_v12 = vpop.permute.xlu1 %2021 }
 0x7a1   : > { %v2027_v14 = vsel %vm1445_vm1, %v2022_v12, 0 }
 0x7a4   : > { %v2020_v15 = vpop.permute.xlu1 %2019 }
 0x7a7   : > { %v4643_v9 = vpop.eup %4642 }
 0x7a8   : > { %v1848_v11 = vmul.f32 %v4643_v9, %v4635_v54 }
 0x7aa   : > { %v1850_v13 = vpack.c.bf16 %v1848_v11, %v1847_v10 }
 0x7ac   : > { %4309 = vmatmul.mubr.msk.bf16.vlgmr.msra.gmra.mrb[32].mxu1 %vm1552_vm3, %v1850_v13 }
 0x7ad   : > { %4319 = vmatpush3.bf16.xpose.msra.mxu1 %v2027_v14  ;;  %4320 = vmatprep.mubr.msk.bf16.mxu1 %vm5076_vm0, %v5075_v16 }
 0x7ae   : > { %4330 = vmatprep.subr.bf16.mxu1 %v5075_v16 }
 0x7b4   : > { %4321 = vmatmul.mubr.msk.bf16.vlgmr.msra.gmra.mrb[36].mxu1 %vm1445_vm1, %v2020_v15 }
 0x7b5   : > { %4332 = vmatprep.mubr.msk.bf16.mxu1 %vm5076_vm0, %v5075_v16 }
 0x846   : > { %v5793_v17 = vpop.f32.mrb[28].mxu1 }
 0x847   : > { %v4304_v18 = vpop.f32.mrb[29].mxu1  ;;  %v2012_v19 = vpop.f32.mrb[8].mxu0 }
 0x848   : > { %v2070_v20 = vmul.f32 0.17677669, %v2012_v19  ;;  %v5795_v21 = vpop.f32.mrb[30].mxu1  ;;  %v4316_v22 = vpop.f32.mrb[9].mxu0 }
 0x849   : > { %v4305_v23 = vpop.f32.mrb[31].mxu1  ;;  %v2015_v24 = vpop.f32.mrb[10].mxu0 }
 0x84a   : > { %v2071_v25 = vmul.f32 0.17677669, %v2015_v24  ;;  %v4317_v26 = vpop.f32.mrb[11].mxu0  ;;  %v2074_v27 = vsel %vm5693_vm2, %v2070_v20, -1e+30 }
 0x84b   : > { %v2078_v28 = vsel %vm1552_vm3, %v2074_v27, -inf }
 0x84c   : > { %2079 = vmax.xlane.f32.xlu0 %v2078_v28  ;;  %v2075_v29 = vsel %vm5697_vm4, %v2071_v25, -1e+30 }
 0x84d   : > { %v2081_v30 = vsel %vm1552_vm3, %v2075_v29, -inf }
 0x84e   : > { %2082 = vmax.xlane.f32.xlu1 %v2081_v30 }
 0x87f   : > { %v5803_v31 = vpop.f32.mrb[32].mxu1 }
 0x880   : > { %v4310_v32 = vpop.f32.mrb[33].mxu1 }
 0x881   : > { %v5805_v33 = vpop.f32.mrb[34].mxu1 }
 0x882   : > { %v4311_v34 = vpop.f32.mrb[35].mxu1 }
 0x887   : > { %v2063_v39 = vpop.f32.mrb[36].mxu1 }
 0x888   : > { %v2072_v40 = vmul.f32 0.17677669, %v2063_v39  ;;  %v4322_v41 = vpop.f32.mrb[37].mxu1 }
 0x889   : > { %v2066_v42 = vpop.f32.mrb[38].mxu1 }
 0x88a   : > { %v2073_v43 = vmul.f32 0.17677669, %v2066_v42  ;;  %v4323_v44 = vpop.f32.mrb[39].mxu1  ;;  %v2076_v45 = vsel %vm5693_vm2, %v2072_v40, -1e+30 }
 0x88b   : > { %v2084_v46 = vsel %vm1552_vm3, %v2076_v45, -inf }
 0x88c   : > { %2085 = vmax.xlane.f32.xlu0 %v2084_v46  ;;  %v2077_v47 = vsel %vm5697_vm4, %v2073_v43, -1e+30 }
 0x88d   : > { %v2087_v48 = vsel %vm1552_vm3, %v2077_v47, -inf }
 0x890   : > { %2088 = vmax.xlane.f32.xlu0 %v2087_v48 }
 0x8d9   : > { %v2080_v49 = vpop.xlane.xlu0 %2079 }
 0x8da   : > { %v2090_v52 = vsub.f32 %v2074_v27, %v2080_v49 }
 0x8db   : > { %v2083_v54 = vpop.xlane.xlu1 %2082 }
 0x8dc   : > { %v2094_v55 = vmul.f32 1.442695, %v2090_v52  ;;  %v2091_v56 = vsub.f32 %v2075_v29, %v2083_v54 }
 0x8de   : > { %4644 = vpow2.f32 %v2094_v55  ;;  %v2096_v58 = vmul.f32 1.442695, %v2091_v56 }
 0x8e0   : > { %4646 = vpow2.f32 %v2096_v58 }
 0x8e8   : > { %v4645_v59 = vpop.eup %4644 }
 0x8e9   : > { %v2102_v60 = vsel %vm1552_vm3, %v4645_v59, 0.0 }
 0x8ea   : > { %v4647_v62 = vpop.eup %4646  ;;  %2103 = vadd.xlane.f32.xlu0 %v2102_v60 }
 0x8eb   : > { %v2105_v63 = vsel %vm1552_vm3, %v4647_v62, 0.0 }
 0x8ec   : > { %2106 = vadd.xlane.f32.xlu1 %v2105_v63 }
 0x8fd   : > { %2171 = vrot.lane.b32.xlu1 %v5683_v50, %s5078_s0 }
 0x901   : > { %2241 = vrot.lane.b32.xlu1 %v5662_v38, %s5079_s15 }
 0x919   : > { %v2086_v0 = vpop.xlane.xlu0 %2085 }
 0x91a   : > { %v2092_v1 = vsub.f32 %v2076_v45, %v2086_v0 }
 0x91c   : > { %v2098_v2 = vmul.f32 1.442695, %v2092_v1 }
 0x91d   : > { %v2089_v3 = vpop.xlane.xlu0 %2088 }
 0x91e   : > { %4648 = vpow2.f32 %v2098_v2  ;;  %v2093_v4 = vsub.f32 %v2077_v47, %v2089_v3 }
 0x920   : > { %v2100_v5 = vmul.f32 1.442695, %v2093_v4 }
 0x922   : > { %4650 = vpow2.f32 %v2100_v5 }
 0x928   : > { %v4649_v6 = vpop.eup %4648 }
 0x929   : > { %v2108_v7 = vsel %vm1552_vm3, %v4649_v6, 0.0 }
 0x92a   : > { %2109 = vadd.xlane.f32.xlu0 %v2108_v7 }
 0x92c   : > { %v4651_v8 = vpop.eup %4650 }
 0x92d   : > { %v2111_v9 = vsel %vm1552_vm3, %v4651_v8, 0.0 }
 0x92e   : > { %2112 = vadd.xlane.f32.xlu1 %v2111_v9 }
 0x93f   : > { %2292 = vrot.lane.b32.xlu1 %v5658_v36, %s5079_s15 }
 0x940   : > { %2124 = vrot.lane.b32.xlu0 %v5685_v51, %s5078_s0 }
 0x943   : > { %2290 = vrot.lane.b32.xlu1 %v5656_v35, %s5079_s15 }
 0x944   : > { %2239 = vrot.lane.b32.xlu0 %v5660_v37, %s5079_s15 }
 0x977   : > { %v2104_v11 = vpop.xlane.xlu0 %2103 }
 0x979   : > { %v2107_v38 = vpop.xlane.xlu1 %2106 }
 0x97a   : > { %4652 = vrcp.f32 %v2107_v38 }
 0x97b   : > { %4654 = vrcp.f32 %v2104_v11 }
 0x97d   : > { %v2172_v10 = vpop.permute.xlu1 %2171 }
 0x97e   : > { %4331 = vmatpush3.bf16.msra.mxu1 %v2172_v10 }
 0x97f   : > { %4342 = vmatprep.subr.bf16.mxu1 %v5075_v16 }
 0x981   : > { %v2242_v13 = vpop.permute.xlu1 %2241 }
 0x982   : > { %v2247_v22 = vsel %vm1445_vm1, %v2242_v13, 0 }
 0x984   : > { %v4653_v12 = vpop.eup %4652 }
 0x985   : > { %v4655_v14 = vpop.eup %4654  ;;  %v2119_v15 = vmul.f32 %v4653_v12, %v4647_v62 }
 0x986   : > { %v2118_v18 = vmul.f32 %v4655_v14, %v4645_v59 }
 0x988   : > { %v2122_v37 = vpack.c.bf16 %v2119_v15, %v2118_v18 }
 0x9b7   : > { %v2110_v36 = vpop.xlane.xlu0 %2109 }
 0x9b8   : > { %4656 = vrcp.f32 %v2110_v36 }
 0x9bb   : > { %v2113_v19 = vpop.xlane.xlu1 %2112  ;;  %v2125_v35 = vpop.permute.xlu0 %2124 }
 0x9bc   : > { %4658 = vrcp.f32 %v2113_v19  ;;  %4325 = vmatpush3.bf16.msra.mxu0 %v2125_v35 }
 0x9bd   : > { %4336 = vmatprep.subr.bf16.mxu0 %v5075_v16 }
 0x9bf   : > { %4327 = vmatmul.mubr.msk.bf16.vlgmr.msra.gmra.mrb[12].mxu0 %vm1552_vm3, %v2122_v37  ;;  %v2293_v26 = vpop.permute.xlu1 %2292  ;;  %v2240_v29 = vpop.permute.xlu0 %2239 }
 0x9c0   : > { %4338 = vmatprep.mubr.msk.bf16.mxu0 %vm5076_vm0, %v5075_v16  ;;  %v2298_v28 = vsel %vm1445_vm1, %v2293_v26, 0 }
 0x9c2   : > { %v4657_v20 = vpop.eup %4656 }
 0x9c3   : > { %v2120_v24 = vmul.f32 %v4657_v20, %v4649_v6  ;;  %v2291_v30 = vpop.permute.xlu1 %2290 }
 0x9c5   : > { %4337 = vmatpush3.bf16.xpose.msra.mxu0 %v2247_v22 }
 0x9c6   : > { %v4659_v23 = vpop.eup %4658  ;;  %4348 = vmatprep.subr.bf16.mxu0 %v5075_v16 }
 0x9c7   : > { %v2121_v25 = vmul.f32 %v4659_v23, %v4651_v8 }
 0x9c9   : > { %v2123_v27 = vpack.c.bf16 %v2121_v25, %v2120_v24 }
 0x9cb   : > { %4333 = vmatmul.mubr.msk.bf16.vlgmr.msra.gmra.mrb[40].mxu1 %vm1552_vm3, %v2123_v27 }
 0x9cc   : > { %4343 = vmatpush3.bf16.xpose.msra.mxu1 %v2298_v28  ;;  %4339 = vmatmul.mubr.msk.bf16.vlgmr.msra.gmra.mrb[16].mxu0 %vm1445_vm1, %v2240_v29 }
 0x9cd   : > { %4344 = vmatprep.mubr.msk.bf16.mxu1 %vm5076_vm0, %v5075_v16  ;;  %4354 = vmatprep.subr.bf16.mxu1 %v5075_v16 }
 0x9ce   : > { %4350 = vmatprep.mubr.msk.bf16.mxu0 %vm5076_vm0, %v5075_v16 }
 0x9d3   : > { %4345 = vmatmul.mubr.msk.bf16.vlgmr.msra.gmra.mrb[44].mxu1 %vm1445_vm1, %v2291_v30 }
 0x9d4   : > { %4356 = vmatprep.mubr.msk.bf16.mxu1 %vm5076_vm0, %v5075_v16 }
 0xa92   : > { %v5847_v32 = vpop.f32.mrb[12].mxu0 }
 0xa93   : > { %v4328_v34 = vpop.f32.mrb[13].mxu0 }
 0xa94   : > { %v5849_v39 = vpop.f32.mrb[14].mxu0 }
 0xa95   : > { %v4329_v40 = vpop.f32.mrb[15].mxu0 }
 0xa9e   : > { %v2211_v41 = vpop.f32.mrb[40].mxu1 }
 0xa9f   : > { %v4334_v42 = vpop.f32.mrb[41].mxu1  ;;  %v2283_v43 = vpop.f32.mrb[16].mxu0 }
 0xaa0   : > { %v2341_v44 = vmul.f32 0.17677669, %v2283_v43  ;;  %v2214_v45 = vpop.f32.mrb[42].mxu1  ;;  %v4340_v46 = vpop.f32.mrb[17].mxu0 }
 0xaa1   : > { %v4335_v47 = vpop.f32.mrb[43].mxu1  ;;  %v2286_v48 = vpop.f32.mrb[18].mxu0  ;;  %v4516_v46 = vld [vmem:[%s5529_s1] sm:$0xff]  }
 0xaa2   : > { %v2342_v49 = vmul.f32 0.17677669, %v2286_v48  ;;  %v4341_v52 = vpop.f32.mrb[19].mxu0  ;;  %v2345_v54 = vsel %vm5693_vm2, %v2341_v44, -1e+30  ;;  %v4517_v47 = vld [vmem:[%s5529_s1 + $0x8] sm:$0xff]  }
 0xaa3   : > { %v2349_v16 = vsel %vm1552_vm3, %v2345_v54, -inf  ;;  %v4518_v48 = vld [vmem:[%s5529_s1 + $0x10] sm:$0xff]   ;;  %v4520_v52 = vld [vmem:[%s5529_s1 + $0x20] sm:$0xff]  }
 0xaa4   : > { %2350 = vmax.xlane.f32.xlu0 %v2349_v16  ;;  %v2346_v55 = vsel %vm5697_vm4, %v2342_v49, -1e+30  ;;  %v4519_v49 = vld [vmem:[%s5529_s1 + $0x18] sm:$0xff]  }
 0xaa5   : > { %v2352_v56 = vsel %vm1552_vm3, %v2346_v55, -inf }
 0xaa6   : > { %2353 = vmax.xlane.f32.xlu1 %v2352_v56  ;;  %v2334_v58 = vpop.f32.mrb[44].mxu1  ;;  %v4523_v56 = vld [vmem:[%s5529_s1 + $0x38] sm:$0xff]  }
 0xaa7   : > { %v2343_v59 = vmul.f32 0.17677669, %v2334_v58  ;;  %v4346_v60 = vpop.f32.mrb[45].mxu1 }
 0xaa8   : > { %v2337_v62 = vpop.f32.mrb[46].mxu1 }
 0xaa9   : > { %v2344_v63 = vmul.f32 0.17677669, %v2337_v62  ;;  %v4347_v0 = vpop.f32.mrb[47].mxu1  ;;  %v2347_v1 = vsel %vm5693_vm2, %v2343_v59, -1e+30 }
 0xaaa   : > { %v2355_v2 = vsel %vm1552_vm3, %v2347_v1, -inf }
 0xaab   : > { %2356 = vmax.xlane.f32.xlu0 %v2355_v2  ;;  %v2348_v3 = vsel %vm5697_vm4, %v2344_v63, -1e+30 }
 0xaac   : > { %v2358_v4 = vsel %vm1552_vm3, %v2348_v3, -inf }
 0xaaf   : > { %2359 = vmax.xlane.f32.xlu0 %v2358_v4 }
 0xb31   : > { %v2351_v5 = vpop.xlane.xlu0 %2350 }
 0xb32   : > { %v2361_v6 = vsub.f32 %v2345_v54, %v2351_v5  ;;  %v4521_v54 = vld [vmem:[%s5529_s1 + $0x28] sm:$0xff]  }
 0xb33   : > { %v2354_v7 = vpop.xlane.xlu1 %2353 }
 0xb34   : > { %v2365_v8 = vmul.f32 1.442695, %v2361_v6  ;;  %v2362_v9 = vsub.f32 %v2346_v55, %v2354_v7  ;;  %v4522_v55 = vld [vmem:[%s5529_s1 + $0x30] sm:$0xff]  }
 0xb36   : > { %4660 = vpow2.f32 %v2365_v8  ;;  %v2367_v38 = vmul.f32 1.442695, %v2362_v9 }
 0xb38   : > { %4662 = vpow2.f32 %v2367_v38  ;;  %v2357_v10 = vpop.xlane.xlu0 %2356 }
 0xb39   : > { %v2363_v57 = vsub.f32 %v2347_v1, %v2357_v10 }
 0xb3b   : > { %v2369_v11 = vmul.f32 1.442695, %v2363_v57  ;;  %v3971_v57 = vld [vmem:[%s971_s29] ss:$0 sm:$0xff] }
 0xb3c   : > { %v2360_v12 = vpop.xlane.xlu0 %2359 }
 0xb3d   : > { %4664 = vpow2.f32 %v2369_v11  ;;  %v2364_v13 = vsub.f32 %v2348_v3, %v2360_v12 }
 0xb3f   : > { %v2371_v36 = vmul.f32 1.442695, %v2364_v13 }
 0xb40   : > { %v4661_v61 = vpop.eup %4660 }
 0xb41   : > { %4666 = vpow2.f32 %v2371_v36  ;;  %v2373_v14 = vsel %vm1552_vm3, %v4661_v61, 0.0 }
 0xb42   : > { %v4663_v15 = vpop.eup %4662  ;;  %2374 = vadd.xlane.f32.xlu0 %v2373_v14 }
 0xb43   : > { %v2376_v18 = vsel %vm1552_vm3, %v4663_v15, 0.0 }
 0xb44   : > { %2377 = vadd.xlane.f32.xlu1 %v2376_v18 }
 0xb47   : > { %v4665_v19 = vpop.eup %4664 }
 0xb48   : > { %v2379_v35 = vsel %vm1552_vm3, %v4665_v19, 0.0 }
 0xb49   : > { %2380 = vadd.xlane.f32.xlu0 %v2379_v35  ;;  %v4749_v35 = vld [vmem:[#allocation2 + $0x8] sm:$0xff] }
 0xb4b   : > { %v4667_v37 = vpop.eup %4666 }
 0xb4c   : > { %v2382_v20 = vsel %vm1552_vm3, %v4667_v37, 0.0 }
 0xb4d   : > { %2383 = vadd.xlane.f32.xlu1 %v2382_v20  ;;  %v4750_v20 = vld [vmem:[#allocation2 + $0x10] sm:$0xff] }
 0xb5e   : > { %2442 = vrot.lane.b32.xlu1 %v5683_v50, %s5079_s15 }
 0xb5f   : > { %2395 = vrot.lane.b32.xlu0 %v5685_v51, %s5079_s15 }
 0xb62   : > { %1951 = vrot.lane.b32.xlu1 %v5793_v17, %s5079_s15 }
 0xb63   : > { %1955 = vrot.lane.b32.xlu0 %v5803_v31, %s5079_s15 }
 0xb66   : > { %1953 = vrot.lane.b32.xlu1 %v5795_v21, %s5079_s15 }
 0xb67   : > { %2222 = vrot.lane.b32.xlu0 %v5847_v32, %s5078_s0 }
 0xb6a   : > { %1957 = vrot.lane.b32.xlu1 %v5805_v33, %s5079_s15 }
 0xb6b   : > { %2226 = vrot.lane.b32.xlu0 %v2211_v41, %s5078_s0 }
 0xb6e   : > { %2224 = vrot.lane.b32.xlu1 %v5849_v39, %s5078_s0 }
 0xb72   : > { %2228 = vrot.lane.b32.xlu1 %v2214_v45, %s5078_s0 }
 0xbcf   : > { %v2375_v50 = vpop.xlane.xlu0 %2374 }
 0xbd0   : > { %4668 = vrcp.f32 %v2375_v50 }
 0xbd1   : > { %v2378_v51 = vpop.xlane.xlu1 %2377 }
 0xbd2   : > { %4670 = vrcp.f32 %v2378_v51 }
 0xbd6   : > { %v2381_v17 = vpop.xlane.xlu0 %2380 }
 0xbd7   : > { %4672 = vrcp.f32 %v2381_v17  ;;  %v4751_v17 = vld [vmem:[#allocation2 + $0x18] sm:$0xff] }
 0xbda   : > { %v4669_v21 = vpop.eup %4668  ;;  %v2384_v31 = vpop.xlane.xlu1 %2383 }
 0xbdb   : > { %v2396_v22 = vpop.permute.xlu0 %2395  ;;  %4674 = vrcp.f32 %v2384_v31  ;;  %v2389_v33 = vmul.f32 %v4669_v21, %v4661_v61  ;;  %v4524_v31 = vld [vmem:[%s5531_s23] ss:$16 sps:$4 sm:$0xff]  }
 0xbdc   : > { %4349 = vmatpush3.bf16.msra.mxu0 %v2396_v22  ;;  %v4671_v23 = vpop.eup %4670  ;;  %v4526_v22 = vld [vmem:[%s5531_s23 + $0x4] ss:$16 sps:$4 sm:$0xff]  }
 0xbdd   : > { %v2390_v24 = vmul.f32 %v4671_v23, %v4663_v15  ;;  %4360 = vmatprep.subr.bf16.mxu0 %v4516_v46  ;;  %v4748_v15 = vld [vmem:[#allocation2] sm:$0xff]  ;;  %v4527_v23 = vld [vmem:[%s5531_s23 + $0x8] ss:$16 sps:$4 sm:$0xff]  }
 0xbde   : > { %v2443_v25 = vpop.permute.xlu1 %2442 }
 0xbdf   : > { %v1956_v26 = vpop.permute.xlu0 %1955  ;;  %4355 = vmatpush3.bf16.msra.mxu1 %v2443_v25  ;;  %v2393_v27 = vpack.c.bf16 %v2390_v24, %v2389_v33  ;;  %v4529_v33 = vld [vmem:[%s5531_s23 + $0xc] ss:$16 sps:$4 sm:$0xff]   ;;  %v4532_v24 = vld [vmem:[%s5531_s23 + $0x24] ss:$16 sps:$4 sm:$0xff]  }
 0xbe0   : > { %1966 = vst.msk [vmem:[#allocation3 + $0x10] sm:$0xff] %vm1963_vm5, %v1956_v26  ;;  %2922 = vmatprep.subr.bf16.mxu1 %v4526_v22  ;;  %v4535_v25 = vld [vmem:[%s5531_s23 + $0x2c] ss:$16 sps:$4 sm:$0xff]   ;;  %v4530_v26 = vld [vmem:[%s5531_s23 + $0x20] ss:$16 sps:$4 sm:$0xff]  }
 0xbe1   : > { %4351 = vmatmul.mubr.msk.bf16.vlgmr.msra.gmra.mrb[20].mxu0 %vm1552_vm3, %v2393_v27  ;;  %v4673_v30 = vpop.eup %4672  ;;  %v4533_v27 = vld [vmem:[%s5531_s23 + $0x28] ss:$16 sps:$4 sm:$0xff]  }
 0xbe2   : > { %v1952_v28 = vpop.permute.xlu1 %1951  ;;  %v2391_v34 = vmul.f32 %v4673_v30, %v4665_v19  ;;  %4361 = vmatpush3.bf16.msra.mxu0 %v4516_v46 }
 0xbe3   : > { %v2223_v29 = vpop.permute.xlu0 %2222  ;;  %1964 = vst.msk [vmem:[#allocation3] sm:$0xff] %vm1963_vm5, %v1952_v28  ;;  %4362 = vmatprep.subr.bf16.mxu0 %v4517_v47 }
 0xbe4   : > { %2235 = vst.msk [vmem:[#allocation3] sm:$0xff] %vm2234_vm6, %v2223_v29 }
 0xbe5   : > { %v4675_v32 = vpop.eup %4674 }
 0xbe6   : > { %v2392_v39 = vmul.f32 %v4675_v32, %v4667_v37  ;;  %v1954_v40 = vpop.permute.xlu1 %1953  ;;  %4363 = vmatpush3.bf16.msra.mxu0 %v4517_v47 }
 0xbe7   : > { %v2227_v41 = vpop.permute.xlu0 %2226  ;;  %1965 = vst.msk [vmem:[#allocation3 + $0x8] sm:$0xff] %vm1963_vm5, %v1954_v40  ;;  %4364 = vmatprep.subr.bf16.mxu0 %v4518_v48 }
 0xbe8   : > { %2237 = vst.msk [vmem:[#allocation3 + $0x10] sm:$0xff] %vm2234_vm6, %v2227_v41  ;;  %v2394_v42 = vpack.c.bf16 %v2392_v39, %v2391_v34 }
 0xbea   : > { %v1958_v43 = vpop.permute.xlu1 %1957  ;;  %4357 = vmatmul.mubr.msk.bf16.vlgmr.msra.gmra.mrb[48].mxu1 %vm1552_vm3, %v2394_v42  ;;  %4365 = vmatpush3.bf16.msra.mxu0 %v4518_v48 }
 0xbeb   : > { %1967 = vst.msk [vmem:[#allocation3 + $0x18] sm:$0xff] %vm1963_vm5, %v1958_v43  ;;  %4366 = vmatprep.subr.bf16.mxu0 %v4519_v49  ;;  %2923 = vmatpush1.bf16.msra.mxu1 %v4524_v31 }
 0xbec   : > { %2924 = vmatprep.subr.bf16.mxu1 %v4532_v24 }
 0xbee   : > { %v2225_v44 = vpop.permute.xlu1 %2224  ;;  %4367 = vmatpush3.bf16.msra.mxu0 %v4519_v49 }
 0xbef   : > { %2236 = vst.msk [vmem:[#allocation3 + $0x8] sm:$0xff] %vm2234_vm6, %v2225_v44  ;;  %4368 = vmatprep.subr.bf16.mxu0 %v4520_v52  ;;  %2925 = vmatpush1.bf16.msra.mxu1 %v4530_v26 }
 0xbf2   : > { %v2229_v45 = vpop.permute.xlu1 %2228  ;;  %4369 = vmatpush3.bf16.msra.mxu0 %v4520_v52  ;;  %v4538_v52 = vld [vmem:[%s5531_s23 + $0x44] ss:$16 sps:$4 sm:$0xff]  }
 0xbf3   : > { %2238 = vst.msk [vmem:[#allocation3 + $0x18] sm:$0xff] %vm2234_vm6, %v2229_v45  ;;  %4370 = vmatprep.subr.bf16.mxu0 %v4521_v54  ;;  %2926 = vmatprep.subr.bf16.mxu1 %v4538_v52  ;;  %v4573_v52 = vld [vmem:[%s5583_s9 + $0xc0] sm:$0xff]  }
 0xbf6   : > { %4371 = vmatpush3.bf16.msra.mxu0 %v4521_v54  ;;  %v4541_v54 = vld [vmem:[%s5531_s23 + $0x4c] ss:$16 sps:$4 sm:$0xff]  }
 0xbf7   : > { %4372 = vmatprep.subr.bf16.mxu0 %v4522_v55 }
 0xbfa   : > { %4373 = vmatpush3.bf16.msra.mxu0 %v4522_v55  ;;  %v4539_v55 = vld [vmem:[%s5531_s23 + $0x48] ss:$16 sps:$4 sm:$0xff]  }
 0xbfb   : > { %4374 = vmatprep.subr.bf16.mxu0 %v4523_v56 }
 0xbfe   : > { %4375 = vmatpush3.bf16.msra.mxu0 %v4523_v56  ;;  %v4544_v56 = vld [vmem:[%s5531_s23 + $0x64] ss:$16 sps:$4 sm:$0xff]  }
 0xbff   : > { %2975 = vmatprep.subr.bf16.mxu0 %v4529_v33  ;;  %v3980_v33 = vld [vmem:[%s974_s2] ss:$0 sm:$0xff] }
 0xcb4   : > { %v2435_v16 = vpop.f32.mrb[20].mxu0 }
 0xcb5   : > { %2493 = vrot.lane.b32.xlu0 %v2435_v16, %s5077_s5  ;;  %v4352_v58 = vpop.f32.mrb[21].mxu0  ;;  %v4536_v16 = vld [vmem:[%s5531_s23 + $0x40] ss:$16 sps:$4 sm:$0xff]  }
 0xcb6   : > { %v2438_v59 = vpop.f32.mrb[22].mxu0  ;;  %2927 = vmatpush1.bf16.msra.mxu1 %v4536_v16  ;;  %v4547_v58 = vld [vmem:[%s5531_s23 + $0x6c] ss:$16 sps:$4 sm:$0xff]  }
 0xcb7   : > { %2495 = vrot.lane.b32.xlu1 %v2438_v59, %s5077_s5  ;;  %v4353_v60 = vpop.f32.mrb[23].mxu0  ;;  %v4542_v59 = vld [vmem:[%s5531_s23 + $0x60] ss:$16 sps:$4 sm:$0xff]   ;;  %2928 = vmatprep.subr.bf16.mxu1 %v4544_v56  ;;  %v4576_v16 = vld [vmem:[%s5583_s9 + $0x48] sm:$0xff]  }
 0xcb8   : > { %v4545_v60 = vld [vmem:[%s5531_s23 + $0x68] ss:$16 sps:$4 sm:$0xff]  }
 0xcb9   : > { %v4578_v56 = vld [vmem:[%s5583_s9 + $0x8] sm:$0xff]  }
 0xcba   : > { %2929 = vmatpush1.bf16.msra.mxu1 %v4542_v59  ;;  %v4580_v59 = vld [vmem:[%s5583_s9 + $0x50] sm:$0xff]  }
 0xcbd   : > { %v2482_v62 = vpop.f32.mrb[48].mxu1 }
 0xcbe   : > { %2497 = vrot.lane.b32.xlu0 %v2482_v62, %s5077_s5  ;;  %v4358_v63 = vpop.f32.mrb[49].mxu1  ;;  %v4550_v62 = vld [vmem:[%s5531_s23 + $0x84] ss:$16 sps:$4 sm:$0xff]  }
 0xcbf   : > { %v2485_v0 = vpop.f32.mrb[50].mxu1  ;;  %v4553_v63 = vld [vmem:[%s5531_s23 + $0x8c] ss:$16 sps:$4 sm:$0xff]   ;;  %2930 = vmatprep.subr.bf16.mxu1 %v4550_v62  ;;  %v4582_v62 = vld [vmem:[%s5583_s9 + $0x10] sm:$0xff]  }
 0xcc0   : > { %2499 = vrot.lane.b32.xlu1 %v2485_v0, %s5077_s5  ;;  %v4359_v1 = vpop.f32.mrb[51].mxu1  ;;  %v4548_v0 = vld [vmem:[%s5531_s23 + $0x80] ss:$16 sps:$4 sm:$0xff]  }
 0xcc1   : > { %v4551_v1 = vld [vmem:[%s5531_s23 + $0x88] ss:$16 sps:$4 sm:$0xff]   ;;  %2931 = vmatpush1.bf16.msra.mxu1 %v4548_v0 }
 0xcc2   : > { %v4584_v0 = vld [vmem:[%s5583_s9 + $0x58] sm:$0xff]  }
 0xd27   : > { %v2494_v2 = vpop.permute.xlu0 %2493 }
 0xd28   : > { %2506 = vst.msk [vmem:[#allocation3] sm:$0xff] %vm2505_vm7, %v2494_v2  ;;  %v4556_v2 = vld [vmem:[%s5531_s23 + $0xa4] ss:$16 sps:$4 sm:$0xff]  }
 0xd29   : > { %v2496_v3 = vpop.permute.xlu1 %2495  ;;  %2932 = vmatprep.subr.bf16.mxu1 %v4556_v2  ;;  %v4586_v2 = vld [vmem:[%s5583_s9 + $0x18] sm:$0xff]  }
 0xd2a   : > { %2507 = vst.msk [vmem:[#allocation3 + $0x8] sm:$0xff] %vm2505_vm7, %v2496_v3  ;;  %v4559_v3 = vld [vmem:[%s5531_s23 + $0xac] ss:$16 sps:$4 sm:$0xff]  }
 0xd2f   : > { %v2510_v5 = vld [vmem:[#allocation3] sm:$0xff] }
 0xd30   : > { %v2498_v4 = vpop.permute.xlu0 %2497 }
 0xd31   : > { %2508 = vst.msk [vmem:[#allocation3 + $0x10] sm:$0xff] %vm2505_vm7, %v2498_v4  ;;  %v2511_v6 = vld [vmem:[#allocation3 + $0x8] sm:$0xff]  ;;  %v4554_v4 = vld [vmem:[%s5531_s23 + $0xa0] ss:$16 sps:$4 sm:$0xff]  }
 0xd32   : > { %v2500_v7 = vpop.permute.xlu1 %2499  ;;  %v2514_v8 = vpack.c.bf16 %v2511_v6, %v2510_v5  ;;  %v4557_v5 = vld [vmem:[%s5531_s23 + $0xa8] ss:$16 sps:$4 sm:$0xff]   ;;  %2933 = vmatpush1.bf16.msra.mxu1 %v4554_v4  ;;  %v4562_v6 = vld [vmem:[%s5531_s23 + $0xc4] ss:$16 sps:$4 sm:$0xff]  }
 0xd33   : > { %2509 = vst.msk [vmem:[#allocation3 + $0x18] sm:$0xff] %vm2505_vm7, %v2500_v7  ;;  %v4565_v7 = vld [vmem:[%s5531_s23 + $0xcc] ss:$16 sps:$4 sm:$0xff]   ;;  %2934 = vmatprep.subr.bf16.mxu1 %v4562_v6  ;;  %v4588_v4 = vld [vmem:[%s5583_s9 + $0x60] sm:$0xff]  }
 0xd34   : > { %4376 = vmatprep.mubr.bf16.mxu0 %v2514_v8  ;;  %v4560_v8 = vld [vmem:[%s5531_s23 + $0xc0] ss:$16 sps:$4 sm:$0xff]  }
 0xd35   : > { %v4590_v6 = vld [vmem:[%s5583_s9 + $0x20] sm:$0xff]  }
 0xd36   : > { %2935 = vmatpush1.bf16.msra.mxu1 %v4560_v8  ;;  %v4592_v8 = vld [vmem:[%s5583_s9 + $0x68] sm:$0xff]  }
 0xd38   : > { %v2512_v9 = vld [vmem:[#allocation3 + $0x10] sm:$0xff] }
 0xd3a   : > { %v2513_v38 = vld [vmem:[#allocation3 + $0x18] sm:$0xff] }
 0xd3b   : > { %v2515_v10 = vpack.c.bf16 %v2513_v38, %v2512_v9  ;;  %v4563_v9 = vld [vmem:[%s5531_s23 + $0xc8] ss:$16 sps:$4 sm:$0xff]   ;;  %v4568_v38 = vld [vmem:[%s5531_s23 + $0xe4] ss:$16 sps:$4 sm:$0xff]  }
 0xd3c   : > { %2936 = vmatprep.subr.bf16.mxu1 %v4568_v38  ;;  %v4594_v38 = vld [vmem:[%s5583_s9 + $0x28] sm:$0xff]  }
 0xd3d   : > { %4377 = vmatmul.mubr.bf16.vlgmr.msra.gmra.mrb[24].mxu0 %v2515_v10  ;;  %v4571_v10 = vld [vmem:[%s5531_s23 + $0xec] ss:$16 sps:$4 sm:$0xff]  }
 0xd3e   : > { %2976 = vmatpush1.bf16.msra.mxu0 %v4527_v23 }
 0xd3f   : > { %2977 = vmatprep.subr.bf16.mxu0 %v4535_v25 }
 0xd42   : > { %2978 = vmatpush1.bf16.msra.mxu0 %v4533_v27 }
 0xd43   : > { %2979 = vmatprep.subr.bf16.mxu0 %v4541_v54  ;;  %v4575_v54 = vld [vmem:[%s5583_s9 + $0x80] sm:$0xff]  }
 0xd46   : > { %2980 = vmatpush1.bf16.msra.mxu0 %v4539_v55  ;;  %v4577_v55 = vld [vmem:[%s5583_s9 + $0xc8] sm:$0xff]  }
 0xd47   : > { %2981 = vmatprep.subr.bf16.mxu0 %v4547_v58  ;;  %v4579_v58 = vld [vmem:[%s5583_s9 + $0x88] sm:$0xff]  }
 0xd4a   : > { %2982 = vmatpush1.bf16.msra.mxu0 %v4545_v60  ;;  %v4581_v60 = vld [vmem:[%s5583_s9 + $0xd0] sm:$0xff]  }
 0xd4b   : > { %2983 = vmatprep.subr.bf16.mxu0 %v4553_v63  ;;  %v4583_v63 = vld [vmem:[%s5583_s9 + $0x90] sm:$0xff]  }
 0xd4e   : > { %2984 = vmatpush1.bf16.msra.mxu0 %v4551_v1  ;;  %v4585_v1 = vld [vmem:[%s5583_s9 + $0xd8] sm:$0xff]  }
 0xd4f   : > { %2985 = vmatprep.subr.bf16.mxu0 %v4559_v3  ;;  %v4587_v3 = vld [vmem:[%s5583_s9 + $0x98] sm:$0xff]  }
 0xd52   : > { %2986 = vmatpush1.bf16.msra.mxu0 %v4557_v5  ;;  %v4589_v5 = vld [vmem:[%s5583_s9 + $0xe0] sm:$0xff]  }
 0xd53   : > { %2987 = vmatprep.subr.bf16.mxu0 %v4565_v7  ;;  %v4591_v7 = vld [vmem:[%s5583_s9 + $0xa0] sm:$0xff]  }
 0xd56   : > { %2988 = vmatpush1.bf16.msra.mxu0 %v4563_v9  ;;  %v4593_v9 = vld [vmem:[%s5583_s9 + $0xe8] sm:$0xff]  }
 0xd57   : > { %2989 = vmatprep.subr.bf16.mxu0 %v4571_v10  ;;  %v4595_v10 = vld [vmem:[%s5583_s9 + $0xa8] sm:$0xff]  }
 0xe10   : > { %v4378_v11 = vpop.f32.mrb[24].mxu0 }
 0xe11   : > { %v2621_v12 = vpop.f32.mrb[25].mxu0  ;;  %v2630_v14 = vadd.f32 %v4378_v11, %v3971_v57  ;;  %v4569_v11 = vld [vmem:[%s5531_s23 + $0xe8] ss:$16 sps:$4 sm:$0xff]  }
 0xe12   : > { %v2622_v13 = vadd.f32 %v3971_v57, %v2621_v12  ;;  %v4379_v36 = vpop.f32.mrb[26].mxu0  ;;  %v5080_v12 = vmov 0   ;;  %2990 = vmatpush1.bf16.msra.mxu0 %v4569_v11  ;;  %v4597_v11 = vld [vmem:[%s5583_s9 + $0xf0] sm:$0xff]  }
 0xe13   : > { %v2624_v61 = vpop.f32.mrb[27].mxu0  ;;  %v5917_v50 = vadd.f32 %v4750_v20, %v2630_v14  ;;  %v2633_v51 = vadd.f32 %v4379_v36, %v3971_v57  ;;  %2954 = vmatprep.mubr.bf16.mxu1 %v5080_v12  ;;  %3007 = vmatprep.mubr.bf16.mxu0 %v5080_v12 }
 0xe14   : > { %v5912_v18 = vadd.f32 %v4748_v15, %v2622_v13  ;;  %v2625_v19 = vadd.f32 %v3971_v57, %v2624_v61  ;;  %v4566_v57 = vld [vmem:[%s5531_s23 + $0xe0] ss:$16 sps:$4 sm:$0xff]   ;;  %4176 = vmatprep.subr.bf16.mxu0 %v4573_v52 }
 0xe15   : > { %v5921_v21 = vadd.f32 %v4751_v17, %v2633_v51  ;;  %2937 = vmatpush1.bf16.msra.mxu1 %v4566_v57  ;;  %v4596_v57 = vld [vmem:[%s5583_s9 + $0x70] sm:$0xff]  }
 0xe16   : > { %v5914_v37 = vadd.f32 %v4749_v35, %v2625_v19  ;;  %2642 = vadd.xlane.f32.xlu0 %v5912_v18 }
 0xe18   : > { %2644 = vadd.xlane.f32.xlu1 %v5914_v37 }
 0xe1a   : > { %2646 = vadd.xlane.f32.xlu0 %v5917_v50 }
 0xe1e   : > { %2648 = vadd.xlane.f32.xlu0 %v5921_v21 }
 0xea3   : > { %v2643_v28 = vpop.xlane.xlu0 %2642 }
 0xea4   : > { %v2650_v29 = vmul.f32 0.0078125, %v2643_v28 }
 0xea5   : > { %v2645_v30 = vpop.xlane.xlu1 %2644 }
 0xea6   : > { %v5933_v32 = vsub.f32 %v5912_v18, %v2650_v29  ;;  %v2651_v34 = vmul.f32 0.0078125, %v2645_v30  ;;  %v3981_v29 = vld [vmem:[%s977_s20] ss:$0 sm:$0xff] }
 0xea7   : > { %v2647_v39 = vpop.xlane.xlu0 %2646 }
 0xea8   : > { %v5936_v40 = vsub.f32 %v5914_v37, %v2651_v34  ;;  %v2652_v41 = vmul.f32 0.0078125, %v2647_v39  ;;  %v2658_v42 = vmul.f32 %v5933_v32, %v5933_v32 }
 0xeaa   : > { %v5941_v43 = vsub.f32 %v5917_v50, %v2652_v41  ;;  %2662 = vadd.xlane.f32.xlu0 %v2658_v42  ;;  %v2659_v44 = vmul.f32 %v5936_v40, %v5936_v40 }
 0xeab   : > { %v2649_v45 = vpop.xlane.xlu0 %2648 }
 0xeac   : > { %v2653_v46 = vmul.f32 0.0078125, %v2649_v45  ;;  %2664 = vadd.xlane.f32.xlu1 %v2659_v44  ;;  %v2660_v47 = vmul.f32 %v5941_v43, %v5941_v43 }
 0xeae   : > { %v5948_v48 = vsub.f32 %v5921_v21, %v2653_v46  ;;  %2666 = vadd.xlane.f32.xlu0 %v2660_v47 }
 0xeb0   : > { %v2661_v49 = vmul.f32 %v5948_v48, %v5948_v48 }
 0xeb2   : > { %2668 = vadd.xlane.f32.xlu1 %v2661_v49  ;;  %v4572_v49 = vld [vmem:[%s5583_s9 + $0x40] sm:$0xff]  }
 0xeb3   : > { %4148 = vmatprep.subr.bf16.mxu1 %v4572_v49 }
 0xf37   : > { %v2663_v13 = vpop.xlane.xlu0 %2662 }
 0xf38   : > { %v2670_v36 = vmul.f32 0.0078125, %v2663_v13  ;;  %v4599_v13 = vld [vmem:[%s5583_s9 + $0xb0] sm:$0xff]  }
 0xf39   : > { %v2665_v61 = vpop.xlane.xlu1 %2664 }
 0xf3a   : > { %v2674_v14 = vadd.f32 1e-05, %v2670_v36  ;;  %v2671_v15 = vmul.f32 0.0078125, %v2665_v61  ;;  %v4600_v36 = vld [vmem:[%s5583_s9 + $0x78] sm:$0xff]  }
 0xf3b   : > { %v2667_v19 = vpop.xlane.xlu0 %2666  ;;  %v4601_v61 = vld [vmem:[%s5583_s9 + $0xf8] sm:$0xff]  }
 0xf3c   : > { %4676 = vrsqrt.f32 %v2674_v14  ;;  %v2675_v35 = vadd.f32 1e-05, %v2671_v15  ;;  %v2672_v20 = vmul.f32 0.0078125, %v2667_v19  ;;  %v4602_v14 = vld [vmem:[%s5583_s9 + $0x38] sm:$0xff]   ;;  %v2744_v19 = vsub.s32 0, %v5689_v53 }
 0xf3d   : > { %v4603_v15 = vld [vmem:[%s5583_s9 + $0xb8] sm:$0xff]  }
 0xf3e   : > { %4678 = vrsqrt.f32 %v2675_v35  ;;  %v2676_v51 = vadd.f32 1e-05, %v2672_v20  ;;  %v2752_v35 = vsub.s32 2, %v5689_v53  ;;  %v2740_v20 = vld [vmem:[%s5581_s3] sm:$0xf] }
 0xf3f   : > { %v2669_v17 = vpop.xlane.xlu1 %2668 }
 0xf40   : > { %4680 = vrsqrt.f32 %v2676_v51  ;;  %v2673_v31 = vmul.f32 0.0078125, %v2669_v17  ;;  %v2748_v51 = vsub.s32 1, %v5689_v53  ;;  %v2756_v17 = vsub.s32 3, %v5689_v53 }
 0xf42   : > { %v2677_v22 = vadd.f32 1e-05, %v2673_v31  ;;  %v2745_v31 = vrot.slane %v2740_v20, %v2744_v19 }
 0xf44   : > { %4682 = vrsqrt.f32 %v2677_v22  ;;  %v6027_v22 = vrot.slane %v2740_v20, %v2752_v35 }
 0xf46   : > { %v4677_v23 = vpop.eup %4676 }
 0xf47   : > { %v2682_v24 = vmul.f32 %v4677_v23, %v5933_v32  ;;  %v6029_v23 = vrot.slane %v2740_v20, %v2748_v51 }
 0xf48   : > { %v4679_v25 = vpop.eup %4678 }
 0xf49   : > { %v2683_v26 = vmul.f32 %v4679_v25, %v5936_v40  ;;  %v2692_v27 = vmul.f32 %v3980_v33, %v2682_v24 }
 0xf4a   : > { %v4681_v28 = vpop.eup %4680 }
 0xf4b   : > { %v2693_v30 = vmul.f32 %v3980_v33, %v2683_v26  ;;  %v2702_v34 = vadd.f32 %v3981_v29, %v2692_v27  ;;  %v2684_v41 = vmul.f32 %v4681_v28, %v5941_v43 }
 0xf4d   : > { %v2703_v39 = vadd.f32 %v3981_v29, %v2693_v30  ;;  %v2694_v44 = vmul.f32 %v3980_v33, %v2684_v41 }
 0xf4e   : > { %v4683_v42 = vpop.eup %4682 }
 0xf4f   : > { %v2706_v32 = vpack.c.bf16 %v2703_v39, %v2702_v34  ;;  %v2685_v40 = vmul.f32 %v4683_v42, %v5948_v48  ;;  %v2704_v47 = vadd.f32 %v3981_v29, %v2694_v44  ;;  %v4574_v48 = vld [vmem:[%s5583_s9] sm:$0xff]  }
 0xf51   : > { %2955 = vmatmul.mubr.bf16.vlgmr.msra.gmra.mrb[52].mxu1 %v2706_v32  ;;  %3008 = vmatmul.mubr.bf16.vlgmr.msra.gmra.mrb[28].mxu0 %v2706_v32  ;;  %v2695_v45 = vmul.f32 %v3980_v33, %v2685_v40  ;;  %v6031_v33 = vrot.slane %v2740_v20, %v2756_v17 }
 0xf52   : > { %2964 = vmatprep.mubr.bf16.mxu1 %v5080_v12  ;;  %3017 = vmatprep.mubr.bf16.mxu0 %v5080_v12  ;;  %v4598_v12 = vld [vmem:[%s5583_s9 + $0x30] sm:$0xff]  }
 0xf53   : > { %v2705_v46 = vadd.f32 %v3981_v29, %v2695_v45  ;;  %4149 = vmatpush3.bf16.msra.mxu1 %v4574_v48  ;;  %4177 = vmatpush3.bf16.msra.mxu0 %v4575_v54 }
 0xf54   : > { %4150 = vmatprep.subr.bf16.mxu1 %v4576_v16  ;;  %4178 = vmatprep.subr.bf16.mxu0 %v4577_v55 }
 0xf55   : > { %v2707_v43 = vpack.c.bf16 %v2705_v46, %v2704_v47 }
 0xf57   : > { %4151 = vmatpush3.bf16.msra.mxu1 %v4578_v56  ;;  %4179 = vmatpush3.bf16.msra.mxu0 %v4579_v58 }
 0xf58   : > { %4152 = vmatprep.subr.bf16.mxu1 %v4580_v59  ;;  %4180 = vmatprep.subr.bf16.mxu0 %v4581_v60 }
 0xf59   : > { %2965 = vmatmul.mubr.bf16.gmra.mrb[56].mxu1 %v2707_v43  ;;  %3018 = vmatmul.mubr.bf16.gmra.mrb[32].mxu0 %v2707_v43 }
 0xf5b   : > { %4153 = vmatpush3.bf16.msra.mxu1 %v4582_v62  ;;  %4181 = vmatpush3.bf16.msra.mxu0 %v4583_v63 }
 0xf5c   : > { %4154 = vmatprep.subr.bf16.mxu1 %v4584_v0  ;;  %4182 = vmatprep.subr.bf16.mxu0 %v4585_v1 }
 0xf5f   : > { %4155 = vmatpush3.bf16.msra.mxu1 %v4586_v2  ;;  %4183 = vmatpush3.bf16.msra.mxu0 %v4587_v3 }
 0xf60   : > { %4156 = vmatprep.subr.bf16.mxu1 %v4588_v4  ;;  %4184 = vmatprep.subr.bf16.mxu0 %v4589_v5 }
 0xf63   : > { %4157 = vmatpush3.bf16.msra.mxu1 %v4590_v6  ;;  %4185 = vmatpush3.bf16.msra.mxu0 %v4591_v7 }
 0xf64   : > { %4158 = vmatprep.subr.bf16.mxu1 %v4592_v8  ;;  %4186 = vmatprep.subr.bf16.mxu0 %v4593_v9 }
 0xf67   : > { %4159 = vmatpush3.bf16.msra.mxu1 %v4594_v38  ;;  %4187 = vmatpush3.bf16.msra.mxu0 %v4595_v10 }
 0xf68   : > { %4160 = vmatprep.subr.bf16.mxu1 %v4596_v57  ;;  %4188 = vmatprep.subr.bf16.mxu0 %v4597_v11 }
 0xf6b   : > { %4161 = vmatpush3.bf16.msra.mxu1 %v4598_v12  ;;  %4189 = vmatpush3.bf16.msra.mxu0 %v4599_v13 }
 0xf6c   : > { %4162 = vmatprep.subr.bf16.mxu1 %v4600_v36  ;;  %4190 = vmatprep.subr.bf16.mxu0 %v4601_v61 }
 0xf6f   : > { %4163 = vmatpush3.bf16.msra.mxu1 %v4602_v14  ;;  %4191 = vmatpush3.bf16.msra.mxu0 %v4603_v15 }
0x1024   : > { %v2956_v24 = vpop.f32.mrb[52].mxu1  ;;  %v3009_v25 = vpop.f32.mrb[28].mxu0 }
0x1025   : > { %v6033_v26 = vadd.f32 %v2956_v24, %v2745_v31  ;;  %v6036_v27 = vadd.f32 %v3009_v25, %v6027_v22  ;;  %v2958_v28 = vpop.f32.mrb[53].mxu1  ;;  %v3011_v29 = vpop.f32.mrb[29].mxu0 }
0x1026   : > { %v6039_v30 = vadd.f32 %v2958_v28, %v6029_v23  ;;  %v6042_v53 = vadd.f32 %v3011_v29, %v6031_v33  ;;  %v2960_v34 = vpop.f32.mrb[54].mxu1  ;;  %v3013_v39 = vpop.f32.mrb[30].mxu0 }
0x1027   : > { %v4014_v41 = vmul.f32 -1.702, %v6033_v26  ;;  %v4016_v42 = vmul.f32 -1.702, %v6036_v27  ;;  %v6046_v32 = vadd.f32 %v2960_v34, %v2745_v31  ;;  %v6049_v40 = vadd.f32 %v3013_v39, %v6027_v22  ;;  %v2962_v44 = vpop.f32.mrb[55].mxu1  ;;  %v3015_v45 = vpop.f32.mrb[31].mxu0 }
0x1028   : > { %v4015_v46 = vmul.f32 -1.702, %v6039_v30  ;;  %v4017_v47 = vmul.f32 -1.702, %v6042_v53  ;;  %v6054_v43 = vadd.f32 %v2962_v44, %v6029_v23  ;;  %v6057_v49 = vadd.f32 %v3015_v45, %v6031_v33 }
0x1029   : > { %v3060_v52 = vmul.f32 1.442695, %v4014_v41  ;;  %v3064_v48 = vmul.f32 1.442695, %v4016_v42  ;;  %v4018_v54 = vmul.f32 -1.702, %v6046_v32 }
0x102a   : > { %v3062_v16 = vmul.f32 1.442695, %v4015_v46  ;;  %v3066_v55 = vmul.f32 1.442695, %v4017_v47  ;;  %v4020_v56 = vmul.f32 -1.702, %v6049_v40 }
0x102b   : > { %4684 = vpow2.f32 %v3060_v52  ;;  %v3068_v58 = vmul.f32 1.442695, %v4018_v54  ;;  %v4019_v59 = vmul.f32 -1.702, %v6054_v43  ;;  %v4021_v60 = vmul.f32 -1.702, %v6057_v49 }
0x102c   : > { %4686 = vpow2.f32 %v3064_v48  ;;  %v3072_v62 = vmul.f32 1.442695, %v4020_v56  ;;  %v2966_v63 = vpop.f32.mrb[56].mxu1  ;;  %v3019_v0 = vpop.f32.mrb[32].mxu0 }
0x102d   : > { %4688 = vpow2.f32 %v3062_v16  ;;  %v3070_v1 = vmul.f32 1.442695, %v4019_v59  ;;  %v6063_v2 = vadd.f32 %v2966_v63, %v2745_v31  ;;  %v2968_v3 = vpop.f32.mrb[57].mxu1  ;;  %v3021_v4 = vpop.f32.mrb[33].mxu0  ;;  %v3074_v5 = vmul.f32 1.442695, %v4021_v60 }
0x102e   : > { %4690 = vpow2.f32 %v3066_v55  ;;  %v6066_v6 = vadd.f32 %v3019_v0, %v6027_v22  ;;  %v6069_v7 = vadd.f32 %v2968_v3, %v6029_v23  ;;  %v2970_v8 = vpop.f32.mrb[58].mxu1  ;;  %v3023_v9 = vpop.f32.mrb[34].mxu0  ;;  %v6078_v35 = vadd.f32 %v3021_v4, %v6031_v33 }
0x102f   : > { %4692 = vpow2.f32 %v3068_v58  ;;  %v4022_v38 = vmul.f32 -1.702, %v6063_v2  ;;  %v6072_v10 = vadd.f32 %v2970_v8, %v2745_v31  ;;  %v2972_v57 = vpop.f32.mrb[59].mxu1  ;;  %v3025_v11 = vpop.f32.mrb[35].mxu0  ;;  %v6082_v41 = vadd.f32 %v3023_v9, %v6027_v22 }
0x1030   : > { %4694 = vpow2.f32 %v3072_v62  ;;  %v4024_v12 = vmul.f32 -1.702, %v6066_v6  ;;  %v4023_v13 = vmul.f32 -1.702, %v6069_v7  ;;  %v4025_v29 = vmul.f32 -1.702, %v6078_v35 }
0x1031   : > { %4696 = vpow2.f32 %v3070_v1  ;;  %v3076_v36 = vmul.f32 1.442695, %v4022_v38  ;;  %v4026_v61 = vmul.f32 -1.702, %v6072_v10  ;;  %v6085_v45 = vadd.f32 %v2972_v57, %v6029_v23 }
0x1032   : > { %4698 = vpow2.f32 %v3074_v5  ;;  %v3080_v14 = vmul.f32 1.442695, %v4024_v12  ;;  %v3078_v15 = vmul.f32 1.442695, %v4023_v13  ;;  %v6088_v52 = vadd.f32 %v3025_v11, %v6031_v33 }
0x1033   : > { %4700 = vpow2.f32 %v3076_v36  ;;  %v3084_v19 = vmul.f32 1.442695, %v4026_v61  ;;  %v3082_v16 = vmul.f32 1.442695, %v4025_v29  ;;  %v4028_v56 = vmul.f32 -1.702, %v6082_v41 }
0x1034   : > { %4702 = vpow2.f32 %v3080_v14  ;;  %v4027_v23 = vmul.f32 -1.702, %v6085_v45  ;;  %v4029_v60 = vmul.f32 -1.702, %v6088_v52 }
0x1035   : > { %v4685_v20 = vpop.eup %4684  ;;  %4704 = vpow2.f32 %v3078_v15  ;;  %v3088_v63 = vmul.f32 1.442695, %v4028_v56 }
0x1036   : > { %v4687_v51 = vpop.eup %4686  ;;  %v3092_v17 = vadd.f32 1.0, %v4685_v20  ;;  %4706 = vpow2.f32 %v3084_v19  ;;  %v3086_v3 = vmul.f32 1.442695, %v4027_v23  ;;  %v3090_v5 = vmul.f32 1.442695, %v4029_v60 }
0x1037   : > { %v4689_v31 = vpop.eup %4688  ;;  %v3094_v24 = vadd.f32 1.0, %v4687_v51 }
0x1038   : > { %v4691_v25 = vpop.eup %4690  ;;  %4708 = vrcp.f32 %v3092_v17  ;;  %v3093_v28 = vadd.f32 1.0, %v4689_v31 }
0x1039   : > { %v4693_v34 = vpop.eup %4692  ;;  %4710 = vrcp.f32 %v3094_v24  ;;  %v3095_v39 = vadd.f32 1.0, %v4691_v25 }
0x103a   : > { %v4695_v42 = vpop.eup %4694  ;;  %4712 = vrcp.f32 %v3093_v28  ;;  %v3096_v44 = vadd.f32 1.0, %v4693_v34 }
0x103b   : > { %v4697_v46 = vpop.eup %4696  ;;  %4714 = vrcp.f32 %v3095_v39  ;;  %v3098_v47 = vadd.f32 1.0, %v4695_v42 }
0x103c   : > { %v4699_v48 = vpop.eup %4698  ;;  %4716 = vrcp.f32 %v3096_v44  ;;  %v3097_v54 = vadd.f32 1.0, %v4697_v46 }
0x103d   : > { %v4701_v55 = vpop.eup %4700  ;;  %4718 = vrcp.f32 %v3098_v47  ;;  %v3099_v22 = vadd.f32 1.0, %v4699_v48 }
0x103e   : > { %4720 = vrcp.f32 %v3097_v54  ;;  %v3100_v58 = vadd.f32 1.0, %v4701_v55  ;;  %v4703_v59 = vpop.eup %4702 }
0x103f   : > { %4722 = vrcp.f32 %v3099_v22  ;;  %v4705_v62 = vpop.eup %4704  ;;  %v3102_v24 = vadd.f32 1.0, %v4703_v59 }
0x1040   : > { %4724 = vpow2.f32 %v3082_v16  ;;  %v4707_v33 = vpop.eup %4706  ;;  %v3101_v28 = vadd.f32 1.0, %v4705_v62 }
0x1041   : > { %4726 = vrcp.f32 %v3100_v58  ;;  %v3104_v1 = vadd.f32 1.0, %v4707_v33 }
0x1042   : > { %v4709_v0 = vpop.eup %4708 }
0x1043   : > { %v4711_v4 = vpop.eup %4710  ;;  %4728 = vrcp.f32 %v3104_v1  ;;  %v3140_v11 = vmul.f32 %v4709_v0, %v6033_v26 }
0x1044   : > { %v4713_v8 = vpop.eup %4712  ;;  %4730 = vpow2.f32 %v3088_v63  ;;  %v3142_v36 = vmul.f32 %v4711_v4, %v6036_v27 }
0x1045   : > { %v4715_v9 = vpop.eup %4714  ;;  %4732 = vpow2.f32 %v3086_v3  ;;  %v3141_v15 = vmul.f32 %v4713_v8, %v6039_v30 }
0x1046   : > { %v4717_v38 = vpop.eup %4716  ;;  %4734 = vpow2.f32 %v3090_v5  ;;  %v3143_v17 = vmul.f32 %v4715_v9, %v6042_v53 }
0x1047   : > { %v4719_v57 = vpop.eup %4718  ;;  %v3144_v12 = vmul.f32 %v4717_v38, %v6046_v32  ;;  %4736 = vrcp.f32 %v3102_v24 }
0x1048   : > { %v4721_v13 = vpop.eup %4720  ;;  %v3146_v61 = vmul.f32 %v4719_v57, %v6049_v40  ;;  %4738 = vrcp.f32 %v3101_v28 }
0x1049   : > { %v4723_v14 = vpop.eup %4722  ;;  %v3156_v19 = vpack.c.bf16 %v3144_v12, %v3140_v11  ;;  %v3145_v20 = vmul.f32 %v4721_v13, %v6054_v43 }
0x104a   : > { %v4725_v51 = vpop.eup %4724  ;;  %v3158_v31 = vpack.c.bf16 %v3146_v61, %v3142_v36  ;;  %v3147_v26 = vmul.f32 %v4723_v14, %v6057_v49 }
0x104b   : > { %v3157_v32 = vpack.c.bf16 %v3145_v20, %v3141_v15  ;;  %v4727_v25 = vpop.eup %4726  ;;  %v3103_v27 = vadd.f32 1.0, %v4725_v51 }
0x104c   : > { %v3159_v29 = vpack.c.bf16 %v3147_v26, %v3143_v17  ;;  %v3148_v34 = vmul.f32 %v4727_v25, %v6063_v2 }
0x104d   : > { %3459 = vmatprep.mubr.bf16.mxu1 %v3157_v32  ;;  %v4729_v40 = vpop.eup %4728  ;;  %4740 = vrcp.f32 %v3103_v27 }
0x104e   : > { %3508 = vmatprep.mubr.bf16.mxu0 %v3159_v29  ;;  %3460 = vmatmul.mubr.bf16.vlgmr.msra.gmra.mrb[60].mxu1 %v3156_v19  ;;  %v4731_v30 = vpop.eup %4730  ;;  %v3152_v43 = vmul.f32 %v4729_v40, %v6072_v10 }
0x104f   : > { %3509 = vmatmul.mubr.bf16.vlgmr.msra.gmra.mrb[36].mxu0 %v3158_v31  ;;  %v4733_v53 = vpop.eup %4732  ;;  %v3106_v49 = vadd.f32 1.0, %v4731_v30 }
0x1050   : > { %v4735_v39 = vpop.eup %4734  ;;  %v3105_v42 = vadd.f32 1.0, %v4733_v53  ;;  %v3160_v44 = vpack.c.bf16 %v3152_v43, %v3148_v34 }
0x1051   : > { %4742 = vrcp.f32 %v3106_v49  ;;  %v3107_v46 = vadd.f32 1.0, %v4735_v39  ;;  %v4737_v47 = vpop.eup %4736 }
0x1052   : > { %4744 = vrcp.f32 %v3105_v42  ;;  %v4739_v48 = vpop.eup %4738  ;;  %v3150_v55 = vmul.f32 %v4737_v47, %v6066_v6 }
0x1053   : > { %4746 = vrcp.f32 %v3107_v46  ;;  %v3149_v56 = vmul.f32 %v4739_v48, %v6069_v7  ;;  %v4030_v7 = vld [vmem:[%s984_s17] ss:$0 sm:$0xff]  ;;  %s6288_s17 = sld [smem:[#allocation45_spill]] (!%p4063_p8) }
0x1057   : > { %v4741_v54 = vpop.eup %4740 }
0x1058   : > { %v3151_v23 = vmul.f32 %v4741_v54, %v6078_v35 }
0x105b   : > { %v4743_v16 = vpop.eup %4742 }
0x105c   : > { %v4745_v2 = vpop.eup %4744  ;;  %v3154_v10 = vmul.f32 %v4743_v16, %v6082_v41 }
0x105d   : > { %v4747_v22 = vpop.eup %4746  ;;  %v3153_v58 = vmul.f32 %v4745_v2, %v6085_v45 }
0x105e   : > { %v3155_v59 = vmul.f32 %v4747_v22, %v6088_v52  ;;  %v3162_v60 = vpack.c.bf16 %v3154_v10, %v3150_v55 }
0x105f   : > { %v3161_v62 = vpack.c.bf16 %v3153_v58, %v3149_v56 }
0x1060   : > { %v3163_v33 = vpack.c.bf16 %v3155_v59, %v3151_v23 }
0x1061   : > { %3467 = vmatprep.mubr.bf16.mxu1 %v3161_v62 }
0x1062   : > { %3516 = vmatprep.mubr.bf16.mxu0 %v3163_v33  ;;  %3468 = vmatmul.mubr.bf16.gmra.mrb[64].mxu1 %v3160_v44 }
0x1063   : > { %3517 = vmatmul.mubr.bf16.gmra.mrb[40].mxu0 %v3162_v60 }
0x1121   : > { %v4164_v6 = vpop.f32.mrb[60].mxu1 }
0x1122   : > { %v4192_v63 = vpop.f32.mrb[36].mxu0  ;;  %v4165_v41 = vpop.f32.mrb[61].mxu1 }
0x1123   : > { %v4166_v45 = vadd.f32 %v4165_v41, %v4164_v6  ;;  %v4193_v0 = vpop.f32.mrb[37].mxu0  ;;  %v4167_v35 = vpop.f32.mrb[62].mxu1 }
0x1124   : > { %v4194_v1 = vadd.f32 %v4193_v0, %v4192_v63  ;;  %v4195_v52 = vpop.f32.mrb[38].mxu0  ;;  %v4168_v3 = vpop.f32.mrb[63].mxu1 }
0x1125   : > { %v3462_v4 = vadd.f32 %v4166_v45, %v4030_v7  ;;  %v4169_v5 = vadd.f32 %v4168_v3, %v4167_v35  ;;  %v4196_v8 = vpop.f32.mrb[39].mxu0  ;;  %v4065_v45 = vld [vmem:[%s6289_s26] ss:$0 sm:$0xff] (!%p4063_p8) }
0x1126   : > { %v4197_v9 = vadd.f32 %v4196_v8, %v4195_v52 }
0x1127   : > { %v3511_v38 = vadd.f32 %v4194_v1, %v3462_v4  ;;  %v3465_v57 = vadd.f32 %v4169_v5, %v4030_v7 }
0x1129   : > { %v3525_v11 = vadd.f32 %v3511_v38, %v5912_v18  ;;  %v3514_v12 = vadd.f32 %v4197_v9, %v3465_v57 }
0x112b   : > { %3529 = vst [vmem:[#allocation2] sm:$0xff] %v3525_v11  ;;  %v3526_v13 = vadd.f32 %v3514_v12, %v5914_v37  ;;  %3539 = vadd.xlane.f32.xlu0 (!%p4063_p8), %v3525_v11 }
0x112d   : > { %3530 = vst [vmem:[#allocation2 + $0x8] sm:$0xff] %v3526_v13 }
0x112f   : > { %3541 = vadd.xlane.f32.xlu0 (!%p4063_p8), %v3526_v13 }
0x1135   : > { %v4170_v36 = vpop.f32.mrb[64].mxu1 }
0x1136   : > { %v4198_v61 = vpop.f32.mrb[40].mxu0  ;;  %v4171_v14 = vpop.f32.mrb[65].mxu1 }
0x1137   : > { %v4172_v15 = vadd.f32 %v4171_v14, %v4170_v36  ;;  %v4199_v19 = vpop.f32.mrb[41].mxu0  ;;  %v4173_v20 = vpop.f32.mrb[66].mxu1 }
0x1138   : > { %v4200_v51 = vadd.f32 %v4199_v19, %v4198_v61  ;;  %v4201_v17 = vpop.f32.mrb[42].mxu0  ;;  %v4174_v31 = vpop.f32.mrb[67].mxu1 }
0x1139   : > { %v3470_v26 = vadd.f32 %v4172_v15, %v4030_v7  ;;  %v4175_v24 = vadd.f32 %v4174_v31, %v4173_v20  ;;  %v4202_v32 = vpop.f32.mrb[43].mxu0 }
0x113a   : > { %v4203_v25 = vadd.f32 %v4202_v32, %v4201_v17 }
0x113b   : > { %v3519_v28 = vadd.f32 %v4200_v51, %v3470_v26  ;;  %v3473_v18 = vadd.f32 %v4175_v24, %v4030_v7  ;;  %3536 = sbr.rel (%p4063_p8) target bundleno = 4731 (0x127b), region = 132  ;;  %v4064_v7 = vld [vmem:[%s6288_s17] ss:$0 sm:$0xff] (!%p4063_p8) }
0x113d   : > { %v3527_v29 = vadd.f32 %v3519_v28, %v5917_v50  ;;  %v3522_v27 = vadd.f32 %v4203_v25, %v3473_v18 }
0x113f   : > { %3531 = vst [vmem:[#allocation2 + $0x10] sm:$0xff] %v3527_v29  ;;  %v3528_v37 = vadd.f32 %v3522_v27, %v5921_v21  ;;  %3543 = vadd.xlane.f32.xlu1 (!%p4063_p8), %v3527_v29 }
0x1141   : > { %3532 = vst [vmem:[#allocation2 + $0x18] sm:$0xff] %v3528_v37 }
0x1143   : > { %3545 = vadd.xlane.f32.xlu1 %v3528_v37 }
0x11b8   : > { %v3540_v40 = vpop.xlane.xlu0 %3539 }
0x11b9   : > { %v3547_v34 = vmul.f32 0.0078125, %v3540_v40 }
0x11bb   : > { %v3551_v53 = vsub.f32 %v3525_v11, %v3547_v34 }
0x11bc   : > { %v3542_v39 = vpop.xlane.xlu0 %3541 }
0x11bd   : > { %v3548_v42 = vmul.f32 0.0078125, %v3542_v39  ;;  %v3555_v44 = vmul.f32 %v3551_v53, %v3551_v53 }
0x11bf   : > { %v3552_v21 = vsub.f32 %v3526_v13, %v3548_v42  ;;  %3559 = vadd.xlane.f32.xlu0 %v3555_v44 }
0x11c1   : > { %v3556_v54 = vmul.f32 %v3552_v21, %v3552_v21 }
0x11c3   : > { %3561 = vadd.xlane.f32.xlu1 %v3556_v54 }
0x11cc   : > { %v3544_v30 = vpop.xlane.xlu1 %3543 }
0x11cd   : > { %v3549_v43 = vmul.f32 0.0078125, %v3544_v30 }
0x11cf   : > { %v3553_v49 = vsub.f32 %v3527_v29, %v3549_v43 }
0x11d0   : > { %v3546_v50 = vpop.xlane.xlu1 %3545 }
0x11d1   : > { %v3550_v46 = vmul.f32 0.0078125, %v3546_v50  ;;  %v3557_v48 = vmul.f32 %v3553_v49, %v3553_v49 }
0x11d3   : > { %v3554_v47 = vsub.f32 %v3528_v37, %v3550_v46  ;;  %3563 = vadd.xlane.f32.xlu0 %v3557_v48 }
0x11d5   : > { %v3558_v16 = vmul.f32 %v3554_v47, %v3554_v47 }
0x11d7   : > { %3565 = vadd.xlane.f32.xlu1 %v3558_v16 }
0x124c   : > { %v3560_v2 = vpop.xlane.xlu0 %3559 }
0x124d   : > { %v3567_v55 = vmul.f32 0.0078125, %v3560_v2 }
0x124f   : > { %v3571_v10 = vadd.f32 1e-05, %v3567_v55 }
0x1250   : > { %v3562_v22 = vpop.xlane.xlu1 %3561 }
0x1251   : > { %4752 = vrsqrt.f32 %v3571_v10  ;;  %v3568_v58 = vmul.f32 0.0078125, %v3562_v22 }
0x1253   : > { %v3572_v59 = vadd.f32 1e-05, %v3568_v58 }
0x1255   : > { %4754 = vrsqrt.f32 %v3572_v59 }
0x125b   : > { %v4753_v63 = vpop.eup %4752 }
0x125c   : > { %v3579_v41 = vmul.f32 %v4753_v63, %v3551_v53 }
0x125e   : > { %v3589_v0 = vmul.f32 %v4064_v7, %v3579_v41 }
0x125f   : > { %v4755_v35 = vpop.eup %4754 }
0x1260   : > { %v3564_v56 = vpop.xlane.xlu0 %3563  ;;  %v3599_v52 = vadd.f32 %v4065_v45, %v3589_v0  ;;  %v3580_v3 = vmul.f32 %v4755_v35, %v3552_v21 }
0x1261   : > { %v3569_v23 = vmul.f32 0.0078125, %v3564_v56 }
0x1262   : > { %3603 = vst [vmem:[#allocation16] sm:$0xff] %v3599_v52  ;;  %v3590_v5 = vmul.f32 %v4064_v7, %v3580_v3 }
0x1263   : > { %v3573_v60 = vadd.f32 1e-05, %v3569_v23 }
0x1264   : > { %v3566_v62 = vpop.xlane.xlu1 %3565  ;;  %v3600_v38 = vadd.f32 %v4065_v45, %v3590_v5 }
0x1265   : > { %v3570_v33 = vmul.f32 0.0078125, %v3566_v62  ;;  %4756 = vrsqrt.f32 %v3573_v60 }
0x1266   : > { %3604 = vst [vmem:[#allocation16 + $0x8] sm:$0xff] %v3600_v38 }
0x1267   : > { %v3574_v6 = vadd.f32 1e-05, %v3570_v33 }
0x1269   : > { %4758 = vrsqrt.f32 %v3574_v6 }
0x126f   : > { %v4757_v1 = vpop.eup %4756 }
0x1270   : > { %v3581_v4 = vmul.f32 %v4757_v1, %v3553_v49 }
0x1272   : > { %v3591_v9 = vmul.f32 %v4064_v7, %v3581_v4 }
0x1273   : > { %v4759_v8 = vpop.eup %4758 }
0x1274   : > { %v3582_v57 = vmul.f32 %v4759_v8, %v3554_v47  ;;  %v3601_v11 = vadd.f32 %v4065_v45, %v3591_v9 }
0x1276   : > { %v3592_v12 = vmul.f32 %v4064_v7, %v3582_v57  ;;  %3605 = vst [vmem:[#allocation16 + $0x10] sm:$0xff] %v3601_v11 }
0x1278   : > { %v3602_v13 = vadd.f32 %v4065_v45, %v3592_v12 }
0x127a   : > { %3606 = vst [vmem:[#allocation16 + $0x18] sm:$0xff] %v3602_v13 }
0x127b PF: > { %s6290_s24 = sld [smem:[#allocation28_spill]]  ;;  %s5081_s10 = smov [#allocation16]  }
0x127c   : > { %s3617_s8 = sshll.u32 %s5081_s10, 4  ;;  %s3618_s8 = int_to_ptr.vmem [resolvable:$true] %s3617_s8 }
0x127d   : > { %s4968_s13 = scalar_lea.vmem %s3618_s8, 512  ;;  %p4975_p2 = scmp.lt.s32.totalorder %s3618_s8, %s3618_s8 }
0x127e   : > { %p4969_p7 = scmp.ne.s32.totalorder %s3618_s8, %s4968_s13  ;;  %p4976_p12 = scmp.lt.s32.totalorder %s4968_s13, %s4968_s13 }
0x1280   : > { %p4977_p1 = por %p4976_p12, %p4975_p2 }
0x1281   : > { %p4426_p9 = scmp.eq.s32.totalorder %s6290_s24, 1 }
0x1283   : > { %p4970_p4 = pnand %p4969_p7, %p4426_p9 }
0x1285   : > { %p4971_p13 = pneg %p4970_p4 }
0x1287   : > { %p4978_p3 = pnand %p4977_p1, %p4971_p13 }
0x1289   : > { %4981 = shalt.err (!%p4978_p3)
}
0x128a   : > { %s6291_s19 = sld [smem:[#allocation47_spill]] }
0x1290   : > { %s4982_s7 = scalar_lea.hbm %s6291_s19, 512 }
0x1291   : > { %p4983_p11 = scmp.ne.s32.totalorder %s6291_s19, %s4982_s7  ;;  %p4988_p10 = scmp.lt.u32.totalorder %s4982_s7, %s6291_s19 }
0x1293   : > { %p4984_p0 = pnand %p4983_p11, %p4426_p9 }
0x1295   : > { %p4985_p5 = pneg %p4984_p0 }
0x1297   : > { %p4990_p6 = pnand %p4988_p10, %p4985_p5 }
0x1299   : > { %4993 = shalt.err (!%p4990_p6)
}
0x129a   : > { %s5082_s1 = smov 128   ;;  %s5083_s30 = smov 8  }
0x129b   : > { %4397 = dma.vmem_to_hbm [thread:$0]  (%p4426_p9), %s3618_s8, 512, %s6291_s19, [#allocation6], %s5082_s1, %s5082_s1, %s5083_s30  }
0x129c   : > { %5035 = dma.done.wait (%p4426_p9), [#allocation6], 512  }
0x129d   : > { %5037 = vsyncadd (%p4426_p9), [#allocation6], 4294966784 }
0x129e PF: > { %s6292_s29 = sld [smem:[#allocation25_spill]]  ;;  %s6293_s0 = sld [smem:[#allocation22_spill]] }
0x129f   : > { %s6294_s30 = sld [smem:[#allocation23_spill]]  ;;  %s6295_s20 = sld [smem:[#allocation27_spill]] }
0x12a0   : > { %s6296_s21 = sld [smem:[#allocation24_spill]]  ;;  %s6297_s1 = sld [smem:[#allocation26_spill]] }
0x12a4   : > { %s40_s22 = sadd.s32 1, %s6292_s29  }
0x12a5   : > { %p37_p8 = scmp.ge.s32.totalorder %s40_s22, 4  }
0x12a7   :  { %39 = sbr.rel (!%p37_p8) target bundleno = 30 (0x1e), region = 237 }
0x12ae   :  { %3633 = vsyncpa [#allocation5], 1 }
0x12af   :  { %3635 = vsyncpa [#allocation5 + $0x1], 1 }
0x12b0   :  { %3636 = vsyncpa [#allocation8], 1 }
0x12b1   :  { %3638 = vsyncpa [#allocation8 + $0x1], 1 }
0x12b2   :  { %3639 = vsyncpa [#allocation11], 1 }
0x12b3   :  { %3641 = vsyncpa [#allocation11 + $0x1], 1 }
0x12b4   :  { %3642 = vsyncpa [#allocation14], 1 }
0x12b5   :  { %3644 = vsyncpa [#allocation14 + $0x1], 1 }
0x12b6   :  { %3645 = vsyncpa [#allocation6], 1 }
0x12b7   :  { %3647 = vsyncpa [#allocation6 + $0x1], 1 }

</bundles_post_ra>
